<compile_context>
chip_gen: v7x
topology: tpu7x:2x2x1
jax: 0.10.0
libtpu: 0.0.40
codegen_flags: <defaults>
</compile_context>

<pallas_src>
import functools
import math

import jax
import jax.numpy as jnp
from jax import lax
from jax.experimental import pallas as pl
from jax.experimental.pallas import tpu as pltpu


# ------------------------------ math helpers --------------------------------

def _gelu_new(x):
    # GPT-2 "gelu_new" (tanh approximation), f32.
    return 0.5 * x * (1.0 + jnp.tanh(
        math.sqrt(2.0 / math.pi) * (x + 0.044715 * x * x * x)))


def _ln(x, g, b, eps=1e-5):
    mu = jnp.mean(x, axis=-1, keepdims=True)
    xc = x - mu
    var = jnp.mean(xc * xc, axis=-1, keepdims=True)
    return xc * lax.rsqrt(var + eps) * g + b


# --------------------------- chip-aware heuristics ---------------------------

def _num_tensorcores():
    """TensorCores the 'parallel' grid axis can shard across (v7x/v5p/v4: 2)."""
    try:
        kind = jax.devices()[0].device_kind.lower()
    except Exception:
        return 1
    return 2 if any(t in kind for t in ("v7", "7x", "v5p", "v4")) else 1


def _pick_bm_tiles(bm, n_tok, d, n_cores):
    """#BM tiles for the stack: >= n_cores, per-tile f32 activations <= ~4MiB.

    On 1-TC chips (v5e/v6e) this stays at 1 so per-layer weights are DMA'd
    exactly once per layer; on v7x it gives the pipeline parallel steps.
    """
    if n_cores < 1 or bm % n_cores != 0:
        return 1
    tiles = n_cores
    per_row = n_tok * (2 * d + 3 * d + 4 * d) * 4     # resid in/out + qkv + mlp
    while (bm // tiles) * per_row > (4 << 20) and bm % (tiles * 2) == 0:
        tiles *= 2
    return tiles


# ----------------------- kernel 1: fused front-end ---------------------------

def _frontend_kernel(x_ref, wunf_ref, wpe_ref, h_ref, st_ref, *, stride):
    x = x_ref[...].astype(jnp.float32)                 # (B, L, M)
    B, L, M = x.shape
    bm = B * M

    # (b l m) -> (b m l) in-kernel, then RevIN stats (unbiased=False) in f32.
    xt = jnp.transpose(x, (0, 2, 1)).reshape(bm, L)    # (B*M, L)
    mu = jnp.mean(xt, axis=-1, keepdims=True)
    xc = xt - mu
    var = jnp.mean(xc * xc, axis=-1, keepdims=True)
    sd = jnp.sqrt(var + 1e-5)
    xn = xc / sd
    st_ref[...] = jnp.concatenate([mu, sd], axis=-1)   # (B*M, 2)

    # ReplicationPad1d((0, stride)); unfold + in_layer are pre-folded into
    # W_unf, so one matmul emits the lane-dense (B*M, patch_num*D) slab.
    pad = jnp.broadcast_to(xn[:, L - 1:L], (bm, stride))
    xp = jnp.concatenate([xn, pad], axis=-1)           # (B*M, L+stride)
    h = jnp.dot(xp.astype(jnp.bfloat16), wunf_ref[...],
                preferred_element_type=jnp.float32)
    h_ref[...] = h + wpe_ref[...]                      # in_b folded into wpe


def _build_unfold_weight(in_w, seq_len, stride, patch_num):
    # W_unf[t, n*D + d] = in_w[t - n*stride, d] for t in the n-th patch window.
    P, D = in_w.shape
    w = jnp.zeros((seq_len + stride, patch_num * D), in_w.dtype)
    for n in range(patch_num):
        w = w.at[n * stride:n * stride + P, n * D:(n + 1) * D].set(in_w)
    return w


def _frontend_call(x, w_unf, wpe_flat, cfg):
    B, L, M = x.shape
    S = cfg["stride"]
    N, D = cfg["patch_num"], cfg["d_model"]
    BM = B * M
    return pl.pallas_call(
        functools.partial(_frontend_kernel, stride=S),
        grid=(1,),
        in_specs=[
            pl.BlockSpec((B, L, M), lambda i: (0, 0, 0)),
            pl.BlockSpec((L + S, N * D), lambda i: (0, 0)),
            pl.BlockSpec((1, N * D), lambda i: (0, 0)),
        ],
        out_specs=(
            pl.BlockSpec((BM, N * D), lambda i: (0, 0)),
            pl.BlockSpec((BM, 2), lambda i: (0, 0)),
        ),
        out_shape=(
            jax.ShapeDtypeStruct((BM, N * D), jnp.float32),
            jax.ShapeDtypeStruct((BM, 2), jnp.float32),
        ),
        compiler_params=pltpu.CompilerParams(
            dimension_semantics=("arbitrary",)),
    )(x, w_unf.astype(jnp.bfloat16), wpe_flat)


# ------------------ kernel 2: fused GPT-2 transformer stack ------------------

W_ORDER = ("ln1_g", "ln1_b", "attn_w", "attn_b", "proj_w", "proj_b",
           "ln2_g", "ln2_b", "fc_w", "fc_b", "mproj_w", "mproj_b")
_BF16_W = frozenset({"attn_w", "proj_w", "fc_w", "mproj_w"})


def _block_stack_kernel(h0_ref,
                        ln1g_ref, ln1b_ref, attnw_ref, attnb_ref,
                        projw_ref, projb_ref, ln2g_ref, ln2b_ref,
                        fcw_ref, fcb_ref, mpw_ref, mpb_ref,
                        h_ref, *, n_head):
    # Residual stream stays resident in VMEM across the "arbitrary" layer axis.
    @pl.when(pl.program_id(1) == 0)
    def _():
        h_ref[...] = h0_ref[...]

    h = h_ref[...].astype(jnp.float32)                 # (tbm, N, D)
    tbm, N, D = h.shape
    dh = D // n_head
    scale = 1.0 / math.sqrt(dh)
    hs = h.reshape(tbm * N, D)

    # ------ attention: heads moved onto the batch axis, ONE batched einsum
    # ------ pair (scores, PV) instead of a per-head matmul loop ------------
    a = _ln(hs, ln1g_ref[...], ln1b_ref[...])
    qkv = jnp.dot(a.astype(jnp.bfloat16), attnw_ref[...],
                  preferred_element_type=jnp.float32) + attnb_ref[...]
    qkv = qkv.reshape(tbm, N, 3 * D)

    def split_heads(off):                              # -> (n_head*tbm, N, dh)
        return jnp.concatenate(
            [qkv[:, :, off + hh * dh: off + (hh + 1) * dh]
             for hh in range(n_head)], axis=0).astype(jnp.bfloat16)

    qh, kh, vh = split_heads(0), split_heads(D), split_heads(2 * D)

    row = lax.broadcasted_iota(jnp.int32, (N, N), 0)
    col = lax.broadcasted_iota(jnp.int32, (N, N), 1)
    causal_bias = jnp.where(col <= row, 0.0, -1e30).astype(jnp.float32)

    s = jnp.einsum("bnd,bmd->bnm", qh, kh,
                   preferred_element_type=jnp.float32) * scale + causal_bias
    s = s - jnp.max(s, axis=-1, keepdims=True)
    p = jnp.exp(s)
    p = p * pl.reciprocal(jnp.sum(p, axis=-1, keepdims=True), approx=True)
    o = jnp.einsum("bnm,bmd->bnd", p.astype(jnp.bfloat16), vh,
                   preferred_element_type=jnp.float32)  # (n_head*tbm, N, dh)

    attn = jnp.concatenate(
        [o[hh * tbm:(hh + 1) * tbm] for hh in range(n_head)],
        axis=-1).reshape(tbm * N, D)
    attn = jnp.dot(attn.astype(jnp.bfloat16), projw_ref[...],
                   preferred_element_type=jnp.float32) + projb_ref[...]
    h1 = hs + attn

    # ------------------------- MLP sub-block --------------------------------
    m = _ln(h1, ln2g_ref[...], ln2b_ref[...])
    m = jnp.dot(m.astype(jnp.bfloat16), fcw_ref[...],
                preferred_element_type=jnp.float32) + fcb_ref[...]
    m = _gelu_new(m)
    m = jnp.dot(m.astype(jnp.bfloat16), mpw_ref[...],
                preferred_element_type=jnp.float32) + mpb_ref[...]
    h_ref[...] = (h1 + m).reshape(tbm, N, D)


def _stack_call(h, stack, n_head, n_bm_tiles):
    BM, N, D = h.shape
    E = stack["ln1_g"].shape[0]
    tbm = BM // n_bm_tiles

    h_spec = pl.BlockSpec((tbm, N, D), lambda i, l: (i, 0, 0))

    weights, in_specs = [], [h_spec]
    w_bytes = 0
    for k in W_ORDER:
        arr = stack[k]
        if k in _BF16_W:
            arr = arr.astype(jnp.bfloat16)
        weights.append(arr)
        w_bytes += math.prod(arr.shape[1:]) * arr.dtype.itemsize
        # layer l's weights selected by the grid; double-buffered by BlockSpec.
        in_specs.append(
            pl.BlockSpec((None,) + arr.shape[1:], lambda i, l: (l, 0, 0)))

    # Explicit VMEM budget: double-buffered per-layer weights + residual block
    # (in + out) + f32 intermediates (qkv + MLP hidden), with 50% headroom.
    # TODO(synk): at real GPT-2 dims on v7x (64 MiB VMEM) fc_w/mproj_w should
    # additionally be split along Dff into chunks.
    act_bytes = tbm * N * (2 * D + 3 * D + 4 * D) * 4
    budget = int(1.5 * (2 * w_bytes + 2 * act_bytes)) + (2 << 20)
    vmem_cap = 64 << 20                                 # v7x floor as fallback
    try:
        vmem_cap = int(pltpu.get_tpu_info().vmem_capacity_bytes)
    except Exception:
        pass
    vmem_limit = int(min(max(budget, 32 << 20), 0.9 * vmem_cap))

    return pl.pallas_call(
        functools.partial(_block_stack_kernel, n_head=n_head),
        grid=(n_bm_tiles, E),
        in_specs=in_specs,
        out_specs=h_spec,
        out_shape=jax.ShapeDtypeStruct((BM, N, D), jnp.float32),
        compiler_params=pltpu.CompilerParams(
            dimension_semantics=("parallel", "arbitrary"),
            vmem_limit_bytes=vmem_limit),
    )(h, *weights)


# ----------------------- kernel 3: fused back-end ----------------------------

def _backend_kernel(h_ref, st_ref, lnfg_ref, lnfb_ref, ow_ref, ob_ref, o_ref,
                    *, batch, channels):
    h = h_ref[...].astype(jnp.float32)                 # (BM, N, D)
    BM, N, D = h.shape
    hn = _ln(h, lnfg_ref[...], lnfb_ref[...])

    # Flatten tokens onto the lane axis -> ONE (N*D)-deep out_layer matmul.
    hflat = jnp.concatenate([hn[:, n, :] for n in range(N)], axis=-1)
    y = jnp.dot(hflat.astype(jnp.bfloat16), ow_ref[...],
                preferred_element_type=jnp.float32) + ob_ref[...]  # (BM, pred)

    y = y * st_ref[:, 1:2] + st_ref[:, 0:1]            # RevIN denorm fused
    pred = y.shape[-1]
    # Emit the reference (B, pred, M) layout directly (no wrapper transpose).
    o_ref[...] = jnp.transpose(y.reshape(batch, channels, pred), (0, 2, 1))


def _backend_call(h, stats, params, cfg, batch, channels):
    BM, N, D = h.shape
    pred = cfg["pred_len"]
    return pl.pallas_call(
        functools.partial(_backend_kernel, batch=batch, channels=channels),
        grid=(1,),
        in_specs=[
            pl.BlockSpec((BM, N, D), lambda i: (0, 0, 0)),
            pl.BlockSpec((BM, 2), lambda i: (0, 0)),
            pl.BlockSpec((1, D), lambda i: (0, 0)),
            pl.BlockSpec((1, D), lambda i: (0, 0)),
            pl.BlockSpec((N * D, pred), lambda i: (0, 0)),
            pl.BlockSpec((1, pred), lambda i: (0, 0)),
        ],
        out_specs=pl.BlockSpec((batch, pred, channels), lambda i: (0, 0, 0)),
        out_shape=jax.ShapeDtypeStruct((batch, pred, channels), jnp.float32),
        compiler_params=pltpu.CompilerParams(
            dimension_semantics=("arbitrary",)),
    )(h, stats, params["lnf_g"], params["lnf_b"],
      params["out_w"].astype(jnp.bfloat16), params["out_b"])


# ------------------------------ model forward --------------------------------

def gpt4ts_forward(x, params, cfg):
    B, L, M = x.shape
    N, D = cfg["patch_num"], cfg["d_model"]

    # Fold unfold into the in_layer weight; fold in_b into wpe.
    w_unf = _build_unfold_weight(params["in_w"], L, cfg["stride"], N)
    wpe_flat = (params["wpe"] + params["in_b"]).reshape(1, N * D)

    h, stats = _frontend_call(x, w_unf, wpe_flat, cfg)     # (B*M,N*D), (B*M,2)

    BM = B * M
    h = h.reshape(BM, N, D)                                # row-major: free
    n_bm_tiles = _pick_bm_tiles(BM, N, D, _num_tensorcores())
    h = _stack_call(h, params["stack"], cfg["n_head"], n_bm_tiles)

    return _backend_call(h, stats, params, cfg, B, M)      # (B, pred_len, M)


# ------------------------------ parameters -----------------------------------

def init_params(key, cfg):
    D, P = cfg["d_model"], cfg["patch_len"]
    N, E = cfg["patch_num"], cfg["e_layers"]
    Dff, pred = 4 * D, cfg["pred_len"]
    std = 0.02
    ks = jax.random.split(key, 7)

    def nrm(k, shape):
        return std * jax.random.normal(k, shape, jnp.float32)

    return {
        "in_w": nrm(ks[0], (P, D)),
        "in_b": jnp.zeros((1, D), jnp.float32),
        "wpe": nrm(ks[1], (N, D)),
        "out_w": nrm(ks[2], (N * D, pred)),
        "out_b": jnp.zeros((1, pred), jnp.float32),
        "lnf_g": jnp.ones((1, D), jnp.float32),
        "lnf_b": jnp.zeros((1, D), jnp.float32),
        "stack": {
            "ln1_g": jnp.ones((E, 1, D), jnp.float32),
            "ln1_b": jnp.zeros((E, 1, D), jnp.float32),
            "attn_w": nrm(ks[3], (E, D, 3 * D)),
            "attn_b": jnp.zeros((E, 1, 3 * D), jnp.float32),
            "proj_w": nrm(ks[4], (E, D, D)),
            "proj_b": jnp.zeros((E, 1, D), jnp.float32),
            "ln2_g": jnp.ones((E, 1, D), jnp.float32),
            "ln2_b": jnp.zeros((E, 1, D), jnp.float32),
            "fc_w": nrm(ks[5], (E, D, Dff)),
            "fc_b": jnp.zeros((E, 1, Dff), jnp.float32),
            "mproj_w": nrm(ks[6], (E, Dff, D)),
            "mproj_b": jnp.zeros((E, 1, D), jnp.float32),
        },
    }


# --------------------------- pure-JAX reference ------------------------------

def gpt4ts_reference(x, params, cfg):
    B, L, M = x.shape
    P, S = cfg["patch_len"], cfg["stride"]
    N, D = cfg["patch_num"], cfg["d_model"]
    n_head = cfg["n_head"]
    dh = D // n_head

    mu = jnp.mean(x, axis=1, keepdims=True)
    xc = x - mu
    sd = jnp.sqrt(jnp.var(xc, axis=1, keepdims=True) + 1e-5)
    xn = xc / sd
    xt = jnp.transpose(xn, (0, 2, 1))
    xp = jnp.concatenate([xt, jnp.repeat(xt[:, :, -1:], S, axis=-1)], axis=-1)
    idx = jnp.arange(N)[:, None] * S + jnp.arange(P)[None, :]
    patches = xp[:, :, idx].reshape(B * M, N, P)

    h = patches @ params["in_w"] + params["in_b"] + params["wpe"][None]
    st = params["stack"]
    mask = jnp.tril(jnp.ones((N, N), bool))
    for l in range(cfg["e_layers"]):
        a = _ln(h, st["ln1_g"][l], st["ln1_b"][l])
        qkv = a @ st["attn_w"][l] + st["attn_b"][l]
        q, k, v = jnp.split(qkv, 3, axis=-1)
        sh = lambda t: t.reshape(B * M, N, n_head, dh).transpose(0, 2, 1, 3)
        q, k, v = sh(q), sh(k), sh(v)
        s = jnp.einsum("bhnd,bhmd->bhnm", q, k) / math.sqrt(dh)
        s = jnp.where(mask, s, -1e30)
        p = jax.nn.softmax(s, axis=-1)
        o = jnp.einsum("bhnm,bhmd->bhnd", p, v)
        o = o.transpose(0, 2, 1, 3).reshape(B * M, N, D)
        h = h + (o @ st["proj_w"][l] + st["proj_b"][l])
        m = _ln(h, st["ln2_g"][l], st["ln2_b"][l])
        m = _gelu_new(m @ st["fc_w"][l] + st["fc_b"][l])
        h = h + (m @ st["mproj_w"][l] + st["mproj_b"][l])
    h = _ln(h, params["lnf_g"], params["lnf_b"])
    out = h.reshape(B * M, N * D) @ params["out_w"] + params["out_b"]
    out = out.reshape(B, M, -1).transpose(0, 2, 1)        # (B, pred, M)
    return out * sd + mu


# ----------------------------------- main ------------------------------------

if __name__ == "__main__":
    cfg = dict(seq_len=32, patch_len=8, stride=4, pred_len=8,
               d_model=32, n_head=4, e_layers=2)
    cfg["patch_num"] = (cfg["seq_len"] - cfg["patch_len"]) // cfg["stride"] + 2
    B, M = 2, 4

    params = init_params(jax.random.PRNGKey(1), cfg)
    x = jax.random.normal(jax.random.PRNGKey(0), (B, cfg["seq_len"], M),
                          dtype=jnp.float32)

    fwd = jax.jit(functools.partial(gpt4ts_forward, cfg=cfg))
    out = jax.block_until_ready(fwd(x, params))

    assert out.shape == (B, cfg["pred_len"], M), out.shape
    assert bool(jnp.all(jnp.isfinite(out)))

    ref = gpt4ts_reference(x, params, cfg)
    err = float(jnp.max(jnp.abs(out - ref)))
    assert err < 5e-2, f"max abs err vs f32 reference: {err}"

    # TODO(synk): GPT-2 pretrained checkpoint is not loaded (weights are
    # synthesized deterministically); dropout layers are eval-mode identities.
    print("KERNEL_OK")
</pallas_src>

<mosaic_0001>
module attributes {stable_mosaic.version = 11 : i64} {
  func.func @_frontend_kernel(%arg0: i32, %arg1: memref<2x32x4xf32, #tpu.memory_space<vmem>>, %arg2: memref<36x256xbf16, #tpu.memory_space<vmem>>, %arg3: memref<1x256xf32, #tpu.memory_space<vmem>>, %arg4: memref<8x256xf32, #tpu.memory_space<vmem>>, %arg5: memref<8x2xf32, #tpu.memory_space<vmem>>) attributes {dimension_semantics = [#tpu.dimension_semantics<arbitrary>], iteration_bounds = array<i64: 1>, scalar_prefetch = 0 : i64, scratch_operands = 0 : i64, tpu.core_type = #tpu.core_type<tc>, window_params = [{pipeline_mode = #tpu.pipeline_mode<synchronous>, transform_indices = @transform_0, window_bounds = array<i64: 2, 32, 4>}, {pipeline_mode = #tpu.pipeline_mode<synchronous>, transform_indices = @transform_1, window_bounds = array<i64: 36, 256>}, {pipeline_mode = #tpu.pipeline_mode<synchronous>, transform_indices = @transform_2, window_bounds = array<i64: 1, 256>}, {pipeline_mode = #tpu.pipeline_mode<synchronous>, transform_indices = @transform_3, window_bounds = array<i64: 8, 256>}, {pipeline_mode = #tpu.pipeline_mode<synchronous>, transform_indices = @transform_4, window_bounds = array<i64: 8, 2>}]} {
    %c0 = arith.constant 0 : index
    %c0_0 = arith.constant 0 : index
    %c0_1 = arith.constant 0 : index
    %0 = vector.load %arg1[%c0, %c0_0, %c0_1] : memref<2x32x4xf32, #tpu.memory_space<vmem>>, vector<2x32x4xf32>
    %1 = tpu.transpose %0, [0, 2, 1] : vector<2x32x4xf32> -> vector<2x4x32xf32>
    %2 = vector.shape_cast %1 : vector<2x4x32xf32> to vector<8x32xf32>
    %cst = arith.constant dense<0.000000e+00> : vector<8xf32>
    %3 = vector.multi_reduction <add>, %2, %cst [1] : vector<8x32xf32> to vector<8xf32>
    %4 = vector.shape_cast %3 : vector<8xf32> to vector<8x1xf32>
    %cst_2 = arith.constant 3.200000e+01 : f32
    %5 = vector.broadcast %cst_2 : f32 to vector<8x1xf32>
    %6 = arith.divf %4, %5 : vector<8x1xf32>
    %7 = vector.broadcast %6 : vector<8x1xf32> to vector<8x32xf32>
    %8 = arith.subf %2, %7 : vector<8x32xf32>
    %9 = arith.mulf %8, %8 : vector<8x32xf32>
    %cst_3 = arith.constant dense<0.000000e+00> : vector<8xf32>
    %10 = vector.multi_reduction <add>, %9, %cst_3 [1] : vector<8x32xf32> to vector<8xf32>
    %11 = vector.shape_cast %10 : vector<8xf32> to vector<8x1xf32>
    %cst_4 = arith.constant 3.200000e+01 : f32
    %12 = vector.broadcast %cst_4 : f32 to vector<8x1xf32>
    %13 = arith.divf %11, %12 : vector<8x1xf32>
    %cst_5 = arith.constant 9.99999974E-6 : f32
    %14 = vector.broadcast %cst_5 : f32 to vector<8x1xf32>
    %15 = arith.addf %13, %14 : vector<8x1xf32>
    %16 = math.sqrt %15 : vector<8x1xf32>
    %17 = vector.broadcast %16 : vector<8x1xf32> to vector<8x32xf32>
    %18 = arith.divf %8, %17 : vector<8x32xf32>
    %19 = tpu.concatenate %6, %16 in 1 : vector<8x1xf32>, vector<8x1xf32> -> vector<8x2xf32>
    %c0_6 = arith.constant 0 : index
    %c0_7 = arith.constant 0 : index
    %20 = vector.load %arg5[%c0_6, %c0_7] : memref<8x2xf32, #tpu.memory_space<vmem>>, vector<8x2xf32>
    tpu.vector_store %arg5[%c0_6, %c0_7], %19 {strides = array<i32>} : memref<8x2xf32, #tpu.memory_space<vmem>>, vector<8x2xf32>,
    %21 = vector.extract_strided_slice %18 {offsets = [0, 31], sizes = [8, 1], strides = [1, 1]} : vector<8x32xf32> to vector<8x1xf32>
    %22 = vector.shape_cast %21 : vector<8x1xf32> to vector<8x1xf32>
    %23 = vector.broadcast %22 : vector<8x1xf32> to vector<8x4xf32>
    %24 = tpu.concatenate %18, %23 in 1 : vector<8x32xf32>, vector<8x4xf32> -> vector<8x36xf32>
    %25 = arith.truncf %24 : vector<8x36xf32> to vector<8x36xbf16>
    %c0_8 = arith.constant 0 : index
    %c0_9 = arith.constant 0 : index
    %26 = vector.load %arg2[%c0_8, %c0_9] : memref<36x256xbf16, #tpu.memory_space<vmem>>, vector<36x256xbf16>
    %cst_10 = arith.constant dense<0.000000e+00> : vector<8x256xf32>
    %27 = tpu.matmul %25, %26, %cst_10 {dimension_numbers = #tpu.dot_dimension_numbers<[1], [0], [0], [1], [0, 0, 1, 1], [], []>} : vector<8x36xbf16>, vector<36x256xbf16>, vector<8x256xf32> -> vector<8x256xf32>
    %c0_11 = arith.constant 0 : index
    %c0_12 = arith.constant 0 : index
    %28 = vector.load %arg3[%c0_11, %c0_12] : memref<1x256xf32, #tpu.memory_space<vmem>>, vector<1x256xf32>
    %29 = vector.broadcast %28 : vector<1x256xf32> to vector<8x256xf32>
    %30 = arith.addf %27, %29 : vector<8x256xf32>
    %c0_13 = arith.constant 0 : index
    %c0_14 = arith.constant 0 : index
    %31 = vector.load %arg4[%c0_13, %c0_14] : memref<8x256xf32, #tpu.memory_space<vmem>>, vector<8x256xf32>
    tpu.vector_store %arg4[%c0_13, %c0_14], %30 {strides = array<i32>} : memref<8x256xf32, #tpu.memory_space<vmem>>, vector<8x256xf32>,
    return
  }
  func.func @transform_0(%arg0: i32) -> (i32, i32, i32) {
    %c0_i32 = arith.constant 0 : i32
    %c0_i32_0 = arith.constant 0 : i32
    %c0_i32_1 = arith.constant 0 : i32
    %c0_i32_2 = arith.constant 0 : i32
    return %c0_i32, %c0_i32_0, %c0_i32_1 : i32, i32, i32
  }
  func.func @transform_1(%arg0: i32) -> (i32, i32) {
    %c0_i32 = arith.constant 0 : i32
    %c0_i32_0 = arith.constant 0 : i32
    %c0_i32_1 = arith.constant 0 : i32
    return %c0_i32, %c0_i32_0 : i32, i32
  }
  func.func @transform_2(%arg0: i32) -> (i32, i32) {
    %c0_i32 = arith.constant 0 : i32
    %c0_i32_0 = arith.constant 0 : i32
    %c0_i32_1 = arith.constant 0 : i32
    return %c0_i32, %c0_i32_0 : i32, i32
  }
  func.func @transform_3(%arg0: i32) -> (i32, i32) {
    %c0_i32 = arith.constant 0 : i32
    %c0_i32_0 = arith.constant 0 : i32
    %c0_i32_1 = arith.constant 0 : i32
    return %c0_i32, %c0_i32_0 : i32, i32
  }
  func.func @transform_4(%arg0: i32) -> (i32, i32) {
    %c0_i32 = arith.constant 0 : i32
    %c0_i32_0 = arith.constant 0 : i32
    %c0_i32_1 = arith.constant 0 : i32
    return %c0_i32, %c0_i32_0 : i32, i32
  }
}

module attributes {stable_mosaic.version = 11 : i64} {
  func.func @_backend_kernel(%arg0: i32, %arg1: memref<8x8x32xf32, #tpu.memory_space<vmem>>, %arg2: memref<8x2xf32, #tpu.memory_space<vmem>>, %arg3: memref<1x32xf32, #tpu.memory_space<vmem>>, %arg4: memref<1x32xf32, #tpu.memory_space<vmem>>, %arg5: memref<256x8xbf16, #tpu.memory_space<vmem>>, %arg6: memref<1x8xf32, #tpu.memory_space<vmem>>, %arg7: memref<2x8x4xf32, #tpu.memory_space<vmem>>) attributes {dimension_semantics = [#tpu.dimension_semantics<arbitrary>], iteration_bounds = array<i64: 1>, scalar_prefetch = 0 : i64, scratch_operands = 0 : i64, tpu.core_type = #tpu.core_type<tc>, window_params = [{pipeline_mode = #tpu.pipeline_mode<synchronous>, transform_indices = @transform_0, window_bounds = array<i64: 8, 8, 32>}, {pipeline_mode = #tpu.pipeline_mode<synchronous>, transform_indices = @transform_1, window_bounds = array<i64: 8, 2>}, {pipeline_mode = #tpu.pipeline_mode<synchronous>, transform_indices = @transform_2, window_bounds = array<i64: 1, 32>}, {pipeline_mode = #tpu.pipeline_mode<synchronous>, transform_indices = @transform_3, window_bounds = array<i64: 1, 32>}, {pipeline_mode = #tpu.pipeline_mode<synchronous>, transform_indices = @transform_4, window_bounds = array<i64: 256, 8>}, {pipeline_mode = #tpu.pipeline_mode<synchronous>, transform_indices = @transform_5, window_bounds = array<i64: 1, 8>}, {pipeline_mode = #tpu.pipeline_mode<synchronous>, transform_indices = @transform_6, window_bounds = array<i64: 2, 8, 4>}]} {
    %c0 = arith.constant 0 : index
    %c0_0 = arith.constant 0 : index
    %c0_1 = arith.constant 0 : index
    %0 = vector.load %arg1[%c0, %c0_0, %c0_1] : memref<8x8x32xf32, #tpu.memory_space<vmem>>, vector<8x8x32xf32>
    %c0_2 = arith.constant 0 : index
    %c0_3 = arith.constant 0 : index
    %1 = vector.load %arg3[%c0_2, %c0_3] : memref<1x32xf32, #tpu.memory_space<vmem>>, vector<1x32xf32>
    %c0_4 = arith.constant 0 : index
    %c0_5 = arith.constant 0 : index
    %2 = vector.load %arg4[%c0_4, %c0_5] : memref<1x32xf32, #tpu.memory_space<vmem>>, vector<1x32xf32>
    %cst = arith.constant dense<0.000000e+00> : vector<8x8xf32>
    %3 = vector.multi_reduction <add>, %0, %cst [2] : vector<8x8x32xf32> to vector<8x8xf32>
    %4 = vector.shape_cast %3 : vector<8x8xf32> to vector<8x8x1xf32>
    %cst_6 = arith.constant 3.200000e+01 : f32
    %5 = vector.broadcast %cst_6 : f32 to vector<8x8x1xf32>
    %6 = arith.divf %4, %5 : vector<8x8x1xf32>
    %7 = vector.broadcast %6 : vector<8x8x1xf32> to vector<8x8x32xf32>
    %8 = arith.subf %0, %7 : vector<8x8x32xf32>
    %9 = arith.mulf %8, %8 : vector<8x8x32xf32>
    %cst_7 = arith.constant dense<0.000000e+00> : vector<8x8xf32>
    %10 = vector.multi_reduction <add>, %9, %cst_7 [2] : vector<8x8x32xf32> to vector<8x8xf32>
    %11 = vector.shape_cast %10 : vector<8x8xf32> to vector<8x8x1xf32>
    %cst_8 = arith.constant 3.200000e+01 : f32
    %12 = vector.broadcast %cst_8 : f32 to vector<8x8x1xf32>
    %13 = arith.divf %11, %12 : vector<8x8x1xf32>
    %cst_9 = arith.constant 9.99999974E-6 : f32
    %14 = vector.broadcast %cst_9 : f32 to vector<8x8x1xf32>
    %15 = arith.addf %13, %14 : vector<8x8x1xf32>
    %16 = math.rsqrt %15 : vector<8x8x1xf32>
    %17 = vector.broadcast %16 : vector<8x8x1xf32> to vector<8x8x32xf32>
    %18 = arith.mulf %8, %17 : vector<8x8x32xf32>
    %19 = vector.shape_cast %1 : vector<1x32xf32> to vector<1x1x32xf32>
    %20 = vector.broadcast %19 : vector<1x1x32xf32> to vector<8x8x32xf32>
    %21 = arith.mulf %18, %20 : vector<8x8x32xf32>
    %22 = vector.shape_cast %2 : vector<1x32xf32> to vector<1x1x32xf32>
    %23 = vector.broadcast %22 : vector<1x1x32xf32> to vector<8x8x32xf32>
    %24 = arith.addf %21, %23 : vector<8x8x32xf32>
    %25 = vector.extract_strided_slice %24 {offsets = [0, 0, 0], sizes = [8, 1, 32], strides = [1, 1, 1]} : vector<8x8x32xf32> to vector<8x1x32xf32>
    %26 = vector.shape_cast %25 : vector<8x1x32xf32> to vector<8x32xf32>
    %27 = vector.extract_strided_slice %24 {offsets = [0, 1, 0], sizes = [8, 1, 32], strides = [1, 1, 1]} : vector<8x8x32xf32> to vector<8x1x32xf32>
    %28 = vector.shape_cast %27 : vector<8x1x32xf32> to vector<8x32xf32>
    %29 = vector.extract_strided_slice %24 {offsets = [0, 2, 0], sizes = [8, 1, 32], strides = [1, 1, 1]} : vector<8x8x32xf32> to vector<8x1x32xf32>
    %30 = vector.shape_cast %29 : vector<8x1x32xf32> to vector<8x32xf32>
    %31 = vector.extract_strided_slice %24 {offsets = [0, 3, 0], sizes = [8, 1, 32], strides = [1, 1, 1]} : vector<8x8x32xf32> to vector<8x1x32xf32>
    %32 = vector.shape_cast %31 : vector<8x1x32xf32> to vector<8x32xf32>
    %33 = vector.extract_strided_slice %24 {offsets = [0, 4, 0], sizes = [8, 1, 32], strides = [1, 1, 1]} : vector<8x8x32xf32> to vector<8x1x32xf32>
    %34 = vector.shape_cast %33 : vector<8x1x32xf32> to vector<8x32xf32>
    %35 = vector.extract_strided_slice %24 {offsets = [0, 5, 0], sizes = [8, 1, 32], strides = [1, 1, 1]} : vector<8x8x32xf32> to vector<8x1x32xf32>
    %36 = vector.shape_cast %35 : vector<8x1x32xf32> to vector<8x32xf32>
    %37 = vector.extract_strided_slice %24 {offsets = [0, 6, 0], sizes = [8, 1, 32], strides = [1, 1, 1]} : vector<8x8x32xf32> to vector<8x1x32xf32>
    %38 = vector.shape_cast %37 : vector<8x1x32xf32> to vector<8x32xf32>
    %39 = vector.extract_strided_slice %24 {offsets = [0, 7, 0], sizes = [8, 1, 32], strides = [1, 1, 1]} : vector<8x8x32xf32> to vector<8x1x32xf32>
    %40 = vector.shape_cast %39 : vector<8x1x32xf32> to vector<8x32xf32>
    %41 = tpu.concatenate %26, %28, %30, %32, %34, %36, %38, %40 in 1 : vector<8x32xf32>, vector<8x32xf32>, vector<8x32xf32>, vector<8x32xf32>, vector<8x32xf32>, vector<8x32xf32>, vector<8x32xf32>, vector<8x32xf32> -> vector<8x256xf32>
    %42 = arith.truncf %41 : vector<8x256xf32> to vector<8x256xbf16>
    %c0_10 = arith.constant 0 : index
    %c0_11 = arith.constant 0 : index
    %43 = vector.load %arg5[%c0_10, %c0_11] : memref<256x8xbf16, #tpu.memory_space<vmem>>, vector<256x8xbf16>
    %cst_12 = arith.constant dense<0.000000e+00> : vector<8x8xf32>
    %44 = tpu.matmul %42, %43, %cst_12 {dimension_numbers = #tpu.dot_dimension_numbers<[1], [0], [0], [1], [0, 0, 1, 1], [], []>} : vector<8x256xbf16>, vector<256x8xbf16>, vector<8x8xf32> -> vector<8x8xf32>
    %c0_13 = arith.constant 0 : index
    %c0_14 = arith.constant 0 : index
    %45 = vector.load %arg6[%c0_13, %c0_14] : memref<1x8xf32, #tpu.memory_space<vmem>>, vector<1x8xf32>
    %46 = vector.broadcast %45 : vector<1x8xf32> to vector<8x8xf32>
    %47 = arith.addf %44, %46 : vector<8x8xf32>
    %c0_15 = arith.constant 0 : index
    %c1 = arith.constant 1 : index
    %48 = vector.load %arg2[%c0_15, %c1] : memref<8x2xf32, #tpu.memory_space<vmem>>, vector<8x1xf32>
    %49 = vector.broadcast %48 : vector<8x1xf32> to vector<8x8xf32>
    %50 = arith.mulf %47, %49 : vector<8x8xf32>
    %c0_16 = arith.constant 0 : index
    %c0_17 = arith.constant 0 : index
    %51 = vector.load %arg2[%c0_16, %c0_17] : memref<8x2xf32, #tpu.memory_space<vmem>>, vector<8x1xf32>
    %52 = vector.broadcast %51 : vector<8x1xf32> to vector<8x8xf32>
    %53 = arith.addf %50, %52 : vector<8x8xf32>
    %54 = vector.shape_cast %53 : vector<8x8xf32> to vector<2x4x8xf32>
    %55 = tpu.transpose %54, [0, 2, 1] : vector<2x4x8xf32> -> vector<2x8x4xf32>
    %c0_18 = arith.constant 0 : index
    %c0_19 = arith.constant 0 : index
    %c0_20 = arith.constant 0 : index
    %56 = vector.load %arg7[%c0_18, %c0_19, %c0_20] : memref<2x8x4xf32, #tpu.memory_space<vmem>>, vector<2x8x4xf32>
    tpu.vector_store %arg7[%c0_18, %c0_19, %c0_20], %55 {strides = array<i32>} : memref<2x8x4xf32, #tpu.memory_space<vmem>>, vector<2x8x4xf32>,
    return
  }
  func.func @transform_0(%arg0: i32) -> (i32, i32, i32) {
    %c0_i32 = arith.constant 0 : i32
    %c0_i32_0 = arith.constant 0 : i32
    %c0_i32_1 = arith.constant 0 : i32
    %c0_i32_2 = arith.constant 0 : i32
    return %c0_i32, %c0_i32_0, %c0_i32_1 : i32, i32, i32
  }
  func.func @transform_1(%arg0: i32) -> (i32, i32) {
    %c0_i32 = arith.constant 0 : i32
    %c0_i32_0 = arith.constant 0 : i32
    %c0_i32_1 = arith.constant 0 : i32
    return %c0_i32, %c0_i32_0 : i32, i32
  }
  func.func @transform_2(%arg0: i32) -> (i32, i32) {
    %c0_i32 = arith.constant 0 : i32
    %c0_i32_0 = arith.constant 0 : i32
    %c0_i32_1 = arith.constant 0 : i32
    return %c0_i32, %c0_i32_0 : i32, i32
  }
  func.func @transform_3(%arg0: i32) -> (i32, i32) {
    %c0_i32 = arith.constant 0 : i32
    %c0_i32_0 = arith.constant 0 : i32
    %c0_i32_1 = arith.constant 0 : i32
    return %c0_i32, %c0_i32_0 : i32, i32
  }
  func.func @transform_4(%arg0: i32) -> (i32, i32) {
    %c0_i32 = arith.constant 0 : i32
    %c0_i32_0 = arith.constant 0 : i32
    %c0_i32_1 = arith.constant 0 : i32
    return %c0_i32, %c0_i32_0 : i32, i32
  }
  func.func @transform_5(%arg0: i32) -> (i32, i32) {
    %c0_i32 = arith.constant 0 : i32
    %c0_i32_0 = arith.constant 0 : i32
    %c0_i32_1 = arith.constant 0 : i32
    return %c0_i32, %c0_i32_0 : i32, i32
  }
  func.func @transform_6(%arg0: i32) -> (i32, i32, i32) {
    %c0_i32 = arith.constant 0 : i32
    %c0_i32_0 = arith.constant 0 : i32
    %c0_i32_1 = arith.constant 0 : i32
    %c0_i32_2 = arith.constant 0 : i32
    return %c0_i32, %c0_i32_0, %c0_i32_1 : i32, i32, i32
  }
}

module attributes {stable_mosaic.version = 11 : i64} {
  func.func @_block_stack_kernel(%arg0: i32, %arg1: i32, %arg2: memref<8x8x32xf32, #tpu.memory_space<vmem>>, %arg3: memref<1x1x32xf32, #tpu.memory_space<vmem>>, %arg4: memref<1x1x32xf32, #tpu.memory_space<vmem>>, %arg5: memref<1x32x96xbf16, #tpu.memory_space<vmem>>, %arg6: memref<1x1x96xf32, #tpu.memory_space<vmem>>, %arg7: memref<1x32x32xbf16, #tpu.memory_space<vmem>>, %arg8: memref<1x1x32xf32, #tpu.memory_space<vmem>>, %arg9: memref<1x1x32xf32, #tpu.memory_space<vmem>>, %arg10: memref<1x1x32xf32, #tpu.memory_space<vmem>>, %arg11: memref<1x32x128xbf16, #tpu.memory_space<vmem>>, %arg12: memref<1x1x128xf32, #tpu.memory_space<vmem>>, %arg13: memref<1x128x32xbf16, #tpu.memory_space<vmem>>, %arg14: memref<1x1x32xf32, #tpu.memory_space<vmem>>, %arg15: memref<8x8x32xf32, #tpu.memory_space<vmem>>) attributes {dimension_semantics = [#tpu.dimension_semantics<parallel>, #tpu.dimension_semantics<arbitrary>], iteration_bounds = array<i64: 1, 2>, scalar_prefetch = 0 : i64, scratch_operands = 0 : i64, tpu.core_type = #tpu.core_type<tc>, window_params = [{transform_indices = @transform_0, window_bounds = array<i64: 8, 8, 32>}, {transform_indices = @transform_1, window_bounds = array<i64: 1, 1, 32>}, {transform_indices = @transform_2, window_bounds = array<i64: 1, 1, 32>}, {transform_indices = @transform_3, window_bounds = array<i64: 1, 32, 96>}, {transform_indices = @transform_4, window_bounds = array<i64: 1, 1, 96>}, {transform_indices = @transform_5, window_bounds = array<i64: 1, 32, 32>}, {transform_indices = @transform_6, window_bounds = array<i64: 1, 1, 32>}, {transform_indices = @transform_7, window_bounds = array<i64: 1, 1, 32>}, {transform_indices = @transform_8, window_bounds = array<i64: 1, 1, 32>}, {transform_indices = @transform_9, window_bounds = array<i64: 1, 32, 128>}, {transform_indices = @transform_10, window_bounds = array<i64: 1, 1, 128>}, {transform_indices = @transform_11, window_bounds = array<i64: 1, 128, 32>}, {transform_indices = @transform_12, window_bounds = array<i64: 1, 1, 32>}, {transform_indices = @transform_13, window_bounds = array<i64: 8, 8, 32>}]} {
    %c0_i32 = arith.constant 0 : i32
    %0 = arith.cmpi eq, %arg1, %c0_i32 : i32
    %1 = arith.extui %0 : i1 to i32
    %c0_i32_0 = arith.constant 0 : i32
    %2 = arith.cmpi ne, %1, %c0_i32_0 : i32
    scf.if %2 {
      %c0_66 = arith.constant 0 : index
      %c0_67 = arith.constant 0 : index
      %c0_68 = arith.constant 0 : index
      %151 = vector.load %arg2[%c0_66, %c0_67, %c0_68] : memref<8x8x32xf32, #tpu.memory_space<vmem>>, vector<8x8x32xf32>
      %c0_69 = arith.constant 0 : index
      %c0_70 = arith.constant 0 : index
      %c0_71 = arith.constant 0 : index
      %152 = vector.load %arg15[%c0_69, %c0_70, %c0_71] : memref<8x8x32xf32, #tpu.memory_space<vmem>>, vector<8x8x32xf32>
      tpu.vector_store %arg15[%c0_69, %c0_70, %c0_71], %151 {strides = array<i32>} : memref<8x8x32xf32, #tpu.memory_space<vmem>>, vector<8x8x32xf32>,
    } else {
    }
    %c0 = arith.constant 0 : index
    %c0_1 = arith.constant 0 : index
    %c0_2 = arith.constant 0 : index
    %3 = vector.load %arg15[%c0, %c0_1, %c0_2] : memref<8x8x32xf32, #tpu.memory_space<vmem>>, vector<8x8x32xf32>
    %4 = vector.shape_cast %3 : vector<8x8x32xf32> to vector<64x32xf32>
    %c0_3 = arith.constant 0 : index
    %c0_4 = arith.constant 0 : index
    %c0_5 = arith.constant 0 : index
    %5 = vector.load %arg3[%c0_3, %c0_4, %c0_5] : memref<1x1x32xf32, #tpu.memory_space<vmem>>, vector<1x1x32xf32>
    %6 = vector.shape_cast %5 : vector<1x1x32xf32> to vector<1x32xf32>
    %c0_6 = arith.constant 0 : index
    %c0_7 = arith.constant 0 : index
    %c0_8 = arith.constant 0 : index
    %7 = vector.load %arg4[%c0_6, %c0_7, %c0_8] : memref<1x1x32xf32, #tpu.memory_space<vmem>>, vector<1x1x32xf32>
    %8 = vector.shape_cast %7 : vector<1x1x32xf32> to vector<1x32xf32>
    %cst = arith.constant dense<0.000000e+00> : vector<64xf32>
    %9 = vector.multi_reduction <add>, %4, %cst [1] : vector<64x32xf32> to vector<64xf32>
    %10 = vector.shape_cast %9 : vector<64xf32> to vector<64x1xf32>
    %cst_9 = arith.constant 3.200000e+01 : f32
    %11 = vector.broadcast %cst_9 : f32 to vector<64x1xf32>
    %12 = arith.divf %10, %11 : vector<64x1xf32>
    %13 = vector.broadcast %12 : vector<64x1xf32> to vector<64x32xf32>
    %14 = arith.subf %4, %13 : vector<64x32xf32>
    %15 = arith.mulf %14, %14 : vector<64x32xf32>
    %cst_10 = arith.constant dense<0.000000e+00> : vector<64xf32>
    %16 = vector.multi_reduction <add>, %15, %cst_10 [1] : vector<64x32xf32> to vector<64xf32>
    %17 = vector.shape_cast %16 : vector<64xf32> to vector<64x1xf32>
    %cst_11 = arith.constant 3.200000e+01 : f32
    %18 = vector.broadcast %cst_11 : f32 to vector<64x1xf32>
    %19 = arith.divf %17, %18 : vector<64x1xf32>
    %cst_12 = arith.constant 9.99999974E-6 : f32
    %20 = vector.broadcast %cst_12 : f32 to vector<64x1xf32>
    %21 = arith.addf %19, %20 : vector<64x1xf32>
    %22 = math.rsqrt %21 : vector<64x1xf32>
    %23 = vector.broadcast %22 : vector<64x1xf32> to vector<64x32xf32>
    %24 = arith.mulf %14, %23 : vector<64x32xf32>
    %25 = vector.broadcast %6 : vector<1x32xf32> to vector<64x32xf32>
    %26 = arith.mulf %24, %25 : vector<64x32xf32>
    %27 = vector.broadcast %8 : vector<1x32xf32> to vector<64x32xf32>
    %28 = arith.addf %26, %27 : vector<64x32xf32>
    %29 = arith.truncf %28 : vector<64x32xf32> to vector<64x32xbf16>
    %c0_13 = arith.constant 0 : index
    %c0_14 = arith.constant 0 : index
    %c0_15 = arith.constant 0 : index
    %30 = vector.load %arg5[%c0_13, %c0_14, %c0_15] : memref<1x32x96xbf16, #tpu.memory_space<vmem>>, vector<1x32x96xbf16>
    %31 = vector.shape_cast %30 : vector<1x32x96xbf16> to vector<32x96xbf16>
    %cst_16 = arith.constant dense<0.000000e+00> : vector<64x96xf32>
    %32 = tpu.matmul %29, %31, %cst_16 {dimension_numbers = #tpu.dot_dimension_numbers<[1], [0], [0], [1], [0, 0, 1, 1], [], []>} : vector<64x32xbf16>, vector<32x96xbf16>, vector<64x96xf32> -> vector<64x96xf32>
    %c0_17 = arith.constant 0 : index
    %c0_18 = arith.constant 0 : index
    %c0_19 = arith.constant 0 : index
    %33 = vector.load %arg6[%c0_17, %c0_18, %c0_19] : memref<1x1x96xf32, #tpu.memory_space<vmem>>, vector<1x1x96xf32>
    %34 = vector.shape_cast %33 : vector<1x1x96xf32> to vector<1x96xf32>
    %35 = vector.broadcast %34 : vector<1x96xf32> to vector<64x96xf32>
    %36 = arith.addf %32, %35 : vector<64x96xf32>
    %37 = vector.shape_cast %36 : vector<64x96xf32> to vector<8x8x96xf32>
    %38 = vector.extract_strided_slice %37 {offsets = [0, 0, 0], sizes = [8, 8, 8], strides = [1, 1, 1]} : vector<8x8x96xf32> to vector<8x8x8xf32>
    %39 = vector.extract_strided_slice %37 {offsets = [0, 0, 8], sizes = [8, 8, 8], strides = [1, 1, 1]} : vector<8x8x96xf32> to vector<8x8x8xf32>
    %40 = vector.extract_strided_slice %37 {offsets = [0, 0, 16], sizes = [8, 8, 8], strides = [1, 1, 1]} : vector<8x8x96xf32> to vector<8x8x8xf32>
    %41 = vector.extract_strided_slice %37 {offsets = [0, 0, 24], sizes = [8, 8, 8], strides = [1, 1, 1]} : vector<8x8x96xf32> to vector<8x8x8xf32>
    %42 = tpu.concatenate %38, %39, %40, %41 in 0 : vector<8x8x8xf32>, vector<8x8x8xf32>, vector<8x8x8xf32>, vector<8x8x8xf32> -> vector<32x8x8xf32>
    %43 = arith.truncf %42 : vector<32x8x8xf32> to vector<32x8x8xbf16>
    %44 = vector.extract_strided_slice %37 {offsets = [0, 0, 32], sizes = [8, 8, 8], strides = [1, 1, 1]} : vector<8x8x96xf32> to vector<8x8x8xf32>
    %45 = vector.extract_strided_slice %37 {offsets = [0, 0, 40], sizes = [8, 8, 8], strides = [1, 1, 1]} : vector<8x8x96xf32> to vector<8x8x8xf32>
    %46 = vector.extract_strided_slice %37 {offsets = [0, 0, 48], sizes = [8, 8, 8], strides = [1, 1, 1]} : vector<8x8x96xf32> to vector<8x8x8xf32>
    %47 = vector.extract_strided_slice %37 {offsets = [0, 0, 56], sizes = [8, 8, 8], strides = [1, 1, 1]} : vector<8x8x96xf32> to vector<8x8x8xf32>
    %48 = tpu.concatenate %44, %45, %46, %47 in 0 : vector<8x8x8xf32>, vector<8x8x8xf32>, vector<8x8x8xf32>, vector<8x8x8xf32> -> vector<32x8x8xf32>
    %49 = arith.truncf %48 : vector<32x8x8xf32> to vector<32x8x8xbf16>
    %50 = vector.extract_strided_slice %37 {offsets = [0, 0, 64], sizes = [8, 8, 8], strides = [1, 1, 1]} : vector<8x8x96xf32> to vector<8x8x8xf32>
    %51 = vector.extract_strided_slice %37 {offsets = [0, 0, 72], sizes = [8, 8, 8], strides = [1, 1, 1]} : vector<8x8x96xf32> to vector<8x8x8xf32>
    %52 = vector.extract_strided_slice %37 {offsets = [0, 0, 80], sizes = [8, 8, 8], strides = [1, 1, 1]} : vector<8x8x96xf32> to vector<8x8x8xf32>
    %53 = vector.extract_strided_slice %37 {offsets = [0, 0, 88], sizes = [8, 8, 8], strides = [1, 1, 1]} : vector<8x8x96xf32> to vector<8x8x8xf32>
    %54 = tpu.concatenate %50, %51, %52, %53 in 0 : vector<8x8x8xf32>, vector<8x8x8xf32>, vector<8x8x8xf32>, vector<8x8x8xf32> -> vector<32x8x8xf32>
    %55 = arith.truncf %54 : vector<32x8x8xf32> to vector<32x8x8xbf16>
    %56 = tpu.iota {dimensions = array<i32: 0>} : vector<8x8xi32>
    %57 = tpu.iota {dimensions = array<i32: 1>} : vector<8x8xi32>
    %58 = arith.cmpi sle, %57, %56 : vector<8x8xi32>
    %cst_20 = arith.constant 0.000000e+00 : f32
    %cst_21 = arith.constant -1.000000e+30 : f32
    %59 = vector.broadcast %cst_20 : f32 to vector<8x8xf32>
    %60 = vector.broadcast %cst_21 : f32 to vector<8x8xf32>
    %61 = arith.select %58, %59, %60 : vector<8x8xi1>, vector<8x8xf32>
    "tpu.trace_start"() <{level = 10 : i32, message = "bnd,bmd->bnm"}> : () -> ()
    %cst_22 = arith.constant dense<0.000000e+00> : vector<32x8x8xf32>
    %62 = tpu.matmul %43, %49, %cst_22 {dimension_numbers = #tpu.dot_dimension_numbers<[2], [2], [1], [1], [0, 0, 0, 1, 1, 1], [0], [0]>} : vector<32x8x8xbf16>, vector<32x8x8xbf16>, vector<32x8x8xf32> -> vector<32x8x8xf32>
    "tpu.trace_stop"() : () -> ()
    %cst_23 = arith.constant 0.353553385 : f32
    %63 = vector.broadcast %cst_23 : f32 to vector<32x8x8xf32>
    %64 = arith.mulf %62, %63 : vector<32x8x8xf32>
    %65 = vector.shape_cast %61 : vector<8x8xf32> to vector<1x8x8xf32>
    %66 = vector.broadcast %65 : vector<1x8x8xf32> to vector<32x8x8xf32>
    %67 = arith.addf %64, %66 : vector<32x8x8xf32>
    %cst_24 = arith.constant dense<0xFF800000> : vector<32x8xf32>
    %68 = vector.multi_reduction <maximumf>, %67, %cst_24 [2] : vector<32x8x8xf32> to vector<32x8xf32>
    %69 = vector.shape_cast %68 : vector<32x8xf32> to vector<32x8x1xf32>
    %70 = vector.broadcast %69 : vector<32x8x1xf32> to vector<32x8x8xf32>
    %71 = arith.subf %67, %70 : vector<32x8x8xf32>
    %72 = math.exp %71 : vector<32x8x8xf32>
    %cst_25 = arith.constant dense<0.000000e+00> : vector<32x8xf32>
    %73 = vector.multi_reduction <add>, %72, %cst_25 [2] : vector<32x8x8xf32> to vector<32x8xf32>
    %74 = vector.shape_cast %73 : vector<32x8xf32> to vector<32x8x1xf32>
    %75 = tpu.reciprocal %74 {approx = true} : vector<32x8x1xf32> -> vector<32x8x1xf32>
    %76 = vector.broadcast %75 : vector<32x8x1xf32> to vector<32x8x8xf32>
    %77 = arith.mulf %72, %76 : vector<32x8x8xf32>
    %78 = arith.truncf %77 : vector<32x8x8xf32> to vector<32x8x8xbf16>
    "tpu.trace_start"() <{level = 10 : i32, message = "bnm,bmd->bnd"}> : () -> ()
    %cst_26 = arith.constant dense<0.000000e+00> : vector<32x8x8xf32>
    %79 = tpu.matmul %78, %55, %cst_26 {dimension_numbers = #tpu.dot_dimension_numbers<[2], [1], [1], [2], [0, 0, 0, 1, 1, 2], [0], [0]>} : vector<32x8x8xbf16>, vector<32x8x8xbf16>, vector<32x8x8xf32> -> vector<32x8x8xf32>
    "tpu.trace_stop"() : () -> ()
    %80 = vector.extract_strided_slice %79 {offsets = [0, 0, 0], sizes = [8, 8, 8], strides = [1, 1, 1]} : vector<32x8x8xf32> to vector<8x8x8xf32>
    %81 = vector.extract_strided_slice %79 {offsets = [8, 0, 0], sizes = [8, 8, 8], strides = [1, 1, 1]} : vector<32x8x8xf32> to vector<8x8x8xf32>
    %82 = vector.extract_strided_slice %79 {offsets = [16, 0, 0], sizes = [8, 8, 8], strides = [1, 1, 1]} : vector<32x8x8xf32> to vector<8x8x8xf32>
    %83 = vector.extract_strided_slice %79 {offsets = [24, 0, 0], sizes = [8, 8, 8], strides = [1, 1, 1]} : vector<32x8x8xf32> to vector<8x8x8xf32>
    %84 = tpu.concatenate %80, %81, %82, %83 in 2 : vector<8x8x8xf32>, vector<8x8x8xf32>, vector<8x8x8xf32>, vector<8x8x8xf32> -> vector<8x8x32xf32>
    %85 = vector.shape_cast %84 : vector<8x8x32xf32> to vector<64x32xf32>
    %86 = arith.truncf %85 : vector<64x32xf32> to vector<64x32xbf16>
    %c0_27 = arith.constant 0 : index
    %c0_28 = arith.constant 0 : index
    %c0_29 = arith.constant 0 : index
    %87 = vector.load %arg7[%c0_27, %c0_28, %c0_29] : memref<1x32x32xbf16, #tpu.memory_space<vmem>>, vector<1x32x32xbf16>
    %88 = vector.shape_cast %87 : vector<1x32x32xbf16> to vector<32x32xbf16>
    %cst_30 = arith.constant dense<0.000000e+00> : vector<64x32xf32>
    %89 = tpu.matmul %86, %88, %cst_30 {dimension_numbers = #tpu.dot_dimension_numbers<[1], [0], [0], [1], [0, 0, 1, 1], [], []>} : vector<64x32xbf16>, vector<32x32xbf16>, vector<64x32xf32> -> vector<64x32xf32>
    %c0_31 = arith.constant 0 : index
    %c0_32 = arith.constant 0 : index
    %c0_33 = arith.constant 0 : index
    %90 = vector.load %arg8[%c0_31, %c0_32, %c0_33] : memref<1x1x32xf32, #tpu.memory_space<vmem>>, vector<1x1x32xf32>
    %91 = vector.shape_cast %90 : vector<1x1x32xf32> to vector<1x32xf32>
    %92 = vector.broadcast %91 : vector<1x32xf32> to vector<64x32xf32>
    %93 = arith.addf %89, %92 : vector<64x32xf32>
    %94 = arith.addf %4, %93 : vector<64x32xf32>
    %c0_34 = arith.constant 0 : index
    %c0_35 = arith.constant 0 : index
    %c0_36 = arith.constant 0 : index
    %95 = vector.load %arg9[%c0_34, %c0_35, %c0_36] : memref<1x1x32xf32, #tpu.memory_space<vmem>>, vector<1x1x32xf32>
    %96 = vector.shape_cast %95 : vector<1x1x32xf32> to vector<1x32xf32>
    %c0_37 = arith.constant 0 : index
    %c0_38 = arith.constant 0 : index
    %c0_39 = arith.constant 0 : index
    %97 = vector.load %arg10[%c0_37, %c0_38, %c0_39] : memref<1x1x32xf32, #tpu.memory_space<vmem>>, vector<1x1x32xf32>
    %98 = vector.shape_cast %97 : vector<1x1x32xf32> to vector<1x32xf32>
    %cst_40 = arith.constant dense<0.000000e+00> : vector<64xf32>
    %99 = vector.multi_reduction <add>, %94, %cst_40 [1] : vector<64x32xf32> to vector<64xf32>
    %100 = vector.shape_cast %99 : vector<64xf32> to vector<64x1xf32>
    %cst_41 = arith.constant 3.200000e+01 : f32
    %101 = vector.broadcast %cst_41 : f32 to vector<64x1xf32>
    %102 = arith.divf %100, %101 : vector<64x1xf32>
    %103 = vector.broadcast %102 : vector<64x1xf32> to vector<64x32xf32>
    %104 = arith.subf %94, %103 : vector<64x32xf32>
    %105 = arith.mulf %104, %104 : vector<64x32xf32>
    %cst_42 = arith.constant dense<0.000000e+00> : vector<64xf32>
    %106 = vector.multi_reduction <add>, %105, %cst_42 [1] : vector<64x32xf32> to vector<64xf32>
    %107 = vector.shape_cast %106 : vector<64xf32> to vector<64x1xf32>
    %cst_43 = arith.constant 3.200000e+01 : f32
    %108 = vector.broadcast %cst_43 : f32 to vector<64x1xf32>
    %109 = arith.divf %107, %108 : vector<64x1xf32>
    %cst_44 = arith.constant 9.99999974E-6 : f32
    %110 = vector.broadcast %cst_44 : f32 to vector<64x1xf32>
    %111 = arith.addf %109, %110 : vector<64x1xf32>
    %112 = math.rsqrt %111 : vector<64x1xf32>
    %113 = vector.broadcast %112 : vector<64x1xf32> to vector<64x32xf32>
    %114 = arith.mulf %104, %113 : vector<64x32xf32>
    %115 = vector.broadcast %96 : vector<1x32xf32> to vector<64x32xf32>
    %116 = arith.mulf %114, %115 : vector<64x32xf32>
    %117 = vector.broadcast %98 : vector<1x32xf32> to vector<64x32xf32>
    %118 = arith.addf %116, %117 : vector<64x32xf32>
    %119 = arith.truncf %118 : vector<64x32xf32> to vector<64x32xbf16>
    %c0_45 = arith.constant 0 : index
    %c0_46 = arith.constant 0 : index
    %c0_47 = arith.constant 0 : index
    %120 = vector.load %arg11[%c0_45, %c0_46, %c0_47] : memref<1x32x128xbf16, #tpu.memory_space<vmem>>, vector<1x32x128xbf16>
    %121 = vector.shape_cast %120 : vector<1x32x128xbf16> to vector<32x128xbf16>
    %cst_48 = arith.constant dense<0.000000e+00> : vector<64x128xf32>
    %122 = tpu.matmul %119, %121, %cst_48 {dimension_numbers = #tpu.dot_dimension_numbers<[1], [0], [0], [1], [0, 0, 1, 1], [], []>} : vector<64x32xbf16>, vector<32x128xbf16>, vector<64x128xf32> -> vector<64x128xf32>
    %c0_49 = arith.constant 0 : index
    %c0_50 = arith.constant 0 : index
    %c0_51 = arith.constant 0 : index
    %123 = vector.load %arg12[%c0_49, %c0_50, %c0_51] : memref<1x1x128xf32, #tpu.memory_space<vmem>>, vector<1x1x128xf32>
    %124 = vector.shape_cast %123 : vector<1x1x128xf32> to vector<1x128xf32>
    %125 = vector.broadcast %124 : vector<1x128xf32> to vector<64x128xf32>
    %126 = arith.addf %122, %125 : vector<64x128xf32>
    %cst_52 = arith.constant 5.000000e-01 : f32
    %127 = vector.broadcast %cst_52 : f32 to vector<64x128xf32>
    %128 = arith.mulf %127, %126 : vector<64x128xf32>
    %cst_53 = arith.constant 4.471500e-02 : f32
    %129 = vector.broadcast %cst_53 : f32 to vector<64x128xf32>
    %130 = arith.mulf %129, %126 : vector<64x128xf32>
    %131 = arith.mulf %130, %126 : vector<64x128xf32>
    %132 = arith.mulf %131, %126 : vector<64x128xf32>
    %133 = arith.addf %126, %132 : vector<64x128xf32>
    %cst_54 = arith.constant 0.797884583 : f32
    %134 = vector.broadcast %cst_54 : f32 to vector<64x128xf32>
    %135 = arith.mulf %134, %133 : vector<64x128xf32>
    %136 = math.tanh %135 : vector<64x128xf32>
    %cst_55 = arith.constant 1.000000e+00 : f32
    %137 = vector.broadcast %cst_55 : f32 to vector<64x128xf32>
    %138 = arith.addf %137, %136 : vector<64x128xf32>
    %139 = arith.mulf %128, %138 : vector<64x128xf32>
    %140 = arith.truncf %139 : vector<64x128xf32> to vector<64x128xbf16>
    %c0_56 = arith.constant 0 : index
    %c0_57 = arith.constant 0 : index
    %c0_58 = arith.constant 0 : index
    %141 = vector.load %arg13[%c0_56, %c0_57, %c0_58] : memref<1x128x32xbf16, #tpu.memory_space<vmem>>, vector<1x128x32xbf16>
    %142 = vector.shape_cast %141 : vector<1x128x32xbf16> to vector<128x32xbf16>
    %cst_59 = arith.constant dense<0.000000e+00> : vector<64x32xf32>
    %143 = tpu.matmul %140, %142, %cst_59 {dimension_numbers = #tpu.dot_dimension_numbers<[1], [0], [0], [1], [0, 0, 1, 1], [], []>} : vector<64x128xbf16>, vector<128x32xbf16>, vector<64x32xf32> -> vector<64x32xf32>
    %c0_60 = arith.constant 0 : index
    %c0_61 = arith.constant 0 : index
    %c0_62 = arith.constant 0 : index
    %144 = vector.load %arg14[%c0_60, %c0_61, %c0_62] : memref<1x1x32xf32, #tpu.memory_space<vmem>>, vector<1x1x32xf32>
    %145 = vector.shape_cast %144 : vector<1x1x32xf32> to vector<1x32xf32>
    %146 = vector.broadcast %145 : vector<1x32xf32> to vector<64x32xf32>
    %147 = arith.addf %143, %146 : vector<64x32xf32>
    %148 = arith.addf %94, %147 : vector<64x32xf32>
    %149 = vector.shape_cast %148 : vector<64x32xf32> to vector<8x8x32xf32>
    %c0_63 = arith.constant 0 : index
    %c0_64 = arith.constant 0 : index
    %c0_65 = arith.constant 0 : index
    %150 = vector.load %arg15[%c0_63, %c0_64, %c0_65] : memref<8x8x32xf32, #tpu.memory_space<vmem>>, vector<8x8x32xf32>
    tpu.vector_store %arg15[%c0_63, %c0_64, %c0_65], %149 {strides = array<i32>} : memref<8x8x32xf32, #tpu.memory_space<vmem>>, vector<8x8x32xf32>,
    return
  }
  func.func @transform_0(%arg0: i32, %arg1: i32) -> (i32, i32, i32) {
    %c0_i32 = arith.constant 0 : i32
    %c0_i32_0 = arith.constant 0 : i32
    %c0_i32_1 = arith.constant 0 : i32
    return %arg0, %c0_i32, %c0_i32_0 : i32, i32, i32
  }
  func.func @transform_1(%arg0: i32, %arg1: i32) -> (i32, i32, i32) {
    %c0_i32 = arith.constant 0 : i32
    %c0_i32_0 = arith.constant 0 : i32
    %c0_i32_1 = arith.constant 0 : i32
    return %arg1, %c0_i32, %c0_i32_0 : i32, i32, i32
  }
  func.func @transform_2(%arg0: i32, %arg1: i32) -> (i32, i32, i32) {
    %c0_i32 = arith.constant 0 : i32
    %c0_i32_0 = arith.constant 0 : i32
    %c0_i32_1 = arith.constant 0 : i32
    return %arg1, %c0_i32, %c0_i32_0 : i32, i32, i32
  }
  func.func @transform_3(%arg0: i32, %arg1: i32) -> (i32, i32, i32) {
    %c0_i32 = arith.constant 0 : i32
    %c0_i32_0 = arith.constant 0 : i32
    %c0_i32_1 = arith.constant 0 : i32
    return %arg1, %c0_i32, %c0_i32_0 : i32, i32, i32
  }
  func.func @transform_4(%arg0: i32, %arg1: i32) -> (i32, i32, i32) {
    %c0_i32 = arith.constant 0 : i32
    %c0_i32_0 = arith.constant 0 : i32
    %c0_i32_1 = arith.constant 0 : i32
    return %arg1, %c0_i32, %c0_i32_0 : i32, i32, i32
  }
  func.func @transform_5(%arg0: i32, %arg1: i32) -> (i32, i32, i32) {
    %c0_i32 = arith.constant 0 : i32
    %c0_i32_0 = arith.constant 0 : i32
    %c0_i32_1 = arith.constant 0 : i32
    return %arg1, %c0_i32, %c0_i32_0 : i32, i32, i32
  }
  func.func @transform_6(%arg0: i32, %arg1: i32) -> (i32, i32, i32) {
    %c0_i32 = arith.constant 0 : i32
    %c0_i32_0 = arith.constant 0 : i32
    %c0_i32_1 = arith.constant 0 : i32
    return %arg1, %c0_i32, %c0_i32_0 : i32, i32, i32
  }
  func.func @transform_7(%arg0: i32, %arg1: i32) -> (i32, i32, i32) {
    %c0_i32 = arith.constant 0 : i32
    %c0_i32_0 = arith.constant 0 : i32
    %c0_i32_1 = arith.constant 0 : i32
    return %arg1, %c0_i32, %c0_i32_0 : i32, i32, i32
  }
  func.func @transform_8(%arg0: i32, %arg1: i32) -> (i32, i32, i32) {
    %c0_i32 = arith.constant 0 : i32
    %c0_i32_0 = arith.constant 0 : i32
    %c0_i32_1 = arith.constant 0 : i32
    return %arg1, %c0_i32, %c0_i32_0 : i32, i32, i32
  }
  func.func @transform_9(%arg0: i32, %arg1: i32) -> (i32, i32, i32) {
    %c0_i32 = arith.constant 0 : i32
    %c0_i32_0 = arith.constant 0 : i32
    %c0_i32_1 = arith.constant 0 : i32
    return %arg1, %c0_i32, %c0_i32_0 : i32, i32, i32
  }
  func.func @transform_10(%arg0: i32, %arg1: i32) -> (i32, i32, i32) {
    %c0_i32 = arith.constant 0 : i32
    %c0_i32_0 = arith.constant 0 : i32
    %c0_i32_1 = arith.constant 0 : i32
    return %arg1, %c0_i32, %c0_i32_0 : i32, i32, i32
  }
  func.func @transform_11(%arg0: i32, %arg1: i32) -> (i32, i32, i32) {
    %c0_i32 = arith.constant 0 : i32
    %c0_i32_0 = arith.constant 0 : i32
    %c0_i32_1 = arith.constant 0 : i32
    return %arg1, %c0_i32, %c0_i32_0 : i32, i32, i32
  }
  func.func @transform_12(%arg0: i32, %arg1: i32) -> (i32, i32, i32) {
    %c0_i32 = arith.constant 0 : i32
    %c0_i32_0 = arith.constant 0 : i32
    %c0_i32_1 = arith.constant 0 : i32
    return %arg1, %c0_i32, %c0_i32_0 : i32, i32, i32
  }
  func.func @transform_13(%arg0: i32, %arg1: i32) -> (i32, i32, i32) {
    %c0_i32 = arith.constant 0 : i32
    %c0_i32_0 = arith.constant 0 : i32
    %c0_i32_1 = arith.constant 0 : i32
    return %arg0, %c0_i32, %c0_i32_0 : i32, i32, i32
  }
}

</mosaic_0001>

<bundles_post_ra>
// kernel: gpt4ts_forward.3
= control target key start
LH: loop header
LB: loop body
LE: loop exit
PB: predicated region body
PF: predicated region fallthrough
CT: control target
= control target key end

     0   :  { %vm93_vm0 = vcmask 261120   ;;  %v329_v12 = vmov 839922192   ;;  %v103_v14 = vlaneseq  ;;  %v330_v15 = vmov 1985246804   ;;  %s333_s15 = smov 32   ;;  %s425_s0 = inlined_call_operand.vmem [shape: f32[2,32,4], index: 0, kind: input, shape index: {}]   ;;  %s426_s4 = inlined_call_operand.vmem [shape: f32[8,2], index: 4, kind: output, shape index: {1}]   ;;  %s427_s1 = inlined_call_operand.vmem [shape: bf16[36,256], index: 1, kind: input, shape index: {}]   ;;  %s428_s2 = inlined_call_operand.vmem [shape: f32[1,256], index: 2, kind: input, shape index: {}]   ;;  %s429_s3 = inlined_call_operand.vmem [shape: f32[8,256], index: 3, kind: output, shape index: {0}]  }
   0x1   :  { %v21_v0 = vld [vmem:[%s425_s0 + $0x20] sm:$0xff]  ;;  %v22_v2 = vld [vmem:[%s425_s0 + $0x28] sm:$0xff]  ;;  %v23_v4 = vld [vmem:[%s425_s0 + $0x30] sm:$0xff]  ;;  %v101_v13 = vunpack.c.l.s4 %v329_v12  ;;  %v108_v16 = vunpack.c.l.s4 %v330_v15  ;;  %v331_v32 = vmov 31   ;;  %vm157_vm2 = vcmask 7168  }
   0x2   :  { %v17_v1 = vld [vmem:[%s425_s0] sm:$0xff]  ;;  %57 = vxpose.xlu1.b32.start [1/4] (short) (narrow) %v21_v0, 8  ;;  %v18_v3 = vld [vmem:[%s425_s0 + $0x8] sm:$0xff]  ;;  %v19_v5 = vld [vmem:[%s425_s0 + $0x10] sm:$0xff]  ;;  %v384_v18 = vshrl.u32 %v103_v14, 7  ;;  %vm159_vm4 = vcmask 15360  }
   0x3   :  { %25 = vxpose.xlu0.b32.start [1/4] (short) (narrow) %v17_v1, 8  ;;  %v24_v6 = vld [vmem:[%s425_s0 + $0x38] sm:$0xff]  ;;  %v102_v17 = vunpack.c.0.s8 %v101_v13  ;;  %v109_v19 = vunpack.c.0.s8 %v108_v16  ;;  %v315_v49 = vld [vmem:[%s427_s1 + $0x4] ss:$8 sps:$4 sm:$0xff]   ;;  %v317_v50 = vld [vmem:[%s427_s1] ss:$8 sps:$4 sm:$0xff]  }
   0x4   :  { %v20_v7 = vld [vmem:[%s425_s0 + $0x18] sm:$0xff]  ;;  %248 = vmatprep.subr.bf16.mxu0 %v315_v49  ;;  %v199_v52 = vld [vmem:[%s427_s1 + $0x20] sm:$0x33]  ;;  %vm241_vm5 = vcmask 1041408   ;;  %v332_v57 = vmov 0   ;;  %vm237_vm6 = vcmask 293888  }
   0x5   :  { %v387_v20 = vsub.s32 %v102_v17, %v384_v18  ;;  %v112_v21 = vsub.s32 %v109_v19, %v384_v18  ;;  %v318_v51 = vld [vmem:[%s427_s1 + $0x14] ss:$8 sps:$4 sm:$0xff]   ;;  %249 = vmatpush1.bf16.msra.mxu0 %v317_v50  ;;  %v320_v53 = vld [vmem:[%s427_s1 + $0x10] ss:$8 sps:$4 sm:$0xff]   ;;  %v304_v54 = vcombine.high %v199_v52, %v199_v52  ;;  %v303_v55 = vcombine.low %v199_v52, %v199_v52 }
   0x6   :  { %58 = vxpose.xlu1.b32.cont [2/4] (short) (narrow) %v22_v2, 8  ;;  %250 = vmatprep.subr.bf16.mxu0 %v318_v51  ;;  %v204_v2 = vsub.s32 0, %v384_v18 }
   0x7   :  { %26 = vxpose.xlu0.b32.cont [2/4] (short) (narrow) %v18_v3, 8  ;;  %v243_v56 = vsel %vm241_vm5, %v303_v55, 0  ;;  %280 = vmatprep.mubr.bf16.mxu0 %v332_v57  ;;  %v200_v3 = vld [vmem:[%s428_s2] sm:$0x3] }
   0x9   :  { %251 = vmatpush1.bf16.msra.mxu0 %v320_v53 }
   0xa   :  { %59 = vxpose.xlu1.b32.cont [3/4] (short) (narrow) %v23_v4, 8  ;;  %305 = vmatprep.subr.msk.bf16.mxu0 %vm241_vm5, %v304_v54  ;;  %v208_v4 = vsub.s32 1, %v384_v18 }
   0xb   :  { %27 = vxpose.xlu0.b32.cont [3/4] (short) (narrow) %v19_v5, 8  ;;  %v205_v5 = vrot.slane %v200_v3, %v204_v2 }
   0xd   :  { %253 = vmatpush1.bf16.msra.mxu0 %v243_v56 }
   0xe   :  { %60 = vxpose.xlu1.b32.end [4/4] (short) (narrow) %v24_v6, 8  ;;  %v209_v6 = vrot.slane %v200_v3, %v208_v4 }
   0xf   :  { %28 = vxpose.xlu0.b32.end [4/4] (short) (narrow) %v20_v7, 8 }
  0x2c   :  { %313 = vset.pattern.permute.xlu1 %v331_v32 }
  0x38   :  { %314 = vset.pattern.permute.xlu0 %v331_v32 }
  0x82   :  { %v73_v8 = vpop.trf.xlu1 }
  0x83   :  { %v41_v9 = vpop.trf.xlu0 }
  0x84   :  { %v91_v10 = vcombine.low %v41_v9, %v73_v8 }
  0x86   :  { %v94_v11 = vsel %vm93_vm0, %v91_v10, 0.0 }
  0x87   :  { %95 = vadd.xlane.f32.xlu0 %v94_v11 }
 0x114   :  { %v96_v22 = vpop.xlane.xlu0 %95 }
 0x115   :  { %v98_v23 = vmul.f32 0.03125, %v96_v22 }
 0x117   :  { %v106_v24 = vrot.slane %v98_v23, %v387_v20  ;;  %v113_v25 = vrot.slane %v98_v23, %v112_v21 }
 0x119   :  { %v116_v26 = vsub.f32 %v41_v9, %v106_v24  ;;  %v117_v27 = vsub.f32 %v73_v8, %v113_v25 }
 0x11b   :  { %v118_v28 = vmul.f32 %v116_v26, %v116_v26  ;;  %v119_v29 = vmul.f32 %v117_v27, %v117_v27 }
 0x11d   :  { %v122_v30 = vcombine.low %v118_v28, %v119_v29 }
 0x11f   :  { %v124_v31 = vsel %vm93_vm0, %v122_v30, 0.0 }
 0x120   :  { %125 = vadd.xlane.f32.xlu1 %v124_v31 }
 0x1ad   :  { %v126_v33 = vpop.xlane.xlu1 %125 }
 0x1ae   :  { %v127_v34 = vmul.f32 0.03125, %v126_v33 }
 0x1b0   :  { %v128_v35 = vadd.f32 1e-05, %v127_v34 }
 0x1b2   :  { %323 = vrsqrt.f32 %v128_v35  ;;  %vm131_vm1 = vcmp.eq.f32.partialorder %v128_v35, inf  ;;  %v134_v38 = vand.u32 2147483648, %v128_v35  ;;  %vm133_vm3 = vcmp.eq.f32.partialorder %v128_v35, 0.0 }
 0x1bc   :  { %v324_v36 = vpop.eup %323 }
 0x1bd   :  { %v130_v37 = vmul.f32 %v324_v36, %v128_v35 }
 0x1bf   :  { %v132_v39 = vsel %vm131_vm1, %v128_v35, %v130_v37 }
 0x1c0   :  { %v135_v40 = vsel %vm133_vm3, %v134_v38, %v132_v39 }
 0x1c1   :  { %v150_v41 = vrot.slane %v135_v40, %v112_v21  ;;  %v158_v42 = vsel %vm157_vm2, %v98_v23, %v135_v40  ;;  %v143_v43 = vrot.slane %v135_v40, %v387_v20 }
 0x1c2   :  { %160 = vst.msk [vmem:[%s426_s4] sm:$0xff] %vm159_vm4, %v158_v42 }
 0x1c3   :  { %325 = vrcp.f32 %v150_v41 }
 0x1c4   :  { %327 = vrcp.f32 %v143_v43 }
 0x1cd   :  { %v326_v44 = vpop.eup %325 }
 0x1ce   :  { %v328_v45 = vpop.eup %327  ;;  %v156_v46 = vmul.f32 %v326_v44, %v117_v27 }
 0x1cf   :  { %v154_v47 = vmul.f32 %v328_v45, %v116_v26 }
 0x1d0   :  { %175 = vperm.xlu0 %314, %v156_v46  }
 0x1d1   :  { %163 = vperm.xlu1 %313, %v154_v47   ;;  %v185_v48 = vcombine.low %v154_v47, %v156_v46 }
 0x24f   :  { %v176_v58 = vpop.permute.xlu0 %175 }
 0x250   :  { %v184_v59 = vrot.slane %v176_v58, %v387_v20  ;;  %v164_v60 = vpop.permute.xlu1 %163 }
 0x251   :  { %v172_v61 = vrot.slane %v164_v60, %v387_v20 }
 0x253   :  { %v189_v62 = vcombine.low %v172_v61, %v184_v59 }
 0x255   :  { %190 = vrot.lane.b32.xlu1 %v189_v62, %s333_s15 }
 0x2c7   :  { %v191_v63 = vpop.permute.xlu1 %190 }
 0x2c8   :  { %v193_v0 = vsel %vm93_vm0, %v185_v48, %v191_v63 }
 0x2c9   :  { %v194_v1 = vpack.c.bf16 %v193_v0, %v193_v0 }
 0x2cb   :  { %306 = vmatmul.mubr.msk.bf16.vlgmr.msra.gmra.mrb[0].mxu0 %vm237_vm6, %v194_v1 }
 0x39e   :  { %v282_v7 = vpop.f32.mrb[0].mxu0 }
 0x39f   :  { %v283_v8 = vadd.f32 %v282_v7, %v205_v5  ;;  %v284_v9 = vpop.f32.mrb[1].mxu0 }
 0x3a0   :  { %v285_v10 = vadd.f32 %v284_v9, %v209_v6  ;;  %v286_v11 = vpop.f32.mrb[2].mxu0 }
 0x3a1   :  { %289 = vst [vmem:[%s429_s3] sm:$0xff] %v283_v8  ;;  %v287_v12 = vpop.f32.mrb[3].mxu0 }
 0x3a2   :  { %290 = vst [vmem:[%s429_s3 + $0x8] sm:$0xff] %v285_v10 }

// kernel: gpt4ts_forward.5
= control target key start
LH: loop header
LB: loop body
LE: loop exit
PB: predicated region body
PF: predicated region fallthrough
CT: control target
= control target key end

     0   :  { %vm34_vm0 = vcmask 261120   ;;  %vm177_vm1 = vcmask 1041409   ;;  %vm180_vm2 = vcmask 1042434   ;;  %vm186_vm3 = vcmask 1044484   ;;  %s682_s21 = smov 64   ;;  %s684_s22 = smov 96   ;;  %s1032_s0 = inlined_call_operand.vmem [shape: f32[8,8,32], index: 0, kind: input, shape index: {}]   ;;  %s1033_s4 = inlined_call_operand.vmem [shape: bf16[256,8], index: 4, kind: input, shape index: {}]   ;;  %s1034_s2 = inlined_call_operand.vmem [shape: f32[1,32], index: 2, kind: input, shape index: {}]   ;;  %s1035_s3 = inlined_call_operand.vmem [shape: f32[1,32], index: 3, kind: input, shape index: {}]   ;;  %s1036_s1 = inlined_call_operand.vmem [shape: f32[8,2], index: 1, kind: input, shape index: {}]   ;;  %s1037_s5 = inlined_call_operand.vmem [shape: f32[1,8], index: 5, kind: input, shape index: {}]   ;;  %s1038_s6 = inlined_call_operand.vmem [shape: f32[2,8,4], index: 6, kind: output, shape index: {}]  }
   0x1   :  { %v24_v0 = vld [vmem:[%s1032_s0] sm:$0xff]  ;;  %v26_v1 = vld [vmem:[%s1032_s0 + $0x10] sm:$0xff]  ;;  %v25_v2 = vld [vmem:[%s1032_s0 + $0x8] sm:$0xff]  ;;  %vm183_vm4 = vcmask 1043459   ;;  %vm192_vm5 = vcmask 1046534   ;;  %vm189_vm6 = vcmask 1045509  }
   0x2   :  { %v35_v3 = vsel %vm34_vm0, %v24_v0, 0.0  ;;  %v41_v4 = vsel %vm34_vm0, %v26_v1, 0.0  ;;  %v27_v5 = vld [vmem:[%s1032_s0 + $0x18] sm:$0xff]  ;;  %v38_v6 = vsel %vm34_vm0, %v25_v2, 0.0  ;;  %v28_v8 = vld [vmem:[%s1032_s0 + $0x20] sm:$0xff]  ;;  %v29_v9 = vld [vmem:[%s1032_s0 + $0x28] sm:$0xff] }
   0x3   :  { %36 = vadd.xlane.f32.xlu0 %v35_v3  ;;  %42 = vadd.xlane.f32.xlu1 %v41_v4  ;;  %v44_v7 = vsel %vm34_vm0, %v27_v5, 0.0  ;;  %v47_v10 = vsel %vm34_vm0, %v28_v8, 0.0  ;;  %v50_v11 = vsel %vm34_vm0, %v29_v9, 0.0  ;;  %v30_v12 = vld [vmem:[%s1032_s0 + $0x30] sm:$0xff]  ;;  %v31_v13 = vld [vmem:[%s1032_s0 + $0x38] sm:$0xff]  ;;  %v650_v56 = vld [vmem:[%s1033_s4 + $0x40] sm:$0xff]  }
   0x4   :  { %v53_v14 = vsel %vm34_vm0, %v30_v12, 0.0  ;;  %v56_v15 = vsel %vm34_vm0, %v31_v13, 0.0  ;;  %v651_v57 = vld [vmem:[%s1033_s4] sm:$0xff]   ;;  %605 = vmatprep.subr.bf16.mxu0 %v650_v56  ;;  %v652_v58 = vld [vmem:[%s1033_s4 + $0x48] sm:$0xff]   ;;  %v654_v60 = vld [vmem:[%s1033_s4 + $0x50] sm:$0xff]   ;;  %vm195_vm7 = vcmask 1047559  }
   0x5   :  { %606 = vmatpush3.bf16.msra.mxu0 %v651_v57  ;;  %v653_v59 = vld [vmem:[%s1033_s4 + $0x8] sm:$0xff]   ;;  %v655_v61 = vld [vmem:[%s1033_s4 + $0x10] sm:$0xff]   ;;  %v656_v62 = vld [vmem:[%s1033_s4 + $0x58] sm:$0xff]   ;;  %vm316_vm8 = vcmask 523264   ;;  %vm318_vm9 = vcmask 785408   ;;  %vm579_vm10 = vcmask 31744  }
   0x6   :  { %607 = vmatprep.subr.bf16.mxu0 %v652_v58  ;;  %v657_v63 = vld [vmem:[%s1033_s4 + $0x18] sm:$0xff]   ;;  %v661_v3 = vld [vmem:[%s1033_s4 + $0x28] sm:$0xff]  }
   0x7   :  { %39 = vadd.xlane.f32.xlu0 %v38_v6  ;;  %45 = vadd.xlane.f32.xlu1 %v44_v7 }
   0x9   :  { %608 = vmatpush3.bf16.msra.mxu0 %v653_v59 }
   0xa   :  { %609 = vmatprep.subr.bf16.mxu0 %v654_v60 }
   0xb   :  { %48 = vadd.xlane.f32.xlu0 %v47_v10  ;;  %51 = vadd.xlane.f32.xlu1 %v50_v11 }
   0xd   :  { %610 = vmatpush3.bf16.msra.mxu0 %v655_v61 }
   0xe   :  { %611 = vmatprep.subr.bf16.mxu0 %v656_v62 }
   0xf   :  { %54 = vadd.xlane.f32.xlu0 %v53_v14  ;;  %57 = vadd.xlane.f32.xlu1 %v56_v15 }
  0x11   :  { %612 = vmatpush3.bf16.msra.mxu0 %v657_v63 }
  0x90   :  { %v37_v16 = vpop.xlane.xlu0 %36  ;;  %v43_v17 = vpop.xlane.xlu1 %42 }
  0x91   :  { %v60_v18 = vmul.f32 0.03125, %v37_v16  ;;  %v62_v19 = vmul.f32 0.03125, %v43_v17 }
  0x93   :  { %v754_v20 = vsub.f32 %v24_v0, %v60_v18  ;;  %v756_v21 = vsub.f32 %v26_v1, %v62_v19  ;;  %v658_v0 = vld [vmem:[%s1033_s4 + $0x60] sm:$0xff]  }
  0x94   :  { %v40_v22 = vpop.xlane.xlu0 %39  ;;  %v46_v23 = vpop.xlane.xlu1 %45  ;;  %v659_v1 = vld [vmem:[%s1033_s4 + $0x20] sm:$0xff]   ;;  %613 = vmatprep.subr.bf16.mxu0 %v658_v0 }
  0x95   :  { %v61_v24 = vmul.f32 0.03125, %v40_v22  ;;  %v63_v25 = vmul.f32 0.03125, %v46_v23  ;;  %v76_v26 = vmul.f32 %v754_v20, %v754_v20  ;;  %v78_v27 = vmul.f32 %v756_v21, %v756_v21  ;;  %614 = vmatpush3.bf16.msra.mxu0 %v659_v1 }
  0x97   :  { %v762_v28 = vsub.f32 %v25_v2, %v61_v24  ;;  %v764_v29 = vsub.f32 %v27_v5, %v63_v25  ;;  %v84_v30 = vsel %vm34_vm0, %v76_v26, 0.0  ;;  %v90_v33 = vsel %vm34_vm0, %v78_v27, 0.0  ;;  %v660_v2 = vld [vmem:[%s1033_s4 + $0x68] sm:$0xff]   ;;  %v833_v26 = vld [vmem:[%s1034_s2] ss:$0 sm:$0xff] }
  0x98   :  { %85 = vadd.xlane.f32.xlu0 %v84_v30  ;;  %v49_v31 = vpop.xlane.xlu0 %48  ;;  %v52_v32 = vpop.xlane.xlu1 %51  ;;  %615 = vmatprep.subr.bf16.mxu0 %v660_v2 }
  0x99   :  { %v64_v34 = vmul.f32 0.03125, %v49_v31  ;;  %v65_v35 = vmul.f32 0.03125, %v52_v32  ;;  %v77_v36 = vmul.f32 %v762_v28, %v762_v28  ;;  %v79_v37 = vmul.f32 %v764_v29, %v764_v29  ;;  %616 = vmatpush3.bf16.msra.mxu0 %v661_v3 }
  0x9b   :  { %v772_v38 = vsub.f32 %v28_v8, %v64_v34  ;;  %v774_v39 = vsub.f32 %v29_v9, %v65_v35  ;;  %v87_v40 = vsel %vm34_vm0, %v77_v36, 0.0  ;;  %v93_v43 = vsel %vm34_vm0, %v79_v37, 0.0 }
  0x9c   :  { %91 = vadd.xlane.f32.xlu0 %v90_v33  ;;  %88 = vadd.xlane.f32.xlu1 %v87_v40  ;;  %v55_v41 = vpop.xlane.xlu0 %54  ;;  %v58_v42 = vpop.xlane.xlu1 %57  ;;  %v839_v33 = vld [vmem:[%s1035_s3] ss:$0 sm:$0xff] }
  0x9d   :  { %v66_v44 = vmul.f32 0.03125, %v55_v41  ;;  %v67_v45 = vmul.f32 0.03125, %v58_v42  ;;  %v80_v46 = vmul.f32 %v772_v38, %v772_v38  ;;  %v81_v47 = vmul.f32 %v774_v39, %v774_v39 }
  0x9f   :  { %v782_v48 = vsub.f32 %v30_v12, %v66_v44  ;;  %v784_v49 = vsub.f32 %v31_v13, %v67_v45  ;;  %v96_v50 = vsel %vm34_vm0, %v80_v46, 0.0  ;;  %v99_v51 = vsel %vm34_vm0, %v81_v47, 0.0 }
  0xa0   :  { %94 = vadd.xlane.f32.xlu1 %v93_v43  ;;  %97 = vadd.xlane.f32.xlu0 %v96_v50 }
  0xa1   :  { %v82_v52 = vmul.f32 %v782_v48, %v782_v48  ;;  %v83_v53 = vmul.f32 %v784_v49, %v784_v49 }
  0xa3   :  { %v102_v54 = vsel %vm34_vm0, %v82_v52, 0.0  ;;  %v105_v55 = vsel %vm34_vm0, %v83_v53, 0.0 }
  0xa4   :  { %100 = vadd.xlane.f32.xlu1 %v99_v51  ;;  %103 = vadd.xlane.f32.xlu0 %v102_v54 }
  0xa8   :  { %106 = vadd.xlane.f32.xlu1 %v105_v55 }
 0x125   :  { %v86_v4 = vpop.xlane.xlu0 %85 }
 0x126   :  { %v108_v5 = vmul.f32 0.03125, %v86_v4 }
 0x128   :  { %v116_v6 = vadd.f32 1e-05, %v108_v5 }
 0x129   :  { %v89_v7 = vpop.xlane.xlu1 %88  ;;  %v92_v8 = vpop.xlane.xlu0 %91 }
 0x12a   :  { %666 = vrsqrt.f32 %v116_v6  ;;  %v109_v9 = vmul.f32 0.03125, %v89_v7  ;;  %v110_v10 = vmul.f32 0.03125, %v92_v8 }
 0x12c   :  { %v117_v11 = vadd.f32 1e-05, %v109_v9  ;;  %v118_v12 = vadd.f32 1e-05, %v110_v10 }
 0x12d   :  { %v95_v13 = vpop.xlane.xlu1 %94  ;;  %v98_v14 = vpop.xlane.xlu0 %97 }
 0x12e   :  { %668 = vrsqrt.f32 %v117_v11  ;;  %v111_v15 = vmul.f32 0.03125, %v95_v13  ;;  %v112_v16 = vmul.f32 0.03125, %v98_v14 }
 0x12f   :  { %670 = vrsqrt.f32 %v118_v12 }
 0x130   :  { %v119_v17 = vadd.f32 1e-05, %v111_v15  ;;  %v120_v18 = vadd.f32 1e-05, %v112_v16 }
 0x131   :  { %v101_v19 = vpop.xlane.xlu1 %100  ;;  %v104_v22 = vpop.xlane.xlu0 %103 }
 0x132   :  { %672 = vrsqrt.f32 %v119_v17  ;;  %v113_v23 = vmul.f32 0.03125, %v101_v19  ;;  %v114_v24 = vmul.f32 0.03125, %v104_v22 }
 0x133   :  { %674 = vrsqrt.f32 %v120_v18 }
 0x134   :  { %v667_v25 = vpop.eup %666  ;;  %v121_v27 = vadd.f32 1e-05, %v113_v23  ;;  %v122_v30 = vadd.f32 1e-05, %v114_v24 }
 0x135   :  { %v132_v31 = vmul.f32 %v667_v25, %v754_v20  ;;  %v107_v32 = vpop.xlane.xlu1 %106 }
 0x136   :  { %676 = vrsqrt.f32 %v121_v27  ;;  %v115_v34 = vmul.f32 0.03125, %v107_v32 }
 0x137   :  { %v146_v35 = vmul.f32 %v833_v26, %v132_v31  ;;  %678 = vrsqrt.f32 %v122_v30 }
 0x138   :  { %v669_v36 = vpop.eup %668  ;;  %v123_v37 = vadd.f32 1e-05, %v115_v34 }
 0x139   :  { %v671_v40 = vpop.eup %670  ;;  %v843_v41 = vadd.f32 %v839_v33, %v146_v35  ;;  %v133_v42 = vmul.f32 %v669_v36, %v762_v28 }
 0x13a   :  { %v134_v20 = vmul.f32 %v671_v40, %v756_v21  ;;  %680 = vrsqrt.f32 %v123_v37 }
 0x13b   :  { %v147_v43 = vmul.f32 %v833_v26, %v133_v42  ;;  %v215_v46 = vrot.slane %v843_v41, 2  ;;  %v281_v47 = vrot.slane %v843_v41, 6  ;;  %v198_v50 = vrot.slane %v843_v41, 1 }
 0x13c   :  { %v673_v44 = vpop.eup %672  ;;  %v148_v45 = vmul.f32 %v833_v26, %v134_v20  ;;  %v264_v52 = vrot.slane %v843_v41, 5  ;;  %v232_v53 = vrot.slane %v843_v41, 3  ;;  %v298_v56 = vrot.slane %v843_v41, 7 }
 0x13d   :  { %v675_v51 = vpop.eup %674  ;;  %v853_v28 = vadd.f32 %v839_v33, %v147_v43  ;;  %v135_v21 = vmul.f32 %v673_v44, %v764_v29  ;;  %v249_v57 = vrot.slane %v843_v41, 4 }
 0x13e   :  { %v859_v54 = vadd.f32 %v839_v33, %v148_v45  ;;  %v136_v55 = vmul.f32 %v675_v51, %v772_v38 }
 0x13f   :  { %v149_v58 = vmul.f32 %v833_v26, %v135_v21  ;;  %v216_v59 = vrot.slane %v853_v28, 1  ;;  %v282_v29 = vrot.slane %v853_v28, 5  ;;  %v199_v60 = vsel %vm177_vm1, %v853_v28, %v198_v50 }
 0x140   :  { %v677_v61 = vpop.eup %676  ;;  %v150_v62 = vmul.f32 %v833_v26, %v136_v55  ;;  %v284_v38 = vrot.slane %v859_v54, 4  ;;  %v200_v63 = vrot.slane %v859_v54, 7  ;;  %v265_v0 = vrot.slane %v853_v28, 4 }
 0x141   :  { %v679_v1 = vpop.eup %678  ;;  %v874_v2 = vadd.f32 %v839_v33, %v149_v58  ;;  %v137_v3 = vmul.f32 %v677_v61, %v774_v39  ;;  %v217_v4 = vsel %vm177_vm1, %v216_v59, %v215_v46  ;;  %v283_v5 = vsel %vm177_vm1, %v282_v29, %v281_v47  ;;  %v663_v47 = vld [vmem:[%s1033_s4 + $0x30] sm:$0xff]  }
 0x142   :  { %v880_v6 = vadd.f32 %v839_v33, %v150_v62  ;;  %v138_v7 = vmul.f32 %v679_v1, %v782_v48  ;;  %v218_v8 = vsel %vm180_vm2, %v859_v54, %v217_v4  ;;  %v285_v9 = vsel %vm180_vm2, %v284_v38, %v283_v5  ;;  %v664_v4 = vld [vmem:[%s1033_s4 + $0x78] sm:$0xff]  }
 0x143   :  { %v151_v10 = vmul.f32 %v833_v26, %v137_v3  ;;  %v219_v11 = vrot.slane %v874_v2, 7  ;;  %v286_v39 = vrot.slane %v874_v2, 3  ;;  %v201_v12 = vsel %vm180_vm2, %v200_v63, %v199_v60  ;;  %v665_v5 = vld [vmem:[%s1033_s4 + $0x38] sm:$0xff]  }
 0x144   :  { %v681_v13 = vpop.eup %680  ;;  %v152_v14 = vmul.f32 %v833_v26, %v138_v7  ;;  %v221_v15 = vrot.slane %v880_v6, 6  ;;  %v288_v48 = vrot.slane %v880_v6, 2  ;;  %v202_v16 = vrot.slane %v874_v2, 6 }
 0x145   :  { %v895_v17 = vadd.f32 %v839_v33, %v151_v10  ;;  %v139_v18 = vmul.f32 %v681_v13, %v784_v49  ;;  %v220_v19 = vsel %vm183_vm4, %v219_v11, %v218_v8  ;;  %v287_v22 = vsel %vm183_vm4, %v286_v39, %v285_v9 }
 0x146   :  { %v901_v23 = vadd.f32 %v839_v33, %v152_v14  ;;  %v222_v24 = vsel %vm186_vm3, %v221_v15, %v220_v19  ;;  %v289_v25 = vsel %vm186_vm3, %v288_v48, %v287_v22  ;;  %v203_v27 = vsel %vm183_vm4, %v202_v16, %v201_v12 }
 0x147   :  { %v153_v30 = vmul.f32 %v833_v26, %v139_v18  ;;  %v223_v31 = vrot.slane %v895_v17, 5  ;;  %v290_v32 = vrot.slane %v895_v17, 1  ;;  %v204_v49 = vrot.slane %v880_v6, 5 }
 0x148   :  { %v225_v34 = vrot.slane %v901_v23, 4  ;;  %v206_v35 = vrot.slane %v895_v17, 4  ;;  %v208_v36 = vrot.slane %v901_v23, 3  ;;  %v266_v37 = vsel %vm177_vm1, %v265_v0, %v264_v52 }
 0x149   :  { %v915_v40 = vadd.f32 %v839_v33, %v153_v30  ;;  %v224_v42 = vsel %vm189_vm6, %v223_v31, %v222_v24  ;;  %v291_v26 = vsel %vm189_vm6, %v290_v32, %v289_v25  ;;  %v205_v20 = vsel %vm186_vm3, %v204_v49, %v203_v27  ;;  %v662_v33 = vld [vmem:[%s1033_s4 + $0x70] sm:$0xff]   ;;  %s683_s4 = smov 32  }
 0x14a   :  { %v226_v43 = vsel %vm192_vm5, %v225_v34, %v224_v42  ;;  %v292_v44 = vsel %vm192_vm5, %v901_v23, %v291_v26  ;;  %v207_v45 = vsel %vm189_vm6, %v206_v35, %v205_v20  ;;  %v267_v46 = vrot.slane %v859_v54, 3  ;;  %617 = vmatprep.subr.bf16.mxu0 %v662_v33 }
 0x14b   :  { %v227_v50 = vrot.slane %v915_v40, 3  ;;  %v293_v51 = vrot.slane %v915_v40, 7  ;;  %v209_v21 = vsel %vm192_vm5, %v208_v36, %v207_v45  ;;  %v210_v52 = vrot.slane %v915_v40, 2  ;;  %618 = vmatpush3.bf16.msra.mxu0 %v663_v47 }
 0x14c   :  { %v268_v55 = vsel %vm180_vm2, %v267_v46, %v266_v37  ;;  %v269_v58 = vrot.slane %v874_v2, 2  ;;  %v271_v59 = vrot.slane %v880_v6, 1  ;;  %v274_v29 = vrot.slane %v901_v23, 7  ;;  %619 = vmatprep.subr.bf16.mxu0 %v664_v4 }
 0x14d   :  { %v228_v60 = vsel %vm195_vm7, %v227_v50, %v226_v43  ;;  %v294_v61 = vsel %vm195_vm7, %v293_v51, %v292_v44  ;;  %v211_v62 = vsel %vm195_vm7, %v210_v52, %v209_v21  ;;  %v276_v38 = vrot.slane %v915_v40, 6 }
 0x14e   :  { %v638_v63 = vpack.i.bf16 %v228_v60, %v294_v61  ;;  %v270_v0 = vsel %vm183_vm4, %v269_v58, %v268_v55  ;;  %v233_v1 = vrot.slane %v853_v28, 2  ;;  %v235_v3 = vrot.slane %v859_v54, 1 }
 0x14f   :  { %v272_v7 = vsel %vm186_vm3, %v271_v59, %v270_v0  ;;  %v238_v8 = vrot.slane %v880_v6, 7  ;;  %v240_v9 = vrot.slane %v895_v17, 6  ;;  %v242_v10 = vrot.slane %v901_v23, 5  ;;  %620 = vmatpush3.bf16.msra.mxu0 %v665_v5 }
 0x150   :  { %639 = vrot.lane.b32.xlu1 %v638_v63, %s682_s21  ;;  %v273_v11 = vsel %vm189_vm6, %v895_v17, %v272_v7  ;;  %v234_v39 = vsel %vm177_vm1, %v233_v1, %v232_v53  ;;  %v244_v12 = vrot.slane %v915_v40, 4  ;;  %v299_v13 = vrot.slane %v853_v28, 6 }
 0x151   :  { %v275_v14 = vsel %vm192_vm5, %v274_v29, %v273_v11  ;;  %v236_v15 = vsel %vm180_vm2, %v235_v3, %v234_v39  ;;  %v301_v48 = vrot.slane %v859_v54, 5  ;;  %v303_v16 = vrot.slane %v874_v2, 4 }
 0x152   :  { %v277_v18 = vsel %vm195_vm7, %v276_v38, %v275_v14  ;;  %v237_v19 = vsel %vm183_vm4, %v874_v2, %v236_v15  ;;  %v300_v53 = vsel %vm177_vm1, %v299_v13, %v298_v56  ;;  %v305_v22 = vrot.slane %v880_v6, 3 }
 0x153   :  { %v633_v24 = vpack.i.bf16 %v211_v62, %v277_v18  ;;  %v239_v25 = vsel %vm186_vm3, %v238_v8, %v237_v19  ;;  %v302_v27 = vsel %vm180_vm2, %v301_v48, %v300_v53  ;;  %v307_v30 = vrot.slane %v895_v17, 2 }
 0x154   :  { %v241_v31 = vsel %vm189_vm6, %v240_v9, %v239_v25  ;;  %v304_v32 = vsel %vm183_vm4, %v303_v16, %v302_v27  ;;  %v309_v49 = vrot.slane %v901_v23, 1  ;;  %v176_v34 = vrot.slane %v853_v28, 7 }
 0x155   :  { %634 = vrot.lane.b32.xlu0 %v633_v24, %s683_s4  ;;  %v243_v56 = vsel %vm192_vm5, %v242_v10, %v241_v31  ;;  %v306_v35 = vsel %vm186_vm3, %v305_v22, %v304_v32  ;;  %v179_v36 = vrot.slane %v859_v54, 6  ;;  %v182_v37 = vrot.slane %v874_v2, 5  ;;  %v588_v22 = vld [vmem:[%s1037_s5] ss:$0 sm:$0xff] }
 0x156   :  { %v245_v42 = vsel %vm195_vm7, %v244_v12, %v243_v56  ;;  %v308_v26 = vsel %vm189_vm6, %v307_v30, %v306_v35  ;;  %v178_v20 = vsel %vm177_vm1, %v176_v34, %v843_v41  ;;  %v185_v43 = vrot.slane %v880_v6, 4  ;;  %v500_v41 = vld [vmem:[%s1036_s1] sm:$0xff] }
 0x157   :  { %v310_v44 = vsel %vm192_vm5, %v309_v49, %v308_v26  ;;  %v181_v45 = vsel %vm180_vm2, %v179_v36, %v178_v20  ;;  %v188_v46 = vrot.slane %v895_v17, 3  ;;  %v194_v33 = vrot.slane %v915_v40, 1 }
 0x158   :  { %v311_v47 = vsel %vm195_vm7, %v915_v40, %v310_v44  ;;  %v184_v50 = vsel %vm183_vm4, %v182_v37, %v181_v45  ;;  %v191_v51 = vrot.slane %v901_v23, 2  ;;  %v250_v21 = vrot.slane %v853_v28, 3 }
 0x159   :  { %v643_v52 = vpack.i.bf16 %v245_v42, %v311_v47  ;;  %v187_v55 = vsel %vm186_vm3, %v185_v43, %v184_v50  ;;  %v252_v58 = vrot.slane %v859_v54, 2  ;;  %v254_v59 = vrot.slane %v874_v2, 1 }
 0x15a   :  { %v190_v29 = vsel %vm189_vm6, %v188_v46, %v187_v55  ;;  %v251_v60 = vsel %vm177_vm1, %v250_v21, %v249_v57  ;;  %v257_v61 = vrot.slane %v895_v17, 7  ;;  %v259_v38 = vrot.slane %v901_v23, 6 }
 0x15b   :  { %644 = vrot.lane.b32.xlu1 %v643_v52, %s684_s22  ;;  %v193_v62 = vsel %vm192_vm5, %v191_v51, %v190_v29  ;;  %v253_v28 = vsel %vm180_vm2, %v252_v58, %v251_v60  ;;  %v261_v63 = vrot.slane %v915_v40, 5  ;;  %v685_v17 = vmov 1  }
 0x15c   :  { %v196_v54 = vsel %vm195_vm7, %v194_v33, %v193_v62  ;;  %v255_v2 = vsel %vm183_vm4, %v254_v59, %v253_v28  ;;  %648 = vset.pattern.permute.xlu1 %v685_v17  ;;  %v686_v1 = vmov 0  }
 0x15d   :  { %v256_v57 = vsel %vm186_vm3, %v880_v6, %v255_v2  ;;  %649 = vset.pattern.permute.xlu0 %v686_v1 }
 0x15e   :  { %v258_v0 = vsel %vm189_vm6, %v257_v61, %v256_v57  ;;  %508 = vperm.xlu0 %649, %v500_v41  }
 0x15f   :  { %v260_v23 = vsel %vm192_vm5, %v259_v38, %v258_v0  ;;  %503 = vperm.xlu1 %648, %v500_v41  }
 0x160   :  { %v262_v3 = vsel %vm195_vm7, %v261_v63, %v260_v23 }
 0x1c2   :  { %v640_v40 = vpop.permute.xlu1 %639 }
 0x1c3   :  { %v642_v8 = vunpack.i.h.bf16 %v640_v40  ;;  %v641_v9 = vunpack.i.l.bf16 %v640_v40 }
 0x1c7   :  { %v635_v4 = vpop.permute.xlu0 %634 }
 0x1c8   :  { %v637_v5 = vunpack.i.h.bf16 %v635_v4  ;;  %v636_v7 = vunpack.i.l.bf16 %v635_v4 }
 0x1ca   :  { %v315_v6 = vsel %vm34_vm0, %v196_v54, %v637_v5  ;;  %v320_v10 = vsel %vm34_vm0, %v262_v3, %v636_v7 }
 0x1cb   :  { %v321_v13 = vsel %vm316_vm8, %v320_v10, %v641_v9  ;;  %v317_v14 = vsel %vm316_vm8, %v315_v6, %v642_v8 }
 0x1cd   :  { %v645_v11 = vpop.permute.xlu1 %644 }
 0x1ce   :  { %v647_v39 = vunpack.i.h.bf16 %v645_v11  ;;  %v646_v12 = vunpack.i.l.bf16 %v645_v11 }
 0x1d0   :  { %v322_v15 = vsel %vm318_vm9, %v321_v13, %v646_v12  ;;  %v319_v48 = vsel %vm318_vm9, %v317_v14, %v647_v39 }
 0x1d1   :  { %v324_v16 = vpack.c.bf16 %v322_v15, %v322_v15  ;;  %v323_v18 = vpack.c.bf16 %v319_v48, %v319_v48 }
 0x1d3   :  { %492 = vmatprep.mubr.bf16.mxu0 %v324_v16 }
 0x1d4   :  { %493 = vmatmul.mubr.bf16.vlgmr.msra.gmra.mrb[0].mxu0 %v323_v18 }
 0x1dd   :  { %v509_v32 = vpop.permute.xlu0 %508 }
 0x1de   :  { %v504_v30 = vpop.permute.xlu1 %503 }
 0x2a7   :  { %v621_v19 = vpop.f32.mrb[0].mxu0 }
 0x2a8   :  { %v622_v53 = vpop.f32.mrb[1].mxu0 }
 0x2a9   :  { %v623_v24 = vadd.f32 %v622_v53, %v621_v19  ;;  %v624_v25 = vpop.f32.mrb[2].mxu0 }
 0x2aa   :  { %v625_v27 = vpop.f32.mrb[3].mxu0 }
 0x2ab   :  { %v495_v31 = vadd.f32 %v623_v24, %v588_v22 }
 0x2ad   :  { %v506_v49 = vmul.f32 %v504_v30, %v495_v31 }
 0x2af   :  { %v511_v34 = vadd.f32 %v509_v32, %v506_v49 }
 0x2b1   :  { %v513_v56 = vcombine.high %v511_v34, %v511_v34  ;;  %515 = vxpose.xlu1.b32.start.end [1/1] (short) (narrow) %v511_v34, 8 }
 0x2b3   :  { %547 = vxpose.xlu0.b32.start.end [1/1] (short) (narrow) %v513_v56, 8 }
 0x331   :  { %v531_v35 = vpop.trf.xlu1 }
 0x332   :  { %580 = vst.msk [vmem:[%s1038_s6] sm:$0xff] %vm579_vm10, %v531_v35 }
 0x333   :  { %v563_v36 = vpop.trf.xlu0 }
 0x334   :  { %581 = vst.msk [vmem:[%s1038_s6 + $0x8] sm:$0xff] %vm579_vm10, %v563_v36 }

// kernel: gpt4ts_forward.4
= control target key start
LH: loop header
LB: loop body
LE: loop exit
PB: predicated region body
PF: predicated region fallthrough
CT: control target
= control target key end

     0   :  { %s6655_s25 = smov 0   ;;  %s6657_s26 = smov 0   ;;  %s8154_s0 = inlined_call_operand.vmem [shape: f32[8,8,32], index: 0, kind: input, shape index: {}]   ;;  %s8155_s1 = inlined_call_operand.vmem [shape: f32[2,1,32], index: 1, kind: input, shape index: {}]   ;;  %s8156_s2 = inlined_call_operand.vmem [shape: f32[2,1,32], index: 2, kind: input, shape index: {}]   ;;  %s8157_s3 = inlined_call_operand.vmem [shape: bf16[2,32,96], index: 3, kind: input, shape index: {}]   ;;  %s8158_s4 = inlined_call_operand.vmem [shape: f32[2,1,96], index: 4, kind: input, shape index: {}]   ;;  %s8159_s5 = inlined_call_operand.vmem [shape: bf16[2,32,32], index: 5, kind: input, shape index: {}]   ;;  %s8160_s6 = inlined_call_operand.vmem [shape: f32[2,1,32], index: 6, kind: input, shape index: {}]   ;;  %s8161_s7 = inlined_call_operand.vmem [shape: f32[2,1,32], index: 7, kind: input, shape index: {}]   ;;  %s8162_s8 = inlined_call_operand.vmem [shape: f32[2,1,32], index: 8, kind: input, shape index: {}]   ;;  %s8163_s9 = inlined_call_operand.vmem [shape: bf16[2,32,128], index: 9, kind: input, shape index: {}]   ;;  %s8164_s10 = inlined_call_operand.vmem [shape: f32[2,1,128], index: 10, kind: input, shape index: {}]   ;;  %s8165_s11 = inlined_call_operand.vmem [shape: bf16[2,128,32], index: 11, kind: input, shape index: {}]   ;;  %s8166_s12 = inlined_call_operand.vmem [shape: f32[2,1,32], index: 12, kind: input, shape index: {}]   ;;  %s8167_s13 = inlined_call_operand.vmem [shape: f32[8,8,32], index: 13, kind: output, shape index: {}]  }
   0x1   :  { %8175 = sst [smem:[#allocation18_spill]] %s8156_s2  ;;  %s6659_s27 = smov 0  }
   0x2   :  { %8176 = sst [smem:[#allocation19_spill]] %s8157_s3 }
   0x3   :  { %8177 = sst [smem:[#allocation20_spill]] %s8159_s5 }
   0x4 LB: > { %8178 = sst [smem:[#allocation2_spill]] %s6568_s26  ;;  %s32_s28 = sadd.s32 1, %s6568_s26  ;;  %s6572_s27 = sphi %s6659_s27, %s23_s27   ;;  %s6568_s26 = sphi %s6657_s26, %s8218_s26   ;;  %s6564_s25 = sphi %s6655_s25, %s8217_s25  }
   0x5   : > { %8179 = sst [smem:[#allocation3_spill]] %s6572_s27  ;;  %p5479_p0 = scmp.ge.s32.totalorder %s6572_s27, 1 }
   0x6   : > { %p33_p1 = scmp.ge.s32.totalorder %s32_s28, 2  ;;  %p504_p2 = scmp.lt.s32.totalorder %s6572_s27, 3 }
   0x8   : > { %s8220_s28 = smov (%p33_p1, %s32_s28), 0  ;;  %p505_p3 = pnand %p5479_p0, %p504_p2 }
   0x9   : > { %8180 = sst [smem:[#allocation4_spill]] %s8220_s28 }
   0xa   : > { %508 = sbr.rel (%p505_p3) target bundleno = 2876 (0xb3c), region = 72 }
  0x11   : > { %p598_p4 = scmp.lt.s32.totalorder %s6564_s25, 1  ;;  %s8182_s3 = sld [smem:[#allocation19_spill]] }
  0x12   : > { %s8183_s5 = sld [smem:[#allocation20_spill]]  ;;  %p5488_p5 = scmp.ne.s32.totalorder %s6564_s25, 0 }
  0x13   : > { %s6673_s29 = scalar_select %p598_p4, %s6564_s25, 1 }
  0x14   : > { %652 = sbr.rel (%p5488_p5) target bundleno = 27 (0x1b), region = 76  ;;  %v653_v0 = vld [vmem:[%s8154_s0] sm:$0xff] (!%p5488_p5)  ;;  %vm661_vm0 = vcmask (!%p5488_p5), 261120   ;;  %v654_v1 = vld [vmem:[%s8154_s0 + $0x8] sm:$0xff] (!%p5488_p5)  ;;  %v655_v2 = vld [vmem:[%s8154_s0 + $0x10] sm:$0xff] (!%p5488_p5) }
  0x15   : > { %s5591_s19 = sshll.u32 %s6673_s29, 4  ;;  %s622_s2 = scalar_lea.vmem %s8161_s7, %s6673_s29  ;;  %662 = vst.msk [vmem:[%s8167_s13] sm:$0xff] (!%p5488_p5), %vm661_vm0, %v653_v0  ;;  %663 = vst.msk [vmem:[%s8167_s13 + $0x8] sm:$0xff] (!%p5488_p5), %vm661_vm0, %v654_v1  ;;  %v656_v3 = vld [vmem:[%s8154_s0 + $0x18] sm:$0xff] (!%p5488_p5)  ;;  %v657_v4 = vld [vmem:[%s8154_s0 + $0x20] sm:$0xff] (!%p5488_p5) }
  0x16   : > { %s625_s22 = scalar_lea.vmem %s8162_s8, %s6673_s29  ;;  %s641_s20 = scalar_lea.vmem %s8166_s12, %s6673_s29  ;;  %664 = vst.msk [vmem:[%s8167_s13 + $0x10] sm:$0xff] (!%p5488_p5), %vm661_vm0, %v655_v2  ;;  %v658_v5 = vld [vmem:[%s8154_s0 + $0x28] sm:$0xff] (!%p5488_p5)  ;;  %665 = vst.msk [vmem:[%s8167_s13 + $0x18] sm:$0xff] (!%p5488_p5), %vm661_vm0, %v656_v3  ;;  %v659_v6 = vld [vmem:[%s8154_s0 + $0x30] sm:$0xff] (!%p5488_p5) }
  0x17   : > { %s6691_s30 = scalar_lea.vmem %s8182_s3, %s5591_s19  ;;  %s6713_s3 = scalar_lea.vmem %s8163_s9, %s5591_s19  ;;  %666 = vst.msk [vmem:[%s8167_s13 + $0x20] sm:$0xff] (!%p5488_p5), %vm661_vm0, %v657_v4  ;;  %667 = vst.msk [vmem:[%s8167_s13 + $0x28] sm:$0xff] (!%p5488_p5), %vm661_vm0, %v658_v5  ;;  %v660_v7 = vld [vmem:[%s8154_s0 + $0x38] sm:$0xff] (!%p5488_p5) }
  0x18   : > { %s6696_s26 = scalar_lea.vmem %s8183_s5, %s5591_s19  ;;  %s633_s5 = scalar_lea.vmem %s8164_s10, %s6673_s29  ;;  %668 = vst.msk [vmem:[%s8167_s13 + $0x30] sm:$0xff] (!%p5488_p5), %vm661_vm0, %v659_v6  ;;  %669 = vst.msk [vmem:[%s8167_s13 + $0x38] sm:$0xff] (!%p5488_p5), %vm661_vm0, %v660_v7 }
  0x19   : > { %8184 = sst [smem:[#allocation5_spill]] %s6696_s26  ;;  %s5594_s26 = sshll.u32 %s6673_s29, 6 }
  0x1a   : > { %s6723_s16 = scalar_lea.vmem %s8165_s11, %s5594_s26 }
  0x1b PF: > { %vm680_vm1 = vcmask 261120   ;;  %v6352_v0 = vld [vmem:[%s6691_s30] sm:$0xff]   ;;  %v6353_v1 = vld [vmem:[%s6691_s30 + $0x8] sm:$0xff]   ;;  %s8185_s23 = scalar_lea.vmem %s8155_s1, %s6673_s29  ;;  %s8186_s28 = sld [smem:[#allocation18_spill]]  ;;  %vm6576_vm2 = vmmov 0   ;;  %vm1039_vm3 = vcmask 64512  }
  0x1c   : > { %v670_v8 = vld [vmem:[%s8167_s13] sm:$0xff]  ;;  %v671_v10 = vld [vmem:[%s8167_s13 + $0x8] sm:$0xff]  ;;  %5753 = vmatprep.subr.bf16.mxu1 %v6352_v0  ;;  %s8188_s15 = scalar_lea.vmem %s8158_s4, %s6673_s29  ;;  %s6574_s25 = smov 120   ;;  %vm3058_vm5 = vcmask 1043456   ;;  %vm4694_vm6 = vcmask 130048   ;;  %vm4703_vm7 = vcmask 195584  }
  0x1d   : > { %v672_v9 = vld [vmem:[%s8167_s13 + $0x10] sm:$0xff]  ;;  %v681_v11 = vsel %vm680_vm1, %v670_v8, 0.0  ;;  %v673_v13 = vld [vmem:[%s8167_s13 + $0x18] sm:$0xff]  ;;  %v684_v16 = vsel %vm680_vm1, %v671_v10, 0.0  ;;  %5754 = vmatpush3.bf16.msra.mxu1 %v6352_v0  ;;  %s6577_s18 = smov 112   ;;  %s6578_s17 = smov 96  }
  0x1e   : > { %v687_v12 = vsel %vm680_vm1, %v672_v9, 0.0  ;;  %v674_v14 = vld [vmem:[%s8167_s13 + $0x20] sm:$0xff]  ;;  %v675_v15 = vld [vmem:[%s8167_s13 + $0x28] sm:$0xff]  ;;  %682 = vadd.xlane.f32.xlu0 %v681_v11  ;;  %v690_v17 = vsel %vm680_vm1, %v673_v13, 0.0  ;;  %5755 = vmatprep.subr.bf16.mxu1 %v6353_v1  ;;  %s6579_s30 = smov 104   ;;  %s6580_s21 = smov 64  }
  0x1f   : > { %688 = vadd.xlane.f32.xlu1 %v687_v12  ;;  %v693_v18 = vsel %vm680_vm1, %v674_v14, 0.0  ;;  %v696_v19 = vsel %vm680_vm1, %v675_v15, 0.0  ;;  %v676_v20 = vld [vmem:[%s8167_s13 + $0x30] sm:$0xff]  ;;  %v677_v21 = vld [vmem:[%s8167_s13 + $0x38] sm:$0xff]  ;;  %s6583_s19 = smov 16   ;;  %s8214_s24 = sld [smem:[#allocation5_spill]] }
  0x20   : > { %v699_v22 = vsel %vm680_vm1, %v676_v20, 0.0  ;;  %v702_v23 = vsel %vm680_vm1, %v677_v21, 0.0  ;;  %s8215_s27 = scalar_lea.vmem %s8160_s6, %s6673_s29 }
  0x21   : > { %5756 = vmatpush3.bf16.msra.mxu1 %v6353_v1  ;;  %s8187_s14 = scalar_lea.vmem %s8186_s28, %s6673_s29  ;;  %s6584_s28 = smov 24  }
  0x22   : > { %685 = vadd.xlane.f32.xlu0 %v684_v16 }
  0x23   : > { %691 = vadd.xlane.f32.xlu1 %v690_v17 }
  0x26   : > { %694 = vadd.xlane.f32.xlu0 %v693_v18 }
  0x27   : > { %697 = vadd.xlane.f32.xlu1 %v696_v19 }
  0x2a   : > { %700 = vadd.xlane.f32.xlu0 %v699_v22 }
  0x2b   : > { %703 = vadd.xlane.f32.xlu1 %v702_v23 }
  0xab   : > { %v683_v24 = vpop.xlane.xlu0 %682 }
  0xac   : > { %v689_v25 = vpop.xlane.xlu1 %688  ;;  %v706_v26 = vmul.f32 0.03125, %v683_v24 }
  0xad   : > { %v708_v27 = vmul.f32 0.03125, %v689_v25 }
  0xae   : > { %v6809_v28 = vsub.f32 %v670_v8, %v706_v26 }
  0xaf   : > { %v6811_v29 = vsub.f32 %v672_v9, %v708_v27  ;;  %v686_v30 = vpop.xlane.xlu0 %685  ;;  %v5489_v27 = vld [vmem:[%s8185_s23] ss:$0 sm:$0xff]  ;;  %s6582_s23 = smov 8  }
  0xb0   : > { %v692_v31 = vpop.xlane.xlu1 %691  ;;  %v707_v32 = vmul.f32 0.03125, %v686_v30  ;;  %v722_v34 = vmul.f32 %v6809_v28, %v6809_v28 }
  0xb1   : > { %v709_v33 = vmul.f32 0.03125, %v692_v31  ;;  %v724_v35 = vmul.f32 %v6811_v29, %v6811_v29 }
  0xb2   : > { %v6817_v36 = vsub.f32 %v671_v10, %v707_v32  ;;  %v730_v38 = vsel %vm680_vm1, %v722_v34, 0.0 }
  0xb3   : > { %v6819_v37 = vsub.f32 %v673_v13, %v709_v33  ;;  %731 = vadd.xlane.f32.xlu0 %v730_v38  ;;  %v695_v39 = vpop.xlane.xlu0 %694  ;;  %v736_v41 = vsel %vm680_vm1, %v724_v35, 0.0 }
  0xb4   : > { %v698_v40 = vpop.xlane.xlu1 %697  ;;  %v710_v42 = vmul.f32 0.03125, %v695_v39  ;;  %v723_v44 = vmul.f32 %v6817_v36, %v6817_v36 }
  0xb5   : > { %v711_v43 = vmul.f32 0.03125, %v698_v40  ;;  %v725_v45 = vmul.f32 %v6819_v37, %v6819_v37 }
  0xb6   : > { %v6827_v46 = vsub.f32 %v674_v14, %v710_v42  ;;  %v733_v48 = vsel %vm680_vm1, %v723_v44, 0.0 }
  0xb7   : > { %v6829_v47 = vsub.f32 %v675_v15, %v711_v43  ;;  %737 = vadd.xlane.f32.xlu0 %v736_v41  ;;  %734 = vadd.xlane.f32.xlu1 %v733_v48  ;;  %v701_v49 = vpop.xlane.xlu0 %700  ;;  %v739_v51 = vsel %vm680_vm1, %v725_v45, 0.0 }
  0xb8   : > { %v704_v50 = vpop.xlane.xlu1 %703  ;;  %v712_v52 = vmul.f32 0.03125, %v701_v49  ;;  %v726_v54 = vmul.f32 %v6827_v46, %v6827_v46 }
  0xb9   : > { %v713_v53 = vmul.f32 0.03125, %v704_v50  ;;  %v727_v55 = vmul.f32 %v6829_v47, %v6829_v47 }
  0xba   : > { %v6837_v56 = vsub.f32 %v676_v20, %v712_v52  ;;  %v742_v58 = vsel %vm680_vm1, %v726_v54, 0.0 }
  0xbb   : > { %v6839_v57 = vsub.f32 %v677_v21, %v713_v53  ;;  %740 = vadd.xlane.f32.xlu1 %v739_v51  ;;  %743 = vadd.xlane.f32.xlu0 %v742_v58  ;;  %v745_v59 = vsel %vm680_vm1, %v727_v55, 0.0 }
  0xbc   : > { %v728_v60 = vmul.f32 %v6837_v56, %v6837_v56 }
  0xbd   : > { %v729_v61 = vmul.f32 %v6839_v57, %v6839_v57 }
  0xbe   : > { %v748_v62 = vsel %vm680_vm1, %v728_v60, 0.0 }
  0xbf   : > { %746 = vadd.xlane.f32.xlu1 %v745_v59  ;;  %749 = vadd.xlane.f32.xlu0 %v748_v62  ;;  %v751_v63 = vsel %vm680_vm1, %v729_v61, 0.0 }
  0xc3   : > { %752 = vadd.xlane.f32.xlu1 %v751_v63 }
 0x140   : > { %v732_v2 = vpop.xlane.xlu0 %731 }
 0x141   : > { %v754_v3 = vmul.f32 0.03125, %v732_v2  ;;  %v5491_v2 = vld [vmem:[%s8188_s15] ss:$0 sm:$0xff] }
 0x143   : > { %v762_v4 = vadd.f32 1e-05, %v754_v3 }
 0x144   : > { %v735_v5 = vpop.xlane.xlu1 %734  ;;  %v738_v6 = vpop.xlane.xlu0 %737 }
 0x145   : > { %6366 = vrsqrt.f32 %v762_v4  ;;  %v755_v7 = vmul.f32 0.03125, %v735_v5  ;;  %v756_v8 = vmul.f32 0.03125, %v738_v6 }
 0x147   : > { %v763_v9 = vadd.f32 1e-05, %v755_v7  ;;  %v764_v10 = vadd.f32 1e-05, %v756_v8 }
 0x148   : > { %v741_v11 = vpop.xlane.xlu1 %740  ;;  %v744_v12 = vpop.xlane.xlu0 %743 }
 0x149   : > { %6368 = vrsqrt.f32 %v763_v9  ;;  %v757_v13 = vmul.f32 0.03125, %v741_v11  ;;  %v758_v14 = vmul.f32 0.03125, %v744_v12  ;;  %v8171_v12 = vmov 0.0  }
 0x14a   : > { %6370 = vrsqrt.f32 %v764_v10  ;;  %5765 = vmatprep.subr.bf16.mxu1 %v8171_v12  ;;  %5777 = vmatprep.subr.bf16.mxu0 %v8171_v12 }
 0x14b   : > { %v765_v15 = vadd.f32 1e-05, %v757_v13  ;;  %v766_v16 = vadd.f32 1e-05, %v758_v14  ;;  %5779 = vmatprep.mubr.msk.bf16.mxu0 %vm6576_vm2, %v8171_v12 }
 0x14c   : > { %v747_v17 = vpop.xlane.xlu1 %746  ;;  %v750_v18 = vpop.xlane.xlu0 %749 }
 0x14d   : > { %6372 = vrsqrt.f32 %v765_v15  ;;  %v759_v19 = vmul.f32 0.03125, %v747_v17  ;;  %v760_v20 = vmul.f32 0.03125, %v750_v18 }
 0x14e   : > { %6374 = vrsqrt.f32 %v766_v16 }
 0x14f   : > { %v6367_v21 = vpop.eup %6366  ;;  %v767_v22 = vadd.f32 1e-05, %v759_v19  ;;  %v768_v23 = vadd.f32 1e-05, %v760_v20 }
 0x150   : > { %v753_v24 = vpop.xlane.xlu1 %752  ;;  %v778_v25 = vmul.f32 %v6367_v21, %v6809_v28  ;;  %v5490_v28 = vld [vmem:[%s8187_s14] ss:$0 sm:$0xff] }
 0x151   : > { %6376 = vrsqrt.f32 %v767_v22  ;;  %v761_v26 = vmul.f32 0.03125, %v753_v24 }
 0x152   : > { %6378 = vrsqrt.f32 %v768_v23  ;;  %v792_v34 = vmul.f32 %v5489_v27, %v778_v25 }
 0x153   : > { %v6369_v30 = vpop.eup %6368  ;;  %v769_v31 = vadd.f32 1e-05, %v761_v26 }
 0x154   : > { %v6371_v32 = vpop.eup %6370  ;;  %v779_v33 = vmul.f32 %v6369_v30, %v6817_v36  ;;  %v806_v41 = vadd.f32 %v5490_v28, %v792_v34 }
 0x155   : > { %6380 = vrsqrt.f32 %v769_v31  ;;  %v780_v35 = vmul.f32 %v6371_v32, %v6811_v29 }
 0x156   : > { %v793_v38 = vmul.f32 %v5489_v27, %v779_v33 }
 0x157   : > { %v6373_v39 = vpop.eup %6372  ;;  %v794_v44 = vmul.f32 %v5489_v27, %v780_v35 }
 0x158   : > { %v6375_v40 = vpop.eup %6374  ;;  %v807_v42 = vadd.f32 %v5490_v28, %v793_v38  ;;  %v781_v43 = vmul.f32 %v6373_v39, %v6819_v37 }
 0x159   : > { %v782_v45 = vmul.f32 %v6375_v40, %v6827_v46  ;;  %v808_v51 = vadd.f32 %v5490_v28, %v794_v44 }
 0x15a   : > { %v814_v36 = vpack.c.bf16 %v807_v42, %v806_v41  ;;  %v795_v48 = vmul.f32 %v5489_v27, %v781_v43 }
 0x15b   : > { %v6377_v49 = vpop.eup %6376  ;;  %v796_v53 = vmul.f32 %v5489_v27, %v782_v45 }
 0x15c   : > { %v6379_v50 = vpop.eup %6378  ;;  %5757 = vmatprep.mubr.msk.bf16.mxu1 %vm680_vm1, %v814_v36  ;;  %v809_v52 = vadd.f32 %v5490_v28, %v795_v48  ;;  %v783_v29 = vmul.f32 %v6377_v49, %v6829_v47 }
 0x15d   : > { %v784_v54 = vmul.f32 %v6379_v50, %v6837_v56  ;;  %v810_v46 = vadd.f32 %v5490_v28, %v796_v53 }
 0x15e   : > { %v815_v55 = vpack.c.bf16 %v809_v52, %v808_v51  ;;  %v797_v58 = vmul.f32 %v5489_v27, %v783_v29 }
 0x15f   : > { %v6381_v37 = vpop.eup %6380  ;;  %v798_v61 = vmul.f32 %v5489_v27, %v784_v54 }
 0x160   : > { %5758 = vmatmul.mubr.msk.bf16.vlgmr.msra.gmra.mrb[0].mxu1 %vm680_vm1, %v815_v55  ;;  %v811_v59 = vadd.f32 %v5490_v28, %v797_v58  ;;  %v785_v60 = vmul.f32 %v6381_v37, %v6839_v57 }
 0x161   : > { %v812_v0 = vadd.f32 %v5490_v28, %v798_v61 }
 0x162   : > { %v816_v62 = vpack.c.bf16 %v811_v59, %v810_v46  ;;  %v799_v63 = vmul.f32 %v5489_v27, %v785_v60 }
 0x164   : > { %5761 = vmatprep.mubr.msk.bf16.mxu1 %vm680_vm1, %v816_v62  ;;  %v813_v47 = vadd.f32 %v5490_v28, %v799_v63 }
 0x166   : > { %v817_v1 = vpack.c.bf16 %v813_v47, %v812_v0 }
 0x168   : > { %5762 = vmatmul.mubr.msk.bf16.gmra.mrb[4].mxu1 %vm680_vm1, %v817_v1 }
 0x169   : > { %5767 = vmatprep.mubr.msk.bf16.mxu1 %vm6576_vm2, %v8171_v12 }
 0x233   : > { %v5759_v56 = vpop.f32.mrb[0].mxu1 }
 0x234   : > { %v887_v3 = vpop.f32.mrb[1].mxu1  ;;  %v896_v5 = vadd.f32 %v5759_v56, %v5491_v2 }
 0x235   : > { %v5760_v4 = vpop.f32.mrb[2].mxu1  ;;  %v888_v7 = vadd.f32 %v5491_v2, %v887_v3 }
 0x236   : > { %v899_v57 = vadd.f32 %v5760_v4, %v5491_v2  ;;  %v890_v6 = vpop.f32.mrb[3].mxu1  ;;  %v6907_v26 = vpack.c.bf16 %v896_v5, %v896_v5 }
 0x237   : > { %v891_v8 = vadd.f32 %v5491_v2, %v890_v6  ;;  %v6893_v22 = vpack.c.bf16 %v888_v7, %v888_v7 }
 0x238   : > { %v6878_v9 = vpack.i.bf16 %v899_v57, %v896_v5  ;;  %v6897_v23 = vpack.c.bf16 %v899_v57, %v899_v57 }
 0x239   : > { %v6232_v10 = vpack.i.bf16 %v891_v8, %v888_v7  ;;  %v6899_v24 = vpack.c.bf16 %v891_v8, %v891_v8 }
 0x23a   : > { %6238 = vrot.lane.b32.xlu1 %v6878_v9, %s6574_s25 }
 0x23b   : > { %6233 = vrot.lane.b32.xlu0 %v6232_v10, %s6574_s25  ;;  %v5763_v11 = vpop.f32.mrb[4].mxu1 }
 0x23c   : > { %v903_v13 = vpop.f32.mrb[5].mxu1  ;;  %v912_v15 = vadd.f32 %v5763_v11, %v5491_v2 }
 0x23d   : > { %v5764_v14 = vpop.f32.mrb[6].mxu1  ;;  %v904_v18 = vadd.f32 %v5491_v2, %v903_v13 }
 0x23e   : > { %v915_v16 = vadd.f32 %v5764_v14, %v5491_v2  ;;  %v906_v17 = vpop.f32.mrb[7].mxu1  ;;  %v6923_v31 = vpack.c.bf16 %v912_v15, %v912_v15 }
 0x23f   : > { %v907_v19 = vadd.f32 %v5491_v2, %v906_v17  ;;  %v6905_v25 = vpack.c.bf16 %v904_v18, %v904_v18 }
 0x240   : > { %v6883_v20 = vpack.i.bf16 %v915_v16, %v912_v15  ;;  %v6915_v27 = vpack.c.bf16 %v915_v16, %v915_v16 }
 0x241   : > { %v6885_v21 = vpack.i.bf16 %v907_v19, %v904_v18  ;;  %v6917_v30 = vpack.c.bf16 %v907_v19, %v907_v19 }
 0x242   : > { %6248 = vrot.lane.b32.xlu0 %v6883_v20, %s6574_s25 }
 0x243   : > { %6243 = vrot.lane.b32.xlu1 %v6885_v21, %s6574_s25 }
 0x246   : > { %6253 = vrot.lane.b32.xlu0 %v6232_v10, %s6577_s18 }
 0x247   : > { %1037 = vrot.lane.b32.xlu1 %v6893_v22, %s6578_s17 }
 0x24a   : > { %1185 = vrot.lane.b32.xlu0 %v6897_v23, %s6578_s17 }
 0x24b   : > { %1087 = vrot.lane.b32.xlu1 %v6899_v24, %s6578_s17 }
 0x24e   : > { %1234 = vrot.lane.b32.xlu0 %v6905_v25, %s6578_s17 }
 0x24f   : > { %1136 = vrot.lane.b32.xlu1 %v6907_v26, %s6578_s17 }
 0x252   : > { %6263 = vrot.lane.b32.xlu0 %v6885_v21, %s6577_s18 }
 0x253   : > { %6258 = vrot.lane.b32.xlu1 %v6878_v9, %s6577_s18 }
 0x256   : > { %1381 = vrot.lane.b32.xlu0 %v6915_v27, %s6578_s17 }
 0x257   : > { %1283 = vrot.lane.b32.xlu1 %v6917_v30, %s6578_s17 }
 0x25b   : > { %1332 = vrot.lane.b32.xlu1 %v6923_v31, %s6578_s17 }
 0x25f   : > { %6268 = vrot.lane.b32.xlu1 %v6883_v20, %s6577_s18 }
 0x2ac   : > { %v6239_v32 = vpop.permute.xlu1 %6238 }
 0x2ad   : > { %v6234_v33 = vpop.permute.xlu0 %6233  ;;  %v6240_v35 = vunpack.i.l.bf16 %v6239_v32  ;;  %v6241_v40 = vunpack.i.h.bf16 %v6239_v32 }
 0x2ae   : > { %v6236_v34 = vunpack.i.h.bf16 %v6234_v33  ;;  %v6235_v28 = vunpack.i.l.bf16 %v6234_v33 }
 0x2af   : > { %v6936_v42 = vpack.c.bf16 %v6240_v35, %v6240_v35  ;;  %v6941_v48 = vpack.c.bf16 %v6241_v40, %v6241_v40 }
 0x2b0   : > { %v6928_v38 = vpack.c.bf16 %v6236_v34, %v6236_v34  ;;  %v6930_v39 = vpack.c.bf16 %v6235_v28, %v6235_v28 }
 0x2b2   : > { %1479 = vrot.lane.b32.xlu1 %v6928_v38, %s6578_s17  ;;  %1430 = vrot.lane.b32.xlu0 %v6930_v39, %s6578_s17 }
 0x2b4   : > { %v6249_v41 = vpop.permute.xlu0 %6248 }
 0x2b5   : > { %v6244_v43 = vpop.permute.xlu1 %6243  ;;  %v6250_v51 = vunpack.i.l.bf16 %v6249_v41  ;;  %v6251_v58 = vunpack.i.h.bf16 %v6249_v41 }
 0x2b6   : > { %1528 = vrot.lane.b32.xlu1 %v6936_v42, %s6578_s17  ;;  %6273 = vrot.lane.b32.xlu0 %v6232_v10, %s6579_s30  ;;  %v6246_v44 = vunpack.i.h.bf16 %v6244_v43  ;;  %v6245_v45 = vunpack.i.l.bf16 %v6244_v43 }
 0x2b7   : > { %v6957_v55 = vpack.c.bf16 %v6250_v51, %v6250_v51  ;;  %v6969_v0 = vpack.c.bf16 %v6251_v58, %v6251_v58 }
 0x2b8   : > { %v6254_v36 = vpop.permute.xlu0 %6253  ;;  %v6948_v52 = vpack.c.bf16 %v6246_v44, %v6246_v44  ;;  %v6950_v29 = vpack.c.bf16 %v6245_v45, %v6245_v45 }
 0x2b9   : > { %v1038_v49 = vpop.permute.xlu1 %1037  ;;  %v6256_v61 = vunpack.i.h.bf16 %v6254_v36  ;;  %v6255_v62 = vunpack.i.l.bf16 %v6254_v36 }
 0x2ba   : > { %v1044_v50 = vsel %vm1039_vm3, %v1038_v49, 0  ;;  %6278 = vrot.lane.b32.xlu1 %v6878_v9, %s6579_s30  ;;  %1577 = vrot.lane.b32.xlu0 %v6941_v48, %s6578_s17 }
 0x2bb   : > { %5766 = vmatpush3.bf16.xpose.msra.mxu1 %v1044_v50  ;;  %v6977_v1 = vpack.c.bf16 %v6256_v61, %v6256_v61  ;;  %v6979_v4 = vpack.c.bf16 %v6255_v62, %v6255_v62 }
 0x2bc   : > { %5771 = vmatprep.subr.bf16.mxu1 %v8171_v12  ;;  %v1186_v53 = vpop.permute.xlu0 %1185 }
 0x2bd   : > { %v1088_v54 = vpop.permute.xlu1 %1087  ;;  %v1191_v5 = vsel %vm1039_vm3, %v1186_v53, 0 }
 0x2be   : > { %1675 = vrot.lane.b32.xlu1 %v6948_v52, %s6578_s17  ;;  %1626 = vrot.lane.b32.xlu0 %v6950_v29, %s6578_s17  ;;  %v1093_v46 = vsel %vm1039_vm3, %v1088_v54, 0 }
 0x2c0   : > { %v1235_v60 = vpop.permute.xlu0 %1234 }
 0x2c1   : > { %v1137_v37 = vpop.permute.xlu1 %1136  ;;  %v1240_v57 = vsel %vm1039_vm3, %v1235_v60, 0 }
 0x2c2   : > { %5768 = vmatmul.mubr.msk.bf16.vlgmr.msra.gmra.mrb[8].mxu1 %vm1039_vm3, %v6893_v22  ;;  %1724 = vrot.lane.b32.xlu1 %v6957_v55, %s6578_s17  ;;  %v1142_v59 = vsel %vm1039_vm3, %v1137_v37, 0 }
 0x2c3   : > { %6283 = vrot.lane.b32.xlu0 %v6885_v21, %s6579_s30  ;;  %5772 = vmatpush3.bf16.xpose.msra.mxu1 %v1093_v46 }
 0x2c4   : > { %5778 = vmatpush3.bf16.xpose.msra.mxu0 %v1142_v59  ;;  %5773 = vmatprep.mubr.msk.bf16.mxu1 %vm6576_vm2, %v8171_v12  ;;  %v6264_v56 = vpop.permute.xlu0 %6263 }
 0x2c5   : > { %v6259_v63 = vpop.permute.xlu1 %6258  ;;  %5783 = vmatprep.subr.bf16.mxu1 %v8171_v12  ;;  %5789 = vmatprep.subr.bf16.mxu0 %v8171_v12  ;;  %v6266_v6 = vunpack.i.h.bf16 %v6264_v56  ;;  %v6265_v10 = vunpack.i.l.bf16 %v6264_v56 }
 0x2c6   : > { %6288 = vrot.lane.b32.xlu1 %v6883_v20, %s6579_s30  ;;  %v6261_v47 = vunpack.i.h.bf16 %v6259_v63  ;;  %v6260_v2 = vunpack.i.l.bf16 %v6259_v63 }
 0x2c7   : > { %1773 = vrot.lane.b32.xlu0 %v6969_v0, %s6578_s17  ;;  %v7005_v11 = vpack.c.bf16 %v6266_v6, %v6266_v6  ;;  %v7009_v16 = vpack.c.bf16 %v6265_v10, %v6265_v10 }
 0x2c8   : > { %v6991_v7 = vpack.c.bf16 %v6261_v47, %v6261_v47  ;;  %v6993_v9 = vpack.c.bf16 %v6260_v2, %v6260_v2  ;;  %v1382_v21 = vpop.permute.xlu0 %1381 }
 0x2c9   : > { %v1284_v3 = vpop.permute.xlu1 %1283  ;;  %v1387_v32 = vsel %vm1039_vm3, %v1382_v21, 0 }
 0x2ca   : > { %5774 = vmatmul.mubr.msk.bf16.vlgmr.msra.gmra.mrb[12].mxu1 %vm1039_vm3, %v6899_v24  ;;  %1871 = vrot.lane.b32.xlu1 %v6977_v1, %s6578_s17  ;;  %v1289_v17 = vsel %vm1039_vm3, %v1284_v3, 0 }
 0x2cb   : > { %5780 = vmatmul.mubr.msk.bf16.vlgmr.msra.gmra.mrb[0].mxu0 %vm1039_vm3, %v6907_v26  ;;  %1822 = vrot.lane.b32.xlu0 %v6979_v4, %s6578_s17 }
 0x2cc   : > { %5784 = vmatpush3.bf16.xpose.msra.mxu1 %v1191_v5  ;;  %5790 = vmatpush3.bf16.xpose.msra.mxu0 %v1240_v57 }
 0x2cd   : > { %v1333_v8 = vpop.permute.xlu1 %1332  ;;  %5785 = vmatprep.mubr.msk.bf16.mxu1 %vm6576_vm2, %v8171_v12  ;;  %5791 = vmatprep.mubr.msk.bf16.mxu0 %vm6576_vm2, %v8171_v12 }
 0x2ce   : > { %1969 = vrot.lane.b32.xlu1 %v6991_v7, %s6578_s17  ;;  %5795 = vmatprep.subr.bf16.mxu1 %v8171_v12  ;;  %v1338_v18 = vsel %vm1039_vm3, %v1333_v8, 0 }
 0x2cf   : > { %1920 = vrot.lane.b32.xlu0 %v6993_v9, %s6578_s17  ;;  %5801 = vmatprep.subr.bf16.mxu0 %v8171_v12 }
 0x2d1   : > { %v6269_v13 = vpop.permute.xlu1 %6268 }
 0x2d2   : > { %v6271_v14 = vunpack.i.h.bf16 %v6269_v13  ;;  %v6270_v15 = vunpack.i.l.bf16 %v6269_v13  ;;  %2067 = vrot.lane.b32.xlu1 %v7005_v11, %s6578_s17 }
 0x2d3   : > { %5786 = vmatmul.mubr.msk.bf16.vlgmr.msra.gmra.mrb[16].mxu1 %vm1039_vm3, %v6897_v23  ;;  %5792 = vmatmul.mubr.msk.bf16.vlgmr.msra.gmra.mrb[4].mxu0 %vm1039_vm3, %v6905_v25 }
 0x2d4   : > { %2018 = vrot.lane.b32.xlu0 %v7009_v16, %s6578_s17  ;;  %5796 = vmatpush3.bf16.xpose.msra.mxu1 %v1289_v17  ;;  %v7019_v19 = vpack.c.bf16 %v6271_v14, %v6271_v14  ;;  %v7021_v20 = vpack.c.bf16 %v6270_v15, %v6270_v15 }
 0x2d5   : > { %5802 = vmatpush3.bf16.xpose.msra.mxu0 %v1338_v18  ;;  %5797 = vmatprep.mubr.msk.bf16.mxu1 %vm6576_vm2, %v8171_v12 }
 0x2d6   : > { %2165 = vrot.lane.b32.xlu1 %v7019_v19, %s6578_s17  ;;  %5803 = vmatprep.mubr.msk.bf16.mxu0 %vm6576_vm2, %v8171_v12 }
 0x2d7   : > { %5807 = vmatprep.subr.bf16.mxu1 %v8171_v12  ;;  %5813 = vmatprep.subr.bf16.mxu0 %v8171_v12 }
 0x2d8   : > { %2116 = vrot.lane.b32.xlu0 %v7021_v20, %s6578_s17 }
 0x2db   : > { %5798 = vmatmul.mubr.msk.bf16.vlgmr.msra.gmra.mrb[20].mxu1 %vm1039_vm3, %v6917_v30 }
 0x2dc   : > { %5804 = vmatmul.mubr.msk.bf16.vlgmr.msra.gmra.mrb[8].mxu0 %vm1039_vm3, %v6923_v31  ;;  %5808 = vmatpush3.bf16.xpose.msra.mxu1 %v1387_v32 }
 0x2dd   : > { %5809 = vmatprep.mubr.msk.bf16.mxu1 %vm6576_vm2, %v8171_v12  ;;  %5819 = vmatprep.subr.bf16.mxu1 %v8171_v12 }
 0x2de   : > { %5815 = vmatprep.mubr.msk.bf16.mxu0 %vm6576_vm2, %v8171_v12 }
 0x2e3   : > { %5810 = vmatmul.mubr.msk.bf16.vlgmr.msra.gmra.mrb[24].mxu1 %vm1039_vm3, %v6915_v27 }
 0x2e4   : > { %5821 = vmatprep.mubr.msk.bf16.mxu1 %vm6576_vm2, %v8171_v12 }
 0x324   : > { %v1480_v33 = vpop.permute.xlu1 %1479  ;;  %v1431_v34 = vpop.permute.xlu0 %1430 }
 0x325   : > { %v1485_v28 = vsel %vm1039_vm3, %v1480_v33, 0  ;;  %v1436_v35 = vsel %vm1039_vm3, %v1431_v34, 0 }
 0x326   : > { %5814 = vmatpush3.bf16.xpose.msra.mxu0 %v1436_v35  ;;  %5820 = vmatpush3.bf16.xpose.msra.mxu1 %v1485_v28 }
 0x327   : > { %5825 = vmatprep.subr.bf16.mxu0 %v8171_v12  ;;  %5831 = vmatprep.subr.bf16.mxu1 %v8171_v12 }
 0x328   : > { %v1529_v40 = vpop.permute.xlu1 %1528  ;;  %v6274_v41 = vpop.permute.xlu0 %6273 }
 0x329   : > { %v6276_v43 = vunpack.i.h.bf16 %v6274_v41  ;;  %v6275_v44 = vunpack.i.l.bf16 %v6274_v41  ;;  %v1534_v58 = vsel %vm1039_vm3, %v1529_v40, 0 }
 0x32b   : > { %v7051_v45 = vpack.c.bf16 %v6276_v43, %v6276_v43  ;;  %v7053_v36 = vpack.c.bf16 %v6275_v44, %v6275_v44 }
 0x32c   : > { %v6279_v49 = vpop.permute.xlu1 %6278  ;;  %v1578_v50 = vpop.permute.xlu0 %1577 }
 0x32d   : > { %v6281_v51 = vunpack.i.h.bf16 %v6279_v49  ;;  %v6280_v53 = vunpack.i.l.bf16 %v6279_v49  ;;  %v1583_v54 = vsel %vm1039_vm3, %v1578_v50, 0  ;;  %5816 = vmatmul.mubr.msk.bf16.vlgmr.msra.gmra.mrb[12].mxu0 %vm1039_vm3, %v6930_v39  ;;  %5822 = vmatmul.mubr.msk.bf16.vlgmr.msra.gmra.mrb[28].mxu1 %vm1039_vm3, %v6928_v38 }
 0x32e   : > { %2263 = vrot.lane.b32.xlu1 %v7051_v45, %s6578_s17  ;;  %2214 = vrot.lane.b32.xlu0 %v7053_v36, %s6578_s17 }
 0x32f   : > { %5826 = vmatpush3.bf16.xpose.msra.mxu0 %v1534_v58  ;;  %5832 = vmatpush3.bf16.xpose.msra.mxu1 %v1583_v54  ;;  %v7065_v37 = vpack.c.bf16 %v6281_v51, %v6281_v51  ;;  %v7067_v46 = vpack.c.bf16 %v6280_v53, %v6280_v53 }
 0x330   : > { %v1676_v59 = vpop.permute.xlu1 %1675  ;;  %v1627_v60 = vpop.permute.xlu0 %1626  ;;  %5833 = vmatprep.mubr.msk.bf16.mxu1 %vm6576_vm2, %v8171_v12  ;;  %5827 = vmatprep.mubr.msk.bf16.mxu0 %vm6576_vm2, %v8171_v12 }
 0x331   : > { %5837 = vmatprep.subr.bf16.mxu0 %v8171_v12  ;;  %5843 = vmatprep.subr.bf16.mxu1 %v8171_v12  ;;  %v1681_v63 = vsel %vm1039_vm3, %v1676_v59, 0  ;;  %v1632_v47 = vsel %vm1039_vm3, %v1627_v60, 0 }
 0x332   : > { %2361 = vrot.lane.b32.xlu1 %v7065_v37, %s6578_s17  ;;  %2312 = vrot.lane.b32.xlu0 %v7067_v46, %s6578_s17 }
 0x334   : > { %v1725_v61 = vpop.permute.xlu1 %1724 }
 0x335   : > { %v6284_v62 = vpop.permute.xlu0 %6283  ;;  %v1730_v15 = vsel %vm1039_vm3, %v1725_v61, 0 }
 0x336   : > { %v6286_v56 = vunpack.i.h.bf16 %v6284_v62  ;;  %v6285_v2 = vunpack.i.l.bf16 %v6284_v62  ;;  %5828 = vmatmul.mubr.msk.bf16.vlgmr.msra.gmra.mrb[16].mxu0 %vm1039_vm3, %v6936_v42  ;;  %5834 = vmatmul.mubr.msk.bf16.vlgmr.msra.gmra.mrb[32].mxu1 %vm1039_vm3, %v6941_v48 }
 0x337   : > { %5838 = vmatpush3.bf16.xpose.msra.mxu0 %v1632_v47  ;;  %5844 = vmatpush3.bf16.xpose.msra.mxu1 %v1681_v63 }
 0x338   : > { %v6289_v3 = vpop.permute.xlu1 %6288  ;;  %v7085_v5 = vpack.c.bf16 %v6286_v56, %v6286_v56  ;;  %v7087_v57 = vpack.c.bf16 %v6285_v2, %v6285_v2  ;;  %5839 = vmatprep.mubr.msk.bf16.mxu0 %vm6576_vm2, %v8171_v12  ;;  %5845 = vmatprep.mubr.msk.bf16.mxu1 %vm6576_vm2, %v8171_v12 }
 0x339   : > { %v6291_v6 = vunpack.i.h.bf16 %v6289_v3  ;;  %v6290_v8 = vunpack.i.l.bf16 %v6289_v3  ;;  %5849 = vmatprep.subr.bf16.mxu0 %v8171_v12  ;;  %5855 = vmatprep.subr.bf16.mxu1 %v8171_v12  ;;  %v1774_v14 = vpop.permute.xlu0 %1773 }
 0x33a   : > { %2459 = vrot.lane.b32.xlu1 %v7085_v5, %s6578_s17  ;;  %2410 = vrot.lane.b32.xlu0 %v7087_v57, %s6578_s17  ;;  %v1779_v17 = vsel %vm1039_vm3, %v1774_v14, 0 }
 0x33b   : > { %v7099_v10 = vpack.c.bf16 %v6291_v6, %v6291_v6  ;;  %v7101_v13 = vpack.c.bf16 %v6290_v8, %v6290_v8 }
 0x33c   : > { %v1872_v18 = vpop.permute.xlu1 %1871 }
 0x33d   : > { %8189 = vst [vmem:[#allocation6_spill] sm:$0xff] %v7099_v10  ;;  %8190 = vst [vmem:[#allocation7_spill] sm:$0xff] %v7101_v13  ;;  %v1823_v21 = vpop.permute.xlu0 %1822  ;;  %v1877_v32 = vsel %vm1039_vm3, %v1872_v18, 0 }
 0x33e   : > { %5840 = vmatmul.mubr.msk.bf16.vlgmr.msra.gmra.mrb[20].mxu0 %vm1039_vm3, %v6950_v29  ;;  %5846 = vmatmul.mubr.msk.bf16.vlgmr.msra.gmra.mrb[36].mxu1 %vm1039_vm3, %v6948_v52  ;;  %v1828_v33 = vsel %vm1039_vm3, %v1823_v21, 0 }
 0x33f   : > { %2557 = vrot.lane.b32.xlu1 %v7099_v10, %s6578_s17  ;;  %2508 = vrot.lane.b32.xlu0 %v7101_v13, %s6578_s17 }
 0x340   : > { %5850 = vmatpush3.bf16.xpose.msra.mxu0 %v1730_v15  ;;  %5856 = vmatpush3.bf16.xpose.msra.mxu1 %v1779_v17 }
 0x341   : > { %5851 = vmatprep.mubr.msk.bf16.mxu0 %vm6576_vm2, %v8171_v12  ;;  %5857 = vmatprep.mubr.msk.bf16.mxu1 %vm6576_vm2, %v8171_v12 }
 0x342   : > { %5861 = vmatprep.subr.bf16.mxu0 %v8171_v12  ;;  %5867 = vmatprep.subr.bf16.mxu1 %v8171_v12 }
 0x343   : > { %3102 = vrot.lane.b32.xlu1 %v6899_v24, %s6580_s21  ;;  %3053 = vrot.lane.b32.xlu0 %v6893_v22, %s6580_s21  ;;  %v1970_v22 = vpop.permute.xlu1 %1969 }
 0x344   : > { %v1975_v24 = vsel %vm1039_vm3, %v1970_v22, 0 }
 0x347   : > { %5852 = vmatmul.mubr.msk.bf16.vlgmr.msra.gmra.mrb[24].mxu0 %vm1039_vm3, %v6957_v55  ;;  %5858 = vmatmul.mubr.msk.bf16.vlgmr.msra.gmra.mrb[40].mxu1 %vm1039_vm3, %v6969_v0 }
 0x348   : > { %3198 = vrot.lane.b32.xlu1 %v6897_v23, %s6580_s21  ;;  %3150 = vrot.lane.b32.xlu0 %v6907_v26, %s6580_s21  ;;  %v1921_v23 = vpop.permute.xlu0 %1920 }
 0x349   : > { %5862 = vmatpush3.bf16.xpose.msra.mxu0 %v1828_v33  ;;  %5868 = vmatpush3.bf16.xpose.msra.mxu1 %v1877_v32  ;;  %v1926_v26 = vsel %vm1039_vm3, %v1921_v23, 0 }
 0x34a   : > { %5863 = vmatprep.mubr.msk.bf16.mxu0 %vm6576_vm2, %v8171_v12  ;;  %5869 = vmatprep.mubr.msk.bf16.mxu1 %vm6576_vm2, %v8171_v12 }
 0x34b   : > { %5873 = vmatprep.subr.bf16.mxu0 %v8171_v12  ;;  %5879 = vmatprep.subr.bf16.mxu1 %v8171_v12 }
 0x34c   : > { %3294 = vrot.lane.b32.xlu1 %v6917_v30, %s6580_s21  ;;  %3246 = vrot.lane.b32.xlu0 %v6905_v25, %s6580_s21  ;;  %v2068_v25 = vpop.permute.xlu1 %2067 }
 0x34d   : > { %v2073_v30 = vsel %vm1039_vm3, %v2068_v25, 0 }
 0x350   : > { %5864 = vmatmul.mubr.msk.bf16.vlgmr.msra.gmra.mrb[28].mxu0 %vm1039_vm3, %v6979_v4  ;;  %5870 = vmatmul.mubr.msk.bf16.vlgmr.msra.gmra.mrb[44].mxu1 %vm1039_vm3, %v6977_v1 }
 0x351   : > { %3390 = vrot.lane.b32.xlu1 %v6915_v27, %s6580_s21  ;;  %3342 = vrot.lane.b32.xlu0 %v6923_v31, %s6580_s21  ;;  %v2019_v27 = vpop.permute.xlu0 %2018 }
 0x352   : > { %5874 = vmatpush3.bf16.xpose.msra.mxu0 %v1926_v26  ;;  %5880 = vmatpush3.bf16.xpose.msra.mxu1 %v1975_v24  ;;  %v2024_v31 = vsel %vm1039_vm3, %v2019_v27, 0 }
 0x353   : > { %5875 = vmatprep.mubr.msk.bf16.mxu0 %vm6576_vm2, %v8171_v12  ;;  %5881 = vmatprep.mubr.msk.bf16.mxu1 %vm6576_vm2, %v8171_v12 }
 0x354   : > { %5885 = vmatprep.subr.bf16.mxu0 %v8171_v12  ;;  %5891 = vmatprep.subr.bf16.mxu1 %v8171_v12 }
 0x355   : > { %3486 = vrot.lane.b32.xlu1 %v6928_v38, %s6580_s21  ;;  %3438 = vrot.lane.b32.xlu0 %v6930_v39, %s6580_s21  ;;  %v2166_v38 = vpop.permute.xlu1 %2165  ;;  %v2117_v39 = vpop.permute.xlu0 %2116 }
 0x359   : > { %5876 = vmatmul.mubr.msk.bf16.vlgmr.msra.gmra.mrb[32].mxu0 %vm1039_vm3, %v6993_v9  ;;  %5882 = vmatmul.mubr.msk.bf16.vlgmr.msra.gmra.mrb[48].mxu1 %vm1039_vm3, %v6991_v7 }
 0x35a   : > { %3582 = vrot.lane.b32.xlu1 %v6941_v48, %s6580_s21  ;;  %3534 = vrot.lane.b32.xlu0 %v6936_v42, %s6580_s21  ;;  %v2171_v42 = vsel %vm1039_vm3, %v2166_v38, 0  ;;  %v2122_v48 = vsel %vm1039_vm3, %v2117_v39, 0 }
 0x35b   : > { %5886 = vmatpush3.bf16.xpose.msra.mxu0 %v2024_v31  ;;  %5892 = vmatpush3.bf16.xpose.msra.mxu1 %v2073_v30 }
 0x35c   : > { %5887 = vmatprep.mubr.msk.bf16.mxu0 %vm6576_vm2, %v8171_v12  ;;  %5893 = vmatprep.mubr.msk.bf16.mxu1 %vm6576_vm2, %v8171_v12 }
 0x35d   : > { %5897 = vmatprep.subr.bf16.mxu0 %v8171_v12  ;;  %5903 = vmatprep.subr.bf16.mxu1 %v8171_v12 }
 0x35e   : > { %3774 = vrot.lane.b32.xlu1 %v6969_v0, %s6580_s21  ;;  %3630 = vrot.lane.b32.xlu0 %v6950_v29, %s6580_s21  ;;  %v1030_v29 = vlaneseq }
 0x362   : > { %5888 = vmatmul.mubr.msk.bf16.vlgmr.msra.gmra.mrb[36].mxu0 %vm1039_vm3, %v7009_v16  ;;  %5894 = vmatmul.mubr.msk.bf16.vlgmr.msra.gmra.mrb[52].mxu1 %vm1039_vm3, %v7005_v11 }
 0x363   : > { %3870 = vrot.lane.b32.xlu1 %v6977_v1, %s6580_s21  ;;  %3726 = vrot.lane.b32.xlu0 %v6957_v55, %s6580_s21 }
 0x364   : > { %5898 = vmatpush3.bf16.xpose.msra.mxu0 %v2122_v48  ;;  %5904 = vmatpush3.bf16.xpose.msra.mxu1 %v2171_v42 }
 0x365   : > { %5899 = vmatprep.mubr.msk.bf16.mxu0 %vm6576_vm2, %v8171_v12  ;;  %5905 = vmatprep.mubr.msk.bf16.mxu1 %vm6576_vm2, %v8171_v12 }
 0x366   : > { %5909 = vmatprep.subr.bf16.mxu0 %v8171_v12  ;;  %5915 = vmatprep.subr.bf16.mxu1 %v8171_v12 }
 0x367   : > { %3966 = vrot.lane.b32.xlu1 %v6991_v7, %s6580_s21  ;;  %3822 = vrot.lane.b32.xlu0 %v6979_v4, %s6580_s21  ;;  %v1031_v7 = vshrl.u32 %v1030_v29, 7 }
 0x36b   : > { %5900 = vmatmul.mubr.msk.bf16.vlgmr.msra.gmra.mrb[40].mxu0 %vm1039_vm3, %v7021_v20  ;;  %5906 = vmatmul.mubr.msk.bf16.vlgmr.msra.gmra.mrb[56].mxu1 %vm1039_vm3, %v7019_v19 }
 0x36c   : > { %4158 = vrot.lane.b32.xlu1 %v7019_v19, %s6580_s21  ;;  %3918 = vrot.lane.b32.xlu0 %v6993_v9, %s6580_s21  ;;  %v1033_v9 = vand.u32 127, %v1030_v29 }
 0x36d   : > { %5911 = vmatprep.mubr.msk.bf16.mxu0 %vm6576_vm2, %v8171_v12  ;;  %5917 = vmatprep.mubr.msk.bf16.mxu1 %vm6576_vm2, %v8171_v12 }
 0x36e   : > { %vm1034_vm4 = vcmp.le.s32.totalorder %v1033_v9, %v1031_v7 }
 0x370   : > { %3678 = vrot.lane.b32.xlu1 %v6948_v52, %s6580_s21  ;;  %4014 = vrot.lane.b32.xlu0 %v7009_v16, %s6580_s21 }
 0x374   : > { %4062 = vrot.lane.b32.xlu1 %v7005_v11, %s6580_s21  ;;  %4110 = vrot.lane.b32.xlu0 %v7021_v20, %s6580_s21  ;;  %v6581_v11 = vmov -1e+30  }
 0x375   : > { %v7223_v43 = vsel %vm1034_vm4, 0.0, %v6581_v11 }
 0x395   : > { %v1080_v55 = vpop.f32.mrb[8].mxu1 }
 0x396   : > { %v5769_v0 = vpop.f32.mrb[9].mxu1  ;;  %v2605_v34 = vmul.f32 0.35355338, %v1080_v55 }
 0x397   : > { %v1083_v1 = vpop.f32.mrb[10].mxu1 }
 0x398   : > { %v5770_v4 = vpop.f32.mrb[11].mxu1  ;;  %v7236_v61 = vadd.f32 %v2605_v34, %v7223_v43 }
 0x39a   : > { %v2669_v3 = vsel %vm1039_vm3, %v7236_v61, -inf }
 0x39d   : > { %v1129_v19 = vpop.f32.mrb[12].mxu1 }
 0x39e   : > { %v2606_v52 = vmul.f32 0.35355338, %v1129_v19  ;;  %v1178_v28 = vpop.f32.mrb[0].mxu0  ;;  %v5775_v35 = vpop.f32.mrb[13].mxu1 }
 0x39f   : > { %v2607_v16 = vmul.f32 0.35355338, %v1178_v28  ;;  %v5781_v40 = vpop.f32.mrb[1].mxu0  ;;  %v1132_v41 = vpop.f32.mrb[14].mxu1 }
 0x3a0   : > { %v1181_v20 = vpop.f32.mrb[2].mxu0  ;;  %v2264_v44 = vpop.permute.xlu1 %2263  ;;  %v7226_v49 = vadd.f32 %v2606_v52, %v7223_v43 }
 0x3a1   : > { %v2269_v50 = vsel %vm1039_vm3, %v2264_v44, 0  ;;  %v2215_v51 = vpop.permute.xlu0 %2214  ;;  %v5776_v53 = vpop.f32.mrb[15].mxu1  ;;  %v7230_v54 = vadd.f32 %v2607_v16, %v7223_v43 }
 0x3a2   : > { %v2220_v58 = vsel %vm1039_vm3, %v2215_v51, 0  ;;  %v5782_v59 = vpop.f32.mrb[3].mxu0  ;;  %5916 = vmatpush3.bf16.xpose.msra.mxu1 %v2269_v50  ;;  %v2672_v60 = vsel %vm1039_vm3, %v7226_v49, -inf }
 0x3a3   : > { %5910 = vmatpush3.bf16.xpose.msra.mxu0 %v2220_v58  ;;  %2673 = vmax.xlane.f32.xlu1 %v2672_v60  ;;  %v2675_v62 = vsel %vm1039_vm3, %v7230_v54, -inf }
 0x3a4   : > { %2676 = vmax.xlane.f32.xlu0 %v2675_v62  ;;  %5921 = vmatprep.subr.bf16.mxu0 %v8171_v12  ;;  %v2362_v63 = vpop.permute.xlu1 %2361 }
 0x3a5   : > { %v2313_v47 = vpop.permute.xlu0 %2312  ;;  %5927 = vmatprep.subr.bf16.mxu1 %v8171_v12  ;;  %v2367_v21 = vsel %vm1039_vm3, %v2362_v63, 0 }
 0x3a6   : > { %v1227_v56 = vpop.f32.mrb[16].mxu1  ;;  %v1276_v2 = vpop.f32.mrb[4].mxu0  ;;  %v2318_v23 = vsel %vm1039_vm3, %v2313_v47, 0 }
 0x3a7   : > { %v2608_v6 = vmul.f32 0.35355338, %v1227_v56  ;;  %v2609_v8 = vmul.f32 0.35355338, %v1276_v2  ;;  %v5787_v14 = vpop.f32.mrb[17].mxu1  ;;  %v5793_v15 = vpop.f32.mrb[5].mxu0 }
 0x3a8   : > { %v1230_v17 = vpop.f32.mrb[18].mxu1  ;;  %v1279_v18 = vpop.f32.mrb[6].mxu0  ;;  %2670 = vmax.xlane.f32.xlu0 %v2669_v3 }
 0x3a9   : > { %v5788_v32 = vpop.f32.mrb[19].mxu1  ;;  %v5794_v33 = vpop.f32.mrb[7].mxu0  ;;  %5918 = vmatmul.mubr.msk.bf16.vlgmr.msra.gmra.mrb[60].mxu1 %vm1039_vm3, %v7051_v45  ;;  %v7248_v22 = vadd.f32 %v2609_v8, %v7223_v43  ;;  %v7258_v26 = vadd.f32 %v2608_v6, %v7223_v43 }
 0x3aa   : > { %5912 = vmatmul.mubr.msk.bf16.vlgmr.msra.gmra.mrb[44].mxu0 %vm1039_vm3, %v7053_v36  ;;  %5928 = vmatpush3.bf16.xpose.msra.mxu1 %v2367_v21 }
 0x3ab   : > { %5922 = vmatpush3.bf16.xpose.msra.mxu0 %v2318_v23  ;;  %v2681_v24 = vsel %vm1039_vm3, %v7248_v22, -inf  ;;  %5929 = vmatprep.mubr.msk.bf16.mxu1 %vm6576_vm2, %v8171_v12  ;;  %v2678_v42 = vsel %vm1039_vm3, %v7258_v26, -inf }
 0x3ac   : > { %2682 = vmax.xlane.f32.xlu0 %v2681_v24  ;;  %5923 = vmatprep.mubr.msk.bf16.mxu0 %vm6576_vm2, %v8171_v12  ;;  %v2460_v25 = vpop.permute.xlu1 %2459  ;;  %v2411_v27 = vpop.permute.xlu0 %2410 }
 0x3ad   : > { %5933 = vmatprep.subr.bf16.mxu0 %v8171_v12  ;;  %5939 = vmatprep.subr.bf16.mxu1 %v8171_v12  ;;  %v2465_v0 = vsel %vm1039_vm3, %v2460_v25, 0  ;;  %v2416_v7 = vsel %vm1039_vm3, %v2411_v27, 0 }
 0x3ae   : > { %v1325_v30 = vpop.f32.mrb[20].mxu1 }
 0x3af   : > { %v2610_v31 = vmul.f32 0.35355338, %v1325_v30  ;;  %v1374_v38 = vpop.f32.mrb[8].mxu0  ;;  %v5799_v39 = vpop.f32.mrb[21].mxu1 }
 0x3b0   : > { %v2611_v48 = vmul.f32 0.35355338, %v1374_v38  ;;  %v5805_v29 = vpop.f32.mrb[9].mxu0  ;;  %v1328_v55 = vpop.f32.mrb[22].mxu1  ;;  %2679 = vmax.xlane.f32.xlu0 %v2678_v42 }
 0x3b1   : > { %v1377_v1 = vpop.f32.mrb[10].mxu0  ;;  %5930 = vmatmul.mubr.msk.bf16.vlgmr.msra.gmra.mrb[64].mxu1 %vm1039_vm3, %v7065_v37  ;;  %v7270_v4 = vadd.f32 %v2610_v31, %v7223_v43  ;;  %v5800_v9 = vpop.f32.mrb[23].mxu1 }
 0x3b2   : > { %5924 = vmatmul.mubr.msk.bf16.vlgmr.msra.gmra.mrb[48].mxu0 %vm1039_vm3, %v7067_v46  ;;  %5940 = vmatpush3.bf16.xpose.msra.mxu1 %v2465_v0  ;;  %v7276_v19 = vadd.f32 %v2611_v48, %v7223_v43  ;;  %v5806_v34 = vpop.f32.mrb[11].mxu0  ;;  %v2558_v35 = vpop.permute.xlu1 %2557 }
 0x3b3   : > { %5934 = vmatpush3.bf16.xpose.msra.mxu0 %v2416_v7  ;;  %v2684_v52 = vsel %vm1039_vm3, %v7270_v4, -inf  ;;  %5941 = vmatprep.mubr.msk.bf16.mxu1 %vm6576_vm2, %v8171_v12  ;;  %v2509_v40 = vpop.permute.xlu0 %2508  ;;  %v2563_v44 = vsel %vm1039_vm3, %v2558_v35, 0 }
 0x3b4   : > { %2685 = vmax.xlane.f32.xlu1 %v2684_v52  ;;  %v2687_v28 = vsel %vm1039_vm3, %v7276_v19, -inf  ;;  %5935 = vmatprep.mubr.msk.bf16.mxu0 %vm6576_vm2, %v8171_v12  ;;  %v2514_v53 = vsel %vm1039_vm3, %v2509_v40, 0 }
 0x3b5   : > { %2688 = vmax.xlane.f32.xlu0 %v2687_v28  ;;  %5945 = vmatprep.subr.bf16.mxu0 %v8171_v12 }
 0x3b6   : > { %v1423_v16 = vpop.f32.mrb[24].mxu1  ;;  %5951 = vmatprep.subr.bf16.mxu1 %v8171_v12  ;;  %v3103_v59 = vpop.permute.xlu1 %3102 }
 0x3b7   : > { %v2612_v41 = vmul.f32 0.35355338, %v1423_v16  ;;  %v5811_v11 = vpop.f32.mrb[25].mxu1  ;;  %v3054_v60 = vpop.permute.xlu0 %3053  ;;  %v3108_v62 = vsel %vm3058_vm5, %v3103_v59, 0 }
 0x3b8   : > { %v1426_v20 = vpop.f32.mrb[26].mxu1  ;;  %v3060_v63 = vsel %vm3058_vm5, %v3054_v60, 0 }
 0x3b9   : > { %v5812_v50 = vpop.f32.mrb[27].mxu1  ;;  %5942 = vmatmul.mubr.msk.bf16.vlgmr.msra.gmra.mrb[68].mxu1 %vm1039_vm3, %v7085_v5  ;;  %v7292_v51 = vadd.f32 %v2612_v41, %v7223_v43 }
 0x3ba   : > { %5936 = vmatmul.mubr.msk.bf16.vlgmr.msra.gmra.mrb[52].mxu0 %vm1039_vm3, %v7087_v57  ;;  %5952 = vmatpush3.bf16.xpose.msra.mxu1 %v2563_v44  ;;  %v7319_v56 = vpop.permute.xlu1 %3198 }
 0x3bb   : > { %5946 = vmatpush3.bf16.xpose.msra.mxu0 %v2514_v53  ;;  %v2690_v58 = vsel %vm1039_vm3, %v7292_v51, -inf  ;;  %5953 = vmatprep.mubr.msk.bf16.mxu1 %vm6576_vm2, %v8171_v12  ;;  %v7317_v47 = vpop.permute.xlu0 %3150 }
 0x3bc   : > { %2691 = vmax.xlane.f32.xlu1 %v2690_v58  ;;  %5947 = vmatprep.mubr.msk.bf16.mxu0 %vm6576_vm2, %v8171_v12 }
 0x3bd   : > { %5957 = vmatprep.subr.bf16.mxu0 %v8171_v12  ;;  %5963 = vmatprep.subr.bf16.mxu1 %v8171_v12 }
 0x3be   : > { %v7323_v3 = vpop.permute.xlu1 %3294 }
 0x3bf   : > { %v7321_v2 = vpop.permute.xlu0 %3246 }
 0x3c1   : > { %5954 = vmatmul.mubr.msk.bf16.vlgmr.msra.gmra.mrb[72].mxu1 %vm1039_vm3, %v7099_v10 }
 0x3c2   : > { %5948 = vmatmul.mubr.msk.bf16.vlgmr.msra.gmra.mrb[56].mxu0 %vm1039_vm3, %v7101_v13  ;;  %5964 = vmatpush3.bf16.msra.mxu1 %v3108_v62 }
 0x3c3   : > { %5958 = vmatpush3.bf16.msra.mxu0 %v3060_v63  ;;  %5959 = vmatprep.mubr.msk.bf16.mxu0 %vm6576_vm2, %v8171_v12  ;;  %v7325_v6 = vpop.permute.xlu0 %3342  ;;  %v7327_v8 = vpop.permute.xlu1 %3390 }
 0x3c4   : > { %5969 = vmatprep.subr.bf16.mxu0 %v8171_v12  ;;  %5965 = vmatprep.mubr.msk.bf16.mxu1 %vm6576_vm2, %v8171_v12 }
 0x3c5   : > { %5975 = vmatprep.subr.bf16.mxu1 %v8171_v12 }
 0x3c7   : > { %v7329_v14 = vpop.permute.xlu0 %3438  ;;  %v7341_v42 = vpop.permute.xlu1 %3486 }
 0x3cc   : > { %v7343_v48 = vpop.permute.xlu0 %3534  ;;  %v7355_v20 = vpop.permute.xlu1 %3582 }
 0x3d0   : > { %v7357_v44 = vpop.permute.xlu0 %3630 }
 0x400   : > { %v1472_v15 = vpop.f32.mrb[12].mxu0  ;;  %v1521_v17 = vpop.f32.mrb[28].mxu1 }
 0x401   : > { %v2613_v18 = vmul.f32 0.35355338, %v1472_v15  ;;  %v2614_v21 = vmul.f32 0.35355338, %v1521_v17  ;;  %v5817_v32 = vpop.f32.mrb[13].mxu0  ;;  %v5823_v33 = vpop.f32.mrb[29].mxu1 }
 0x402   : > { %v1475_v23 = vpop.f32.mrb[14].mxu0  ;;  %v1524_v24 = vpop.f32.mrb[30].mxu1 }
 0x403   : > { %v5818_v25 = vpop.f32.mrb[15].mxu0  ;;  %v5824_v27 = vpop.f32.mrb[31].mxu1  ;;  %v7332_v30 = vadd.f32 %v2614_v21, %v7223_v43  ;;  %v7335_v31 = vadd.f32 %v2613_v18, %v7223_v43 }
 0x404   : > { %v7369_v24 = vpop.permute.xlu1 %3774  ;;  %v7371_v25 = vpop.permute.xlu0 %3726 }
 0x405   : > { %v2696_v38 = vsel %vm1039_vm3, %v7332_v30, -inf  ;;  %v2693_v39 = vsel %vm1039_vm3, %v7335_v31, -inf }
 0x406   : > { %2697 = vmax.xlane.f32.xlu1 %v2696_v38  ;;  %2694 = vmax.xlane.f32.xlu0 %v2693_v39 }
 0x409   : > { %v1570_v29 = vpop.f32.mrb[16].mxu0  ;;  %v1619_v55 = vpop.f32.mrb[32].mxu1 }
 0x40a   : > { %v2615_v0 = vmul.f32 0.35355338, %v1570_v29  ;;  %v2616_v1 = vmul.f32 0.35355338, %v1619_v55  ;;  %v5829_v7 = vpop.f32.mrb[17].mxu0  ;;  %v5835_v9 = vpop.f32.mrb[33].mxu1 }
 0x40b   : > { %v1573_v34 = vpop.f32.mrb[18].mxu0  ;;  %v1622_v52 = vpop.f32.mrb[34].mxu1 }
 0x40c   : > { %v5830_v28 = vpop.f32.mrb[19].mxu0  ;;  %v5836_v35 = vpop.f32.mrb[35].mxu1  ;;  %v7346_v16 = vadd.f32 %v2616_v1, %v7223_v43  ;;  %v7349_v40 = vadd.f32 %v2615_v0, %v7223_v43 }
 0x40d   : > { %v7378_v28 = vpop.permute.xlu1 %3870  ;;  %v7380_v35 = vpop.permute.xlu0 %3822 }
 0x40e   : > { %v2702_v41 = vsel %vm1039_vm3, %v7346_v16, -inf  ;;  %v2699_v11 = vsel %vm1039_vm3, %v7349_v40, -inf  ;;  %8191 = vst [vmem:[#allocation8_spill] sm:$0xff] %v7378_v28  ;;  %8192 = vst [vmem:[#allocation9_spill] sm:$0xff] %v7380_v35 }
 0x40f   : > { %2703 = vmax.xlane.f32.xlu1 %v2702_v41  ;;  %2700 = vmax.xlane.f32.xlu0 %v2699_v11 }
 0x411   : > { %v1668_v50 = vpop.f32.mrb[20].mxu0  ;;  %v1717_v53 = vpop.f32.mrb[36].mxu1 }
 0x412   : > { %v2617_v58 = vmul.f32 0.35355338, %v1668_v50  ;;  %v2618_v59 = vmul.f32 0.35355338, %v1717_v53  ;;  %v5841_v60 = vpop.f32.mrb[21].mxu0  ;;  %v5847_v62 = vpop.f32.mrb[37].mxu1 }
 0x413   : > { %v1671_v63 = vpop.f32.mrb[22].mxu0  ;;  %v1720_v15 = vpop.f32.mrb[38].mxu1 }
 0x414   : > { %v5842_v17 = vpop.f32.mrb[23].mxu0  ;;  %v5848_v18 = vpop.f32.mrb[39].mxu1  ;;  %v7360_v21 = vadd.f32 %v2618_v59, %v7223_v43  ;;  %v7363_v32 = vadd.f32 %v2617_v58, %v7223_v43 }
 0x415   : > { %v7384_v63 = vpop.permute.xlu1 %3966  ;;  %v7386_v15 = vpop.permute.xlu0 %3918 }
 0x416   : > { %v2708_v33 = vsel %vm1039_vm3, %v7360_v21, -inf  ;;  %v2705_v23 = vsel %vm1039_vm3, %v7363_v32, -inf  ;;  %8193 = vst [vmem:[#allocation10_spill] sm:$0xff] %v7384_v63  ;;  %8194 = vst [vmem:[#allocation11_spill] sm:$0xff] %v7386_v15 }
 0x417   : > { %2709 = vmax.xlane.f32.xlu1 %v2708_v33  ;;  %2706 = vmax.xlane.f32.xlu0 %v2705_v23 }
 0x41a   : > { %v1766_v27 = vpop.f32.mrb[24].mxu0  ;;  %v1815_v38 = vpop.f32.mrb[40].mxu1 }
 0x41b   : > { %v2619_v39 = vmul.f32 0.35355338, %v1766_v27  ;;  %v5853_v29 = vpop.f32.mrb[25].mxu0  ;;  %v5859_v55 = vpop.f32.mrb[41].mxu1 }
 0x41c   : > { %v1769_v0 = vpop.f32.mrb[26].mxu0  ;;  %v1818_v1 = vpop.f32.mrb[42].mxu1 }
 0x41d   : > { %v7374_v7 = vadd.f32 %v2619_v39, %v7223_v43  ;;  %v5854_v9 = vpop.f32.mrb[27].mxu0  ;;  %v5860_v34 = vpop.f32.mrb[43].mxu1 }
 0x41e   : > { %v7392_v0 = vpop.permute.xlu0 %4014 }
 0x41f   : > { %v2711_v52 = vsel %vm1039_vm3, %v7374_v7, -inf  ;;  %8195 = vst [vmem:[#allocation12_spill] sm:$0xff] %v7392_v0 }
 0x420   : > { %2712 = vmax.xlane.f32.xlu0 %v2711_v52 }
 0x423   : > { %v1864_v41 = vpop.f32.mrb[28].mxu0  ;;  %v1913_v11 = vpop.f32.mrb[44].mxu1 }
 0x424   : > { %v5865_v50 = vpop.f32.mrb[29].mxu0  ;;  %v5871_v53 = vpop.f32.mrb[45].mxu1 }
 0x425   : > { %v1867_v58 = vpop.f32.mrb[30].mxu0  ;;  %v1916_v59 = vpop.f32.mrb[46].mxu1 }
 0x426   : > { %v5866_v60 = vpop.f32.mrb[31].mxu0  ;;  %v5872_v62 = vpop.f32.mrb[47].mxu1 }
 0x427   : > { %v7400_v59 = vpop.permute.xlu0 %4110 }
 0x428   : > { %4254 = vrot.lane.b32.xlu1 %v7051_v45, %s6580_s21  ;;  %v7394_v45 = vpop.permute.xlu1 %4158  ;;  %8197 = vst [vmem:[#allocation14_spill] sm:$0xff] %v7400_v59 }
 0x429   : > { %8196 = vst [vmem:[#allocation13_spill] sm:$0xff] %v7394_v45  ;;  %v2621_v45 = vmul.f32 0.35355338, %v1864_v41 }
 0x42c   : > { %v1962_v17 = vpop.f32.mrb[32].mxu0  ;;  %v2011_v18 = vpop.f32.mrb[48].mxu1  ;;  %4302 = vrot.lane.b32.xlu1 %v7067_v46, %s6580_s21 }
 0x42d   : > { %v5877_v33 = vpop.f32.mrb[33].mxu0  ;;  %v5883_v23 = vpop.f32.mrb[49].mxu1  ;;  %v2624_v41 = vmul.f32 0.35355338, %v2011_v18 }
 0x42e   : > { %v1965_v27 = vpop.f32.mrb[34].mxu0  ;;  %v2014_v39 = vpop.f32.mrb[50].mxu1 }
 0x42f   : > { %v5878_v29 = vpop.f32.mrb[35].mxu0  ;;  %v5884_v55 = vpop.f32.mrb[51].mxu1 }
 0x430   : > { %4350 = vrot.lane.b32.xlu1 %v7065_v37, %s6580_s21  ;;  %v7402_v60 = vpop.permute.xlu1 %3678 }
 0x431   : > { %v2677_v37 = vpop.xlane.xlu0 %2676 }
 0x435   : > { %v7396_v1 = vpop.f32.mrb[36].mxu0  ;;  %v2109_v9 = vpop.f32.mrb[52].mxu1 }
 0x436   : > { %v5889_v34 = vpop.f32.mrb[37].mxu0  ;;  %v5895_v52 = vpop.f32.mrb[53].mxu1  ;;  %4206 = vrot.lane.b32.xlu0 %v7053_v36, %s6580_s21 }
 0x437   : > { %v2063_v46 = vpop.f32.mrb[38].mxu0  ;;  %v2112_v50 = vpop.f32.mrb[54].mxu1 }
 0x438   : > { %v5890_v53 = vpop.f32.mrb[39].mxu0  ;;  %v5896_v58 = vpop.f32.mrb[55].mxu1  ;;  %v2767_v46 = vsub.f32 %v7230_v54, %v2677_v37  ;;  %v2620_v50 = vmul.f32 0.35355338, %v1815_v38 }
 0x439   : > { %v2671_v52 = vpop.xlane.xlu0 %2670  ;;  %v7406_v36 = vpop.permute.xlu1 %4062 }
 0x43a   : > { %8198 = vst [vmem:[#allocation15_spill] sm:$0xff] %v7406_v36  ;;  %v2801_v58 = vmul.f32 1.442695, %v2767_v46  ;;  %v2765_v12 = vsub.f32 %v7236_v61, %v2671_v52  ;;  %v7411_v0 = vadd.f32 %v2620_v50, %v7223_v43 }
 0x43c   : > { %6382 = vpow2.f32 %v2801_v58  ;;  %v2714_v37 = vsel %vm1039_vm3, %v7411_v0, -inf  ;;  %v2625_v58 = vmul.f32 0.35355338, %v7396_v1 }
 0x43d   : > { %v2674_v53 = vpop.xlane.xlu1 %2673  ;;  %v2683_v59 = vpop.xlane.xlu0 %2682 }
 0x43e   : > { %v7404_v62 = vpop.f32.mrb[40].mxu0  ;;  %v2207_v33 = vpop.f32.mrb[56].mxu1 }
 0x43f   : > { %v5901_v23 = vpop.f32.mrb[41].mxu0  ;;  %v5907_v27 = vpop.f32.mrb[57].mxu1 }
 0x440   : > { %v2161_v39 = vpop.f32.mrb[42].mxu0  ;;  %v2210_v29 = vpop.f32.mrb[58].mxu1  ;;  %v2766_v23 = vsub.f32 %v7226_v49, %v2674_v53  ;;  %v2622_v27 = vmul.f32 0.35355338, %v1913_v11 }
 0x441   : > { %v5902_v55 = vpop.f32.mrb[43].mxu0  ;;  %v5908_v34 = vpop.f32.mrb[59].mxu1  ;;  %v2797_v39 = vmul.f32 1.442695, %v2765_v12  ;;  %v7415_v29 = vadd.f32 %v2621_v45, %v7223_v43  ;;  %v2626_v45 = vmul.f32 0.35355338, %v2109_v9 }
 0x442   : > { %v2623_v55 = vmul.f32 0.35355338, %v1962_v17  ;;  %v2799_v54 = vmul.f32 1.442695, %v2766_v23  ;;  %v2680_v38 = vpop.xlane.xlu0 %2679  ;;  %v7420_v61 = vadd.f32 %v2622_v27, %v7223_v43  ;;  %v2769_v34 = vsub.f32 %v7248_v22, %v2683_v59 }
 0x443   : > { %6384 = vpow2.f32 %v2797_v39  ;;  %v2717_v12 = vsel %vm1039_vm3, %v7415_v29, -inf  ;;  %v2768_v11 = vsub.f32 %v7258_v26, %v2680_v38  ;;  %v7430_v17 = vadd.f32 %v2624_v41, %v7223_v43 }
 0x444   : > { %v7424_v49 = vadd.f32 %v2623_v55, %v7223_v43  ;;  %6386 = vpow2.f32 %v2799_v54  ;;  %v2805_v52 = vmul.f32 1.442695, %v2769_v34  ;;  %v2720_v18 = vsel %vm1039_vm3, %v7420_v61, -inf }
 0x445   : > { %v2803_v50 = vmul.f32 1.442695, %v2768_v11  ;;  %v7439_v53 = vadd.f32 %v2626_v45, %v7223_v43  ;;  %v2726_v9 = vsel %vm1039_vm3, %v7430_v17, -inf  ;;  %v2628_v39 = vmul.f32 0.35355338, %v2207_v33 }
 0x446   : > { %v2689_v22 = vpop.xlane.xlu0 %2688  ;;  %v2723_v59 = vsel %vm1039_vm3, %v7424_v49, -inf  ;;  %v7436_v46 = vpop.eup %6382  ;;  %6388 = vpow2.f32 %v2805_v52  ;;  %v2627_v41 = vmul.f32 0.35355338, %v7404_v62 }
 0x447   : > { %v2771_v26 = vsub.f32 %v7276_v19, %v2689_v22  ;;  %v2867_v23 = vsel %vm1039_vm3, %v7436_v46, 0.0  ;;  %6390 = vpow2.f32 %v2803_v50  ;;  %v2732_v54 = vsel %vm1039_vm3, %v7439_v53, -inf  ;;  %v2686_v50 = vpop.xlane.xlu1 %2685 }
 0x448   : > { %v7454_v19 = vadd.f32 %v2625_v58, %v7223_v43  ;;  %v7473_v52 = vadd.f32 %v2627_v41, %v7223_v43 }
 0x449   : > { %v2809_v55 = vmul.f32 1.442695, %v2771_v26  ;;  %v2770_v26 = vsub.f32 %v7270_v4, %v2686_v50 }
 0x44a   : > { %v2729_v34 = vsel %vm1039_vm3, %v7454_v19, -inf  ;;  %v2735_v22 = vsel %vm1039_vm3, %v7473_v52, -inf }
 0x44b   : > { %6392 = vpow2.f32 %v2809_v55  ;;  %v2807_v58 = vmul.f32 1.442695, %v2770_v26 }
 0x44d   : > { %v7447_v27 = vpop.eup %6384  ;;  %6394 = vpow2.f32 %v2807_v58 }
 0x44e   : > { %v7451_v38 = vpop.eup %6386  ;;  %v2861_v1 = vsel %vm1039_vm3, %v7447_v27, 0.0 }
 0x44f   : > { %v2864_v33 = vsel %vm1039_vm3, %v7451_v38, 0.0 }
 0x454   : > { %2715 = vmax.xlane.f32.xlu1 %v2714_v37  ;;  %v7459_v37 = vadd.f32 %v2628_v39, %v7223_v43 }
 0x455   : > { %2718 = vmax.xlane.f32.xlu0 %v2717_v12  ;;  %v7466_v12 = vpop.eup %6388 }
 0x456   : > { %v2738_v11 = vsel %vm1039_vm3, %v7459_v37, -inf  ;;  %v7470_v45 = vpop.eup %6390 }
 0x457   : > { %v2870_v62 = vsel %vm1039_vm3, %v7470_v45, 0.0 }
 0x458   : > { %2721 = vmax.xlane.f32.xlu1 %v2720_v18  ;;  %v2873_v18 = vsel %vm1039_vm3, %v7466_v12, 0.0 }
 0x459   : > { %2724 = vmax.xlane.f32.xlu0 %v2723_v59  ;;  %v7481_v59 = vpop.eup %6392 }
 0x45c   : > { %2727 = vmax.xlane.f32.xlu1 %v2726_v9  ;;  %v2879_v9 = vsel %vm1039_vm3, %v7481_v59, 0.0 }
 0x45d   : > { %2868 = vadd.xlane.f32.xlu0 %v2867_v23  ;;  %v2692_v23 = vpop.xlane.xlu1 %2691 }
 0x45e   : > { %v2772_v39 = vsub.f32 %v7292_v51, %v2692_v23 }
 0x460   : > { %2733 = vmax.xlane.f32.xlu1 %v2732_v54  ;;  %v2811_v55 = vmul.f32 1.442695, %v2772_v39 }
 0x461   : > { %2862 = vadd.xlane.f32.xlu0 %v2861_v1 }
 0x462   : > { %6396 = vpow2.f32 %v2811_v55 }
 0x464   : > { %2865 = vadd.xlane.f32.xlu1 %v2864_v33 }
 0x465   : > { %2730 = vmax.xlane.f32.xlu0 %v2729_v34 }
 0x468   : > { %2739 = vmax.xlane.f32.xlu1 %v2738_v11 }
 0x469   : > { %2874 = vadd.xlane.f32.xlu0 %v2873_v18 }
 0x46c   : > { %2871 = vadd.xlane.f32.xlu1 %v2870_v62 }
 0x46d   : > { %2736 = vmax.xlane.f32.xlu0 %v2735_v22 }
 0x471   : > { %2880 = vadd.xlane.f32.xlu0 %v2879_v9  ;;  %v7495_v9 = vpop.eup %6394 }
 0x472   : > { %v2876_v55 = vsel %vm1039_vm3, %v7495_v9, 0.0 }
 0x47c   : > { %v2305_v54 = vpop.f32.mrb[60].mxu1 }
 0x47d   : > { %v2256_v1 = vpop.f32.mrb[44].mxu0  ;;  %v2630_v33 = vmul.f32 0.35355338, %v2305_v54  ;;  %v5919_v41 = vpop.f32.mrb[61].mxu1 }
 0x47e   : > { %v2629_v34 = vmul.f32 0.35355338, %v2256_v1  ;;  %v5913_v11 = vpop.f32.mrb[45].mxu0  ;;  %v2308_v18 = vpop.f32.mrb[62].mxu1 }
 0x47f   : > { %v7488_v62 = vadd.f32 %v2630_v33, %v7223_v43  ;;  %v2259_v4 = vpop.f32.mrb[46].mxu0  ;;  %v5920_v22 = vpop.f32.mrb[63].mxu1 }
 0x480   : > { %v7491_v50 = vadd.f32 %v2629_v34, %v7223_v43  ;;  %v5914_v26 = vpop.f32.mrb[47].mxu0 }
 0x481   : > { %v2744_v51 = vsel %vm1039_vm3, %v7488_v62, -inf }
 0x482   : > { %2745 = vmax.xlane.f32.xlu1 %v2744_v51  ;;  %v2741_v58 = vsel %vm1039_vm3, %v7491_v50, -inf }
 0x483   : > { %2742 = vmax.xlane.f32.xlu0 %v2741_v58  ;;  %v7509_v58 = vpop.eup %6396 }
 0x484   : > { %v2403_v23 = vpop.f32.mrb[64].mxu1 }
 0x485   : > { %v2354_v39 = vpop.f32.mrb[48].mxu0  ;;  %v2632_v54 = vmul.f32 0.35355338, %v2403_v23  ;;  %v5931_v1 = vpop.f32.mrb[65].mxu1 }
 0x486   : > { %v2631_v33 = vmul.f32 0.35355338, %v2354_v39  ;;  %v5925_v41 = vpop.f32.mrb[49].mxu0  ;;  %v2406_v34 = vpop.f32.mrb[66].mxu1  ;;  %2877 = vadd.xlane.f32.xlu1 %v2876_v55 }
 0x487   : > { %v7502_v11 = vadd.f32 %v2632_v54, %v7223_v43  ;;  %v2357_v18 = vpop.f32.mrb[50].mxu0  ;;  %v5932_v4 = vpop.f32.mrb[67].mxu1  ;;  %v2882_v41 = vsel %vm1039_vm3, %v7509_v58, 0.0 }
 0x488   : > { %v7505_v22 = vadd.f32 %v2631_v33, %v7223_v43  ;;  %v5926_v26 = vpop.f32.mrb[51].mxu0 }
 0x489   : > { %v2750_v51 = vsel %vm1039_vm3, %v7502_v11, -inf }
 0x48a   : > { %2751 = vmax.xlane.f32.xlu1 %v2750_v51  ;;  %v2747_v23 = vsel %vm1039_vm3, %v7505_v22, -inf }
 0x48b   : > { %2748 = vmax.xlane.f32.xlu0 %v2747_v23 }
 0x48c   : > { %v2501_v39 = vpop.f32.mrb[68].mxu1 }
 0x48d   : > { %v2452_v1 = vpop.f32.mrb[52].mxu0  ;;  %v2634_v54 = vmul.f32 0.35355338, %v2501_v39  ;;  %v5943_v55 = vpop.f32.mrb[69].mxu1 }
 0x48e   : > { %v2633_v33 = vmul.f32 0.35355338, %v2452_v1  ;;  %v5937_v34 = vpop.f32.mrb[53].mxu0  ;;  %v2504_v18 = vpop.f32.mrb[70].mxu1  ;;  %2883 = vadd.xlane.f32.xlu1 %v2882_v41 }
 0x48f   : > { %v7516_v4 = vadd.f32 %v2634_v54, %v7223_v43  ;;  %v2455_v26 = vpop.f32.mrb[54].mxu0  ;;  %v5944_v51 = vpop.f32.mrb[71].mxu1 }
 0x490   : > { %v7519_v36 = vadd.f32 %v2633_v33, %v7223_v43  ;;  %v5938_v23 = vpop.f32.mrb[55].mxu0 }
 0x491   : > { %v2756_v39 = vsel %vm1039_vm3, %v7516_v4, -inf }
 0x492   : > { %2757 = vmax.xlane.f32.xlu1 %v2756_v39  ;;  %v2753_v55 = vsel %vm1039_vm3, %v7519_v36, -inf }
 0x493   : > { %2754 = vmax.xlane.f32.xlu0 %v2753_v55  ;;  %v2698_v1 = vpop.xlane.xlu1 %2697  ;;  %v2695_v34 = vpop.xlane.xlu0 %2694 }
 0x494   : > { %v2599_v41 = vpop.f32.mrb[72].mxu1  ;;  %v2774_v54 = vsub.f32 %v7332_v30, %v2698_v1  ;;  %v2773_v18 = vsub.f32 %v7335_v31, %v2695_v34 }
 0x495   : > { %v2636_v26 = vmul.f32 0.35355338, %v2599_v41  ;;  %v2550_v51 = vpop.f32.mrb[56].mxu0  ;;  %v5955_v33 = vpop.f32.mrb[73].mxu1 }
 0x496   : > { %v2815_v63 = vmul.f32 1.442695, %v2774_v54  ;;  %v2635_v23 = vmul.f32 0.35355338, %v2550_v51  ;;  %v2813_v15 = vmul.f32 1.442695, %v2773_v18 }
 0x497   : > { %v7528_v28 = vadd.f32 %v2636_v26, %v7223_v43  ;;  %v5949_v39 = vpop.f32.mrb[57].mxu0  ;;  %v2602_v13 = vpop.f32.mrb[74].mxu1 }
 0x498   : > { %6398 = vpow2.f32 %v2815_v63  ;;  %v7531_v55 = vadd.f32 %v2635_v23, %v7223_v43  ;;  %v2553_v10 = vpop.f32.mrb[58].mxu0  ;;  %v5956_v35 = vpop.f32.mrb[75].mxu1 }
 0x499   : > { %6400 = vpow2.f32 %v2813_v15  ;;  %v5950_v30 = vpop.f32.mrb[59].mxu0  ;;  %v2762_v31 = vsel %vm1039_vm3, %v7528_v28, -inf }
 0x49a   : > { %v2759_v1 = vsel %vm1039_vm3, %v7531_v55, -inf  ;;  %2763 = vmax.xlane.f32.xlu0 %v2762_v31 }
 0x49b   : > { %2760 = vmax.xlane.f32.xlu1 %v2759_v1 }
 0x49c   : > { %v2704_v34 = vpop.xlane.xlu1 %2703  ;;  %v2701_v41 = vpop.xlane.xlu0 %2700 }
 0x49d   : > { %v2776_v13 = vsub.f32 %v7346_v16, %v2704_v34  ;;  %v2775_v63 = vsub.f32 %v7349_v40, %v2701_v41 }
 0x49f   : > { %v2819_v43 = vmul.f32 1.442695, %v2776_v13  ;;  %v2817_v54 = vmul.f32 1.442695, %v2775_v63 }
 0x4a1   : > { %6402 = vpow2.f32 %v2819_v43 }
 0x4a2   : > { %v7539_v10 = vpop.eup %6398  ;;  %6404 = vpow2.f32 %v2817_v54 }
 0x4a3   : > { %v7541_v35 = vpop.eup %6400  ;;  %v2888_v15 = vsel %vm1039_vm3, %v7539_v10, 0.0 }
 0x4a4   : > { %v2710_v18 = vpop.xlane.xlu1 %2709  ;;  %v2707_v26 = vpop.xlane.xlu0 %2706  ;;  %2889 = vadd.xlane.f32.xlu1 %v2888_v15  ;;  %v2885_v51 = vsel %vm1039_vm3, %v7541_v35, 0.0 }
 0x4a5   : > { %v2778_v16 = vsub.f32 %v7360_v21, %v2710_v18  ;;  %v2777_v40 = vsub.f32 %v7363_v32, %v2707_v26  ;;  %2886 = vadd.xlane.f32.xlu0 %v2885_v51 }
 0x4a7   : > { %v2823_v33 = vmul.f32 1.442695, %v2778_v16  ;;  %v2821_v23 = vmul.f32 1.442695, %v2777_v40 }
 0x4a8   : > { %v7570_v15 = vpop.permute.xlu1 %4254 }
 0x4a9   : > { %6406 = vpow2.f32 %v2823_v33 }
 0x4aa   : > { %6408 = vpow2.f32 %v2821_v23 }
 0x4ab   : > { %v7549_v39 = vpop.eup %6402 }
 0x4ac   : > { %v7551_v30 = vpop.eup %6404  ;;  %v2894_v31 = vsel %vm1039_vm3, %v7549_v39, 0.0  ;;  %v7572_v18 = vpop.permute.xlu1 %4302 }
 0x4ad   : > { %v2713_v1 = vpop.xlane.xlu0 %2712  ;;  %2895 = vadd.xlane.f32.xlu0 %v2894_v31  ;;  %v2891_v34 = vsel %vm1039_vm3, %v7551_v30, 0.0  ;;  %8199 = vst [vmem:[#allocation16_spill] sm:$0xff] %v7572_v18 }
 0x4ae   : > { %v2779_v21 = vsub.f32 %v7374_v7, %v2713_v1  ;;  %2892 = vadd.xlane.f32.xlu1 %v2891_v34 }
 0x4b0   : > { %v2825_v32 = vmul.f32 1.442695, %v2779_v21  ;;  %v7574_v26 = vpop.permute.xlu1 %4350 }
 0x4b1   : > { %8200 = vst [vmem:[#allocation17_spill] sm:$0xff] %v7574_v26  ;;  %v7576_v51 = vpop.permute.xlu0 %4206 }
 0x4b2   : > { %6410 = vpow2.f32 %v2825_v32 }
 0x4b3   : > { %v7558_v41 = vpop.eup %6406 }
 0x4b4   : > { %v7560_v13 = vpop.eup %6408  ;;  %v2900_v63 = vsel %vm1039_vm3, %v7558_v41, 0.0 }
 0x4b5   : > { %2901 = vadd.xlane.f32.xlu0 %v2900_v63  ;;  %v2897_v43 = vsel %vm1039_vm3, %v7560_v13, 0.0 }
 0x4b6   : > { %2898 = vadd.xlane.f32.xlu1 %v2897_v43 }
 0x4bc   : > { %v7566_v54 = vpop.eup %6410 }
 0x4bd   : > { %v2903_v7 = vsel %vm1039_vm3, %v7566_v54, 0.0 }
 0x4be   : > { %2904 = vadd.xlane.f32.xlu1 %v2903_v7 }
 0x4e1   : > { %v2716_v16 = vpop.xlane.xlu1 %2715 }
 0x4e2   : > { %v2780_v40 = vsub.f32 %v7411_v0, %v2716_v16  ;;  %v2719_v33 = vpop.xlane.xlu0 %2718 }
 0x4e3   : > { %v2781_v23 = vsub.f32 %v7415_v29, %v2719_v33 }
 0x4e4   : > { %v2827_v31 = vmul.f32 1.442695, %v2780_v40 }
 0x4e5   : > { %v2829_v1 = vmul.f32 1.442695, %v2781_v23  ;;  %v2722_v34 = vpop.xlane.xlu1 %2721 }
 0x4e6   : > { %6412 = vpow2.f32 %v2827_v31  ;;  %v2782_v21 = vsub.f32 %v7420_v61, %v2722_v34  ;;  %v2725_v32 = vpop.xlane.xlu0 %2724 }
 0x4e7   : > { %6414 = vpow2.f32 %v2829_v1  ;;  %v2783_v63 = vsub.f32 %v7424_v49, %v2725_v32 }
 0x4e8   : > { %v2831_v43 = vmul.f32 1.442695, %v2782_v21 }
 0x4e9   : > { %v2833_v7 = vmul.f32 1.442695, %v2783_v63  ;;  %v2728_v18 = vpop.xlane.xlu1 %2727 }
 0x4ea   : > { %6416 = vpow2.f32 %v2831_v43  ;;  %v2784_v26 = vsub.f32 %v7430_v17, %v2728_v18  ;;  %v2869_v0 = vpop.xlane.xlu0 %2868 }
 0x4eb   : > { %6418 = vpow2.f32 %v2833_v7 }
 0x4ec   : > { %v2835_v16 = vmul.f32 1.442695, %v2784_v26 }
 0x4ed   : > { %v2734_v29 = vpop.xlane.xlu1 %2733 }
 0x4ee   : > { %6420 = vpow2.f32 %v2835_v16  ;;  %v2786_v40 = vsub.f32 %v7439_v53, %v2734_v29  ;;  %v2863_v33 = vpop.xlane.xlu0 %2862 }
 0x4ef   : > { %6422 = vrcp.f32 %v2863_v33 }
 0x4f0   : > { %v7584_v61 = vpop.eup %6412  ;;  %v2839_v23 = vmul.f32 1.442695, %v2786_v40  ;;  %6424 = vrcp.f32 %v2869_v0 }
 0x4f1   : > { %v7586_v31 = vpop.eup %6414  ;;  %v2866_v49 = vpop.xlane.xlu1 %2865  ;;  %v2906_v1 = vsel %vm1039_vm3, %v7584_v61, 0.0 }
 0x4f2   : > { %6426 = vpow2.f32 %v2839_v23  ;;  %v2731_v17 = vpop.xlane.xlu0 %2730  ;;  %2907 = vadd.xlane.f32.xlu0 %v2906_v1  ;;  %v2909_v18 = vsel %vm1039_vm3, %v7586_v31, 0.0 }
 0x4f3   : > { %6428 = vrcp.f32 %v2866_v49  ;;  %v2785_v53 = vsub.f32 %v7454_v19, %v2731_v17  ;;  %2910 = vadd.xlane.f32.xlu1 %v2909_v18 }
 0x4f4   : > { %v7593_v26 = vpop.eup %6416 }
 0x4f5   : > { %v7595_v34 = vpop.eup %6418  ;;  %v2837_v21 = vmul.f32 1.442695, %v2785_v53  ;;  %v2740_v32 = vpop.xlane.xlu1 %2739  ;;  %v2912_v63 = vsel %vm1039_vm3, %v7593_v26, 0.0 }
 0x4f6   : > { %v2788_v43 = vsub.f32 %v7459_v37, %v2740_v32  ;;  %v2875_v7 = vpop.xlane.xlu0 %2874  ;;  %2913 = vadd.xlane.f32.xlu0 %v2912_v63  ;;  %v2915_v0 = vsel %vm1039_vm3, %v7595_v34, 0.0  ;;  %v3156_v63 = vsel %vm3058_vm5, %v7317_v47, 0  ;;  %v3204_v47 = vsel %vm3058_vm5, %v7319_v56, 0 }
 0x4f7   : > { %6430 = vpow2.f32 %v2837_v21  ;;  %2916 = vadd.xlane.f32.xlu1 %v2915_v0 }
 0x4f8   : > { %v7602_v19 = vpop.eup %6420  ;;  %v2843_v16 = vmul.f32 1.442695, %v2788_v43  ;;  %6432 = vrcp.f32 %v2875_v7  ;;  %v8201_v43 = vmov 0.0  }
 0x4f9   : > { %v6423_v29 = vpop.eup %6422  ;;  %v2872_v40 = vpop.xlane.xlu1 %2871  ;;  %v2918_v33 = vsel %vm1039_vm3, %v7602_v19, 0.0 }
 0x4fa   : > { %v2989_v23 = vmul.f32 %v6423_v29, %v7447_v27  ;;  %6434 = vpow2.f32 %v2843_v16  ;;  %v2737_v37 = vpop.xlane.xlu0 %2736  ;;  %2919 = vadd.xlane.f32.xlu0 %v2918_v33  ;;  %v6425_v49 = vpop.eup %6424 }
 0x4fb   : > { %6436 = vrcp.f32 %v2872_v40  ;;  %v2787_v1 = vsub.f32 %v7473_v52, %v2737_v37  ;;  %v2991_v52 = vmul.f32 %v6425_v49, %v7436_v46 }
 0x4fc   : > { %v7608_v17 = vpop.eup %6426  ;;  %v3021_v18 = vpack.c.bf16 %v2989_v23, %v2989_v23  ;;  %v3252_v23 = vsel %vm3058_vm5, %v7321_v2, 0 }
 0x4fd   : > { %v6429_v53 = vpop.eup %6428  ;;  %v2841_v21 = vmul.f32 1.442695, %v2787_v1  ;;  %v2924_v32 = vsel %vm1039_vm3, %v7608_v17, 0.0  ;;  %v3023_v46 = vpack.c.bf16 %v2991_v52, %v2991_v52 }
 0x4fe   : > { %v2990_v27 = vmul.f32 %v6429_v53, %v7451_v38  ;;  %5960 = vmatmul.mubr.msk.bf16.vlgmr.msra.gmra.mrb[60].mxu0 %vm1039_vm3, %v3021_v18  ;;  %2925 = vadd.xlane.f32.xlu0 %v2924_v32  ;;  %v2881_v7 = vpop.xlane.xlu0 %2880  ;;  %v3300_v53 = vsel %vm3058_vm5, %v7323_v3, 0 }
 0x4ff   : > { %6438 = vpow2.f32 %v2841_v21  ;;  %5970 = vmatpush3.bf16.msra.mxu0 %v3156_v63  ;;  %5971 = vmatprep.mubr.msk.bf16.mxu0 %vm6576_vm2, %v8201_v43  ;;  %v3348_v21 = vsel %vm3058_vm5, %v7325_v6, 0 }
 0x500   : > { %v3022_v0 = vpack.c.bf16 %v2990_v27, %v2990_v27  ;;  %5981 = vmatprep.subr.bf16.mxu0 %v8201_v43  ;;  %6440 = vrcp.f32 %v2881_v7 }
 0x501   : > { %v7620_v16 = vpop.eup %6430 }
 0x502   : > { %5966 = vmatmul.mubr.msk.bf16.vlgmr.msra.gmra.mrb[76].mxu1 %vm1039_vm3, %v3022_v0  ;;  %v2921_v38 = vsel %vm1039_vm3, %v7620_v16, 0.0  ;;  %v6433_v29 = vpop.eup %6432 }
 0x503   : > { %5976 = vmatpush3.bf16.msra.mxu1 %v3204_v47  ;;  %2922 = vadd.xlane.f32.xlu1 %v2921_v38  ;;  %v2993_v49 = vmul.f32 %v6433_v29, %v7466_v12  ;;  %v3444_v38 = vsel %vm3058_vm5, %v7329_v14, 0 }
 0x504   : > { %v7627_v40 = vpop.eup %6434  ;;  %5977 = vmatprep.mubr.msk.bf16.mxu1 %vm6576_vm2, %v8201_v43  ;;  %5987 = vmatprep.subr.bf16.mxu1 %v8201_v43 }
 0x505   : > { %v6437_v33 = vpop.eup %6436  ;;  %v2930_v56 = vsel %vm1039_vm3, %v7627_v40, 0.0 }
 0x506   : > { %v2992_v37 = vmul.f32 %v6437_v33, %v7470_v45  ;;  %5972 = vmatmul.mubr.msk.bf16.vlgmr.msra.gmra.mrb[64].mxu0 %vm1039_vm3, %v3023_v46  ;;  %2931 = vadd.xlane.f32.xlu0 %v2930_v56  ;;  %v3025_v45 = vpack.c.bf16 %v2993_v49, %v2993_v49 }
 0x507   : > { %5982 = vmatpush3.bf16.msra.mxu0 %v3252_v23  ;;  %5983 = vmatprep.mubr.msk.bf16.mxu0 %vm6576_vm2, %v8201_v43 }
 0x508   : > { %v3024_v1 = vpack.c.bf16 %v2992_v37, %v2992_v37  ;;  %5993 = vmatprep.subr.bf16.mxu0 %v8201_v43 }
 0x509   : > { %v7642_v18 = vpop.eup %6438 }
 0x50a   : > { %5978 = vmatmul.mubr.msk.bf16.vlgmr.msra.gmra.mrb[80].mxu1 %vm1039_vm3, %v3024_v1  ;;  %v2927_v2 = vsel %vm1039_vm3, %v7642_v18, 0.0  ;;  %v6441_v12 = vpop.eup %6440 }
 0x50b   : > { %5988 = vmatpush3.bf16.msra.mxu1 %v3300_v53  ;;  %2928 = vadd.xlane.f32.xlu1 %v2927_v2  ;;  %v2995_v32 = vmul.f32 %v6441_v12, %v7481_v59  ;;  %v3396_v53 = vsel %vm3058_vm5, %v7327_v8, 0 }
 0x50c   : > { %5989 = vmatprep.mubr.msk.bf16.mxu1 %vm6576_vm2, %v8201_v43  ;;  %5999 = vmatprep.subr.bf16.mxu1 %v8201_v43 }
 0x50d   : > { %v3027_v6 = vpack.c.bf16 %v2995_v32, %v2995_v32 }
 0x50e   : > { %5984 = vmatmul.mubr.msk.bf16.vlgmr.msra.gmra.mrb[68].mxu0 %vm1039_vm3, %v3025_v45 }
 0x50f   : > { %5994 = vmatpush3.bf16.msra.mxu0 %v3348_v21  ;;  %v2746_v3 = vpop.xlane.xlu1 %2745  ;;  %5995 = vmatprep.mubr.msk.bf16.mxu0 %vm6576_vm2, %v8201_v43 }
 0x510   : > { %v2790_v63 = vsub.f32 %v7488_v62, %v2746_v3  ;;  %v2743_v27 = vpop.xlane.xlu0 %2742  ;;  %6005 = vmatprep.subr.bf16.mxu0 %v8201_v43 }
 0x511   : > { %v2789_v52 = vsub.f32 %v7491_v50, %v2743_v27  ;;  %v3492_v27 = vsel %vm3058_vm5, %v7341_v42, 0 }
 0x512   : > { %v2847_v7 = vmul.f32 1.442695, %v2790_v63 }
 0x513   : > { %v2845_v0 = vmul.f32 1.442695, %v2789_v52  ;;  %v2878_v47 = vpop.xlane.xlu1 %2877 }
 0x514   : > { %6442 = vpow2.f32 %v2847_v7 }
 0x515   : > { %6444 = vpow2.f32 %v2845_v0 }
 0x516   : > { %6446 = vrcp.f32 %v2878_v47  ;;  %5996 = vmatmul.mubr.msk.bf16.vlgmr.msra.gmra.mrb[72].mxu0 %vm1039_vm3, %v3027_v6 }
 0x517   : > { %6006 = vmatpush3.bf16.msra.mxu0 %v3444_v38  ;;  %v2752_v59 = vpop.xlane.xlu1 %2751  ;;  %6007 = vmatprep.mubr.msk.bf16.mxu0 %vm6576_vm2, %v8201_v43 }
 0x518   : > { %v2792_v62 = vsub.f32 %v7502_v11, %v2752_v59  ;;  %v2749_v50 = vpop.xlane.xlu0 %2748  ;;  %6017 = vmatprep.subr.bf16.mxu0 %v8201_v43 }
 0x519   : > { %v2791_v29 = vsub.f32 %v7505_v22, %v2749_v50 }
 0x51a   : > { %v2851_v46 = vmul.f32 1.442695, %v2792_v62 }
 0x51b   : > { %v2849_v33 = vmul.f32 1.442695, %v2791_v29  ;;  %v2884_v56 = vpop.xlane.xlu1 %2883 }
 0x51c   : > { %6448 = vpow2.f32 %v2851_v46  ;;  %v3588_v46 = vsel %vm3058_vm5, %v7355_v20, 0 }
 0x51d   : > { %6450 = vpow2.f32 %v2849_v33 }
 0x51e   : > { %v7669_v14 = vpop.eup %6442  ;;  %6452 = vrcp.f32 %v2884_v56 }
 0x51f   : > { %v7671_v23 = vpop.eup %6444  ;;  %v2936_v37 = vsel %vm1039_vm3, %v7669_v14, 0.0  ;;  %v2758_v3 = vpop.xlane.xlu1 %2757 }
 0x520   : > { %v6447_v49 = vpop.eup %6446  ;;  %2937 = vadd.xlane.f32.xlu0 %v2936_v37  ;;  %v2933_v11 = vsel %vm1039_vm3, %v7671_v23, 0.0  ;;  %v2755_v32 = vpop.xlane.xlu0 %2754 }
 0x521   : > { %v2994_v22 = vmul.f32 %v6447_v49, %v7495_v9  ;;  %2934 = vadd.xlane.f32.xlu1 %v2933_v11  ;;  %v2793_v37 = vsub.f32 %v7519_v36, %v2755_v32  ;;  %v3732_v32 = vsel %vm3058_vm5, %v7371_v25, 0 }
 0x523   : > { %v3026_v1 = vpack.c.bf16 %v2994_v22, %v2994_v22  ;;  %v3684_v22 = vsel %vm3058_vm5, %v7402_v60, 0 }
 0x525   : > { %5990 = vmatmul.mubr.msk.bf16.vlgmr.msra.gmra.mrb[84].mxu1 %vm1039_vm3, %v3026_v1  ;;  %v3636_v1 = vsel %vm3058_vm5, %v7357_v44, 0 }
 0x526   : > { %v7681_v2 = vpop.eup %6448  ;;  %6000 = vmatpush3.bf16.msra.mxu1 %v3396_v53  ;;  %6001 = vmatprep.mubr.msk.bf16.mxu1 %vm6576_vm2, %v8201_v43 }
 0x527   : > { %v7685_v45 = vpop.eup %6450  ;;  %v2942_v12 = vsel %vm1039_vm3, %v7681_v2, 0.0  ;;  %6011 = vmatprep.subr.bf16.mxu1 %v8201_v43  ;;  %v2764_v7 = vpop.xlane.xlu0 %2763 }
 0x528   : > { %v6453_v9 = vpop.eup %6452  ;;  %2943 = vadd.xlane.f32.xlu0 %v2942_v12  ;;  %v2939_v8 = vsel %vm1039_vm3, %v7685_v45, 0.0  ;;  %v7695_v52 = vpop.xlane.xlu1 %2760  ;;  %v2796_v12 = vsub.f32 %v7528_v28, %v2764_v7 }
 0x529   : > { %v2996_v21 = vmul.f32 %v6453_v9, %v7509_v58  ;;  %2940 = vadd.xlane.f32.xlu1 %v2939_v8  ;;  %v2795_v36 = vsub.f32 %v7531_v55, %v7695_v52 }
 0x52b   : > { %v3028_v63 = vpack.c.bf16 %v2996_v21, %v2996_v21  ;;  %v2857_v9 = vmul.f32 1.442695, %v2795_v36 }
 0x52d   : > { %6002 = vmatmul.mubr.msk.bf16.vlgmr.msra.gmra.mrb[88].mxu1 %vm1039_vm3, %v3028_v63 }
 0x52e   : > { %6012 = vmatpush3.bf16.msra.mxu1 %v3492_v27  ;;  %6013 = vmatprep.mubr.msk.bf16.mxu1 %vm6576_vm2, %v8201_v43  ;;  %v8202_v27 = vld [vmem:[#allocation9_spill] sm:$0xff] }
 0x52f   : > { %6023 = vmatprep.subr.bf16.mxu1 %v8201_v43  ;;  %v3828_v52 = vsel %vm3058_vm5, %v8202_v27, 0 }
 0x531   : > { %v2890_v0 = vpop.xlane.xlu1 %2889 }
 0x532   : > { %6454 = vrcp.f32 %v2890_v0  ;;  %v2887_v58 = vpop.xlane.xlu0 %2886 }
 0x533   : > { %6456 = vrcp.f32 %v2887_v58 }
 0x53a   : > { %4446 = vrot.lane.b32.xlu1 %v7085_v5, %s6580_s21  ;;  %v2896_v47 = vpop.xlane.xlu0 %2895  ;;  %v3540_v5 = vsel %vm3058_vm5, %v7343_v48, 0 }
 0x53b   : > { %v2893_v42 = vpop.xlane.xlu1 %2892  ;;  %6458 = vrcp.f32 %v2896_v47 }
 0x53c   : > { %v6455_v6 = vpop.eup %6454  ;;  %6460 = vrcp.f32 %v2893_v42 }
 0x53d   : > { %v6457_v38 = vpop.eup %6456  ;;  %v2998_v59 = vmul.f32 %v6455_v6, %v7539_v10  ;;  %v8203_v6 = vld [vmem:[#allocation6_spill] sm:$0xff] }
 0x53e   : > { %v2997_v62 = vmul.f32 %v6457_v38, %v7541_v35  ;;  %4398 = vrot.lane.b32.xlu0 %v7087_v57, %s6580_s21  ;;  %v2794_v35 = vsub.f32 %v7516_v4, %v2758_v3  ;;  %v2853_v4 = vmul.f32 1.442695, %v2793_v37  ;;  %v3780_v3 = vsel %vm3058_vm5, %v7369_v24, 0  ;;  %v8204_v38 = vld [vmem:[#allocation7_spill] sm:$0xff]  ;;  %v8205_v37 = vld [vmem:[#allocation8_spill] sm:$0xff] }
 0x53f   : > { %v3030_v50 = vpack.c.bf16 %v2998_v59, %v2998_v59 }
 0x540   : > { %v3029_v29 = vpack.c.bf16 %v2997_v62, %v2997_v62  ;;  %v2855_v53 = vmul.f32 1.442695, %v2794_v35 }
 0x541   : > { %6014 = vmatmul.mubr.msk.bf16.vlgmr.msra.gmra.mrb[92].mxu1 %vm1039_vm3, %v3030_v50 }
 0x542   : > { %6024 = vmatpush3.bf16.msra.mxu1 %v3588_v46  ;;  %6008 = vmatmul.mubr.msk.bf16.vlgmr.msra.gmra.mrb[76].mxu0 %vm1039_vm3, %v3029_v29  ;;  %v2902_v33 = vpop.xlane.xlu0 %2901 }
 0x543   : > { %v2899_v10 = vpop.xlane.xlu1 %2898  ;;  %6018 = vmatpush3.bf16.msra.mxu0 %v3540_v5  ;;  %6462 = vrcp.f32 %v2902_v33  ;;  %6019 = vmatprep.mubr.msk.bf16.mxu0 %vm6576_vm2, %v8201_v43 }
 0x544   : > { %6464 = vrcp.f32 %v2899_v10  ;;  %6025 = vmatprep.mubr.msk.bf16.mxu1 %vm6576_vm2, %v8201_v43  ;;  %6029 = vmatprep.subr.bf16.mxu0 %v8201_v43 }
 0x545   : > { %v6459_v57 = vpop.eup %6458  ;;  %6035 = vmatprep.subr.bf16.mxu1 %v8201_v43 }
 0x546   : > { %v6461_v48 = vpop.eup %6460  ;;  %v3000_v20 = vmul.f32 %v6459_v57, %v7549_v39 }
 0x547   : > { %v2999_v56 = vmul.f32 %v6461_v48, %v7551_v30  ;;  %v2859_v30 = vmul.f32 1.442695, %v2796_v12 }
 0x548   : > { %v3032_v49 = vpack.c.bf16 %v3000_v20, %v3000_v20 }
 0x549   : > { %v3031_v11 = vpack.c.bf16 %v2999_v56, %v2999_v56 }
 0x54a   : > { %6026 = vmatmul.mubr.msk.bf16.vlgmr.msra.gmra.mrb[96].mxu1 %vm1039_vm3, %v3032_v49  ;;  %v3876_v49 = vsel %vm3058_vm5, %v8205_v37, 0 }
 0x54b   : > { %v2905_v39 = vpop.xlane.xlu1 %2904  ;;  %6020 = vmatmul.mubr.msk.bf16.vlgmr.msra.gmra.mrb[80].mxu0 %vm1039_vm3, %v3031_v11  ;;  %6036 = vmatpush3.bf16.msra.mxu1 %v3684_v22  ;;  %v8206_v11 = vld [vmem:[#allocation11_spill] sm:$0xff] }
 0x54c   : > { %6466 = vrcp.f32 %v2905_v39  ;;  %6030 = vmatpush3.bf16.msra.mxu0 %v3636_v1  ;;  %6031 = vmatprep.mubr.msk.bf16.mxu0 %vm6576_vm2, %v8201_v43  ;;  %v3924_v22 = vsel %vm3058_vm5, %v8206_v11, 0 }
 0x54d   : > { %v6463_v60 = vpop.eup %6462  ;;  %6037 = vmatprep.mubr.msk.bf16.mxu1 %vm6576_vm2, %v8201_v43  ;;  %6041 = vmatprep.subr.bf16.mxu0 %v8201_v43  ;;  %6468 = vpow2.f32 %v2855_v53 }
 0x54e   : > { %v6465_v44 = vpop.eup %6464  ;;  %v3002_v28 = vmul.f32 %v6463_v60, %v7558_v41  ;;  %6047 = vmatprep.subr.bf16.mxu1 %v8201_v43  ;;  %6470 = vpow2.f32 %v2853_v4  ;;  %v8208_v60 = vld [vmem:[#allocation12_spill] sm:$0xff] }
 0x54f   : > { %v3001_v55 = vmul.f32 %v6465_v44, %v7560_v13  ;;  %6472 = vpow2.f32 %v2859_v30  ;;  %v4020_v44 = vsel %vm3058_vm5, %v8208_v60, 0 }
 0x550   : > { %v3034_v8 = vpack.c.bf16 %v3002_v28, %v3002_v28  ;;  %6474 = vpow2.f32 %v2857_v9 }
 0x551   : > { %v3033_v21 = vpack.c.bf16 %v3001_v55, %v3001_v55 }
 0x552   : > { %6038 = vmatmul.mubr.msk.bf16.vlgmr.msra.gmra.mrb[100].mxu1 %vm1039_vm3, %v3034_v8 }
 0x553   : > { %6032 = vmatmul.mubr.msk.bf16.vlgmr.msra.gmra.mrb[84].mxu0 %vm1039_vm3, %v3033_v21  ;;  %6048 = vmatpush3.bf16.msra.mxu1 %v3780_v3  ;;  %v8209_v3 = vld [vmem:[#allocation15_spill] sm:$0xff] }
 0x554   : > { %6042 = vmatpush3.bf16.msra.mxu0 %v3732_v32  ;;  %6043 = vmatprep.mubr.msk.bf16.mxu0 %vm6576_vm2, %v8201_v43  ;;  %v4068_v32 = vsel %vm3058_vm5, %v8209_v3, 0 }
 0x555   : > { %6053 = vmatprep.subr.bf16.mxu0 %v8201_v43  ;;  %6049 = vmatprep.mubr.msk.bf16.mxu1 %vm6576_vm2, %v8201_v43 }
 0x556   : > { %v6467_v24 = vpop.eup %6466  ;;  %6059 = vmatprep.subr.bf16.mxu1 %v8201_v43 }
 0x557   : > { %v3003_v41 = vmul.f32 %v6467_v24, %v7566_v54  ;;  %v7753_v25 = vpop.eup %6468  ;;  %v8210_v24 = vld [vmem:[#allocation14_spill] sm:$0xff] }
 0x558   : > { %v7755_v63 = vpop.eup %6470  ;;  %v2948_v7 = vsel %vm1039_vm3, %v7753_v25, 0.0 }
 0x559   : > { %v3035_v13 = vpack.c.bf16 %v3003_v41, %v3003_v41  ;;  %v7764_v0 = vpop.eup %6472  ;;  %v2945_v54 = vsel %vm1039_vm3, %v7755_v63, 0.0  ;;  %v4116_v41 = vsel %vm3058_vm5, %v8210_v24, 0 }
 0x55a   : > { %v7769_v58 = vpop.eup %6474  ;;  %v2954_v47 = vsel %vm1039_vm3, %v7764_v0, 0.0 }
 0x55b   : > { %6044 = vmatmul.mubr.msk.bf16.vlgmr.msra.gmra.mrb[88].mxu0 %vm1039_vm3, %v3035_v13  ;;  %v2951_v42 = vsel %vm1039_vm3, %v7769_v58, 0.0 }
 0x55c   : > { %6054 = vmatpush3.bf16.msra.mxu0 %v3828_v52  ;;  %6055 = vmatprep.mubr.msk.bf16.mxu0 %vm6576_vm2, %v8201_v43 }
 0x55d   : > { %2949 = vadd.xlane.f32.xlu0 %v2948_v7  ;;  %6065 = vmatprep.subr.bf16.mxu0 %v8201_v43 }
 0x55e   : > { %2946 = vadd.xlane.f32.xlu1 %v2945_v54 }
 0x561   : > { %2955 = vadd.xlane.f32.xlu0 %v2954_v47  ;;  %v8211_v47 = vld [vmem:[#allocation13_spill] sm:$0xff] }
 0x562   : > { %2952 = vadd.xlane.f32.xlu1 %v2951_v42  ;;  %v4212_v42 = vsel %vm3058_vm5, %v7576_v51, 0  ;;  %v4260_v51 = vsel %vm3058_vm5, %v7570_v15, 0 }
 0x573   : > { %4542 = vrot.lane.b32.xlu1 %v8203_v6, %s6580_s21 }
 0x577   : > { %4494 = vrot.lane.b32.xlu0 %v8204_v38, %s6580_s21 }
 0x57f   : > { %v2908_v59 = vpop.xlane.xlu0 %2907 }
 0x580   : > { %v2911_v62 = vpop.xlane.xlu1 %2910  ;;  %6476 = vrcp.f32 %v2908_v59 }
 0x581   : > { %6478 = vrcp.f32 %v2911_v62 }
 0x583   : > { %v2914_v50 = vpop.xlane.xlu0 %2913 }
 0x584   : > { %v2917_v29 = vpop.xlane.xlu1 %2916  ;;  %6480 = vrcp.f32 %v2914_v50 }
 0x585   : > { %6482 = vrcp.f32 %v2917_v29 }
 0x587   : > { %v2920_v46 = vpop.xlane.xlu0 %2919 }
 0x588   : > { %6484 = vrcp.f32 %v2920_v46 }
 0x58a   : > { %v6477_v5 = vpop.eup %6476 }
 0x58b   : > { %v6479_v33 = vpop.eup %6478  ;;  %v3004_v10 = vmul.f32 %v6477_v5, %v7584_v61 }
 0x58c   : > { %v3005_v57 = vmul.f32 %v6479_v33, %v7586_v31  ;;  %v2926_v31 = vpop.xlane.xlu0 %2925 }
 0x58d   : > { %v3036_v48 = vpack.c.bf16 %v3004_v10, %v3004_v10  ;;  %v8212_v10 = vld [vmem:[#allocation17_spill] sm:$0xff] }
 0x58e   : > { %v6481_v20 = vpop.eup %6480  ;;  %v3037_v35 = vpack.c.bf16 %v3005_v57, %v3005_v57  ;;  %v4356_v57 = vsel %vm3058_vm5, %v8212_v10, 0 }
 0x58f   : > { %v6483_v56 = vpop.eup %6482  ;;  %6050 = vmatmul.mubr.msk.bf16.vlgmr.msra.gmra.mrb[104].mxu1 %vm1039_vm3, %v3036_v48  ;;  %v3006_v61 = vmul.f32 %v6481_v20, %v7593_v26  ;;  %v8207_v26 = vld [vmem:[#allocation10_spill] sm:$0xff]  ;;  %v8213_v48 = vld [vmem:[#allocation16_spill] sm:$0xff] }
 0x590   : > { %v2923_v1 = vpop.xlane.xlu1 %2922  ;;  %6056 = vmatmul.mubr.msk.bf16.vlgmr.msra.gmra.mrb[92].mxu0 %vm1039_vm3, %v3037_v35  ;;  %6060 = vmatpush3.bf16.msra.mxu1 %v3876_v49  ;;  %v3007_v53 = vmul.f32 %v6483_v56, %v7595_v34  ;;  %v3972_v36 = vsel %vm3058_vm5, %v8207_v26, 0  ;;  %v4308_v20 = vsel %vm3058_vm5, %v8213_v48, 0 }
 0x591   : > { %6486 = vrcp.f32 %v2923_v1  ;;  %6066 = vmatpush3.bf16.msra.mxu0 %v3924_v22  ;;  %6061 = vmatprep.mubr.msk.bf16.mxu1 %vm6576_vm2, %v8201_v43  ;;  %v3038_v12 = vpack.c.bf16 %v3006_v61, %v3006_v61 }
 0x592   : > { %6067 = vmatprep.mubr.msk.bf16.mxu0 %vm6576_vm2, %v8201_v43  ;;  %6071 = vmatprep.subr.bf16.mxu1 %v8201_v43  ;;  %6488 = vrcp.f32 %v2926_v31  ;;  %v6485_v39 = vpop.eup %6484  ;;  %v3039_v4 = vpack.c.bf16 %v3007_v53, %v3007_v53 }
 0x593   : > { %6077 = vmatprep.subr.bf16.mxu0 %v8201_v43  ;;  %v3008_v28 = vmul.f32 %v6485_v39, %v7602_v19  ;;  %v2932_v30 = vpop.xlane.xlu0 %2931 }
 0x595   : > { %v3040_v8 = vpack.c.bf16 %v3008_v28, %v3008_v28 }
 0x597   : > { %6062 = vmatmul.mubr.msk.bf16.vlgmr.msra.gmra.mrb[108].mxu1 %vm1039_vm3, %v3038_v12 }
 0x598   : > { %v2929_v34 = vpop.xlane.xlu1 %2928  ;;  %6068 = vmatmul.mubr.msk.bf16.vlgmr.msra.gmra.mrb[96].mxu0 %vm1039_vm3, %v3039_v4  ;;  %6072 = vmatpush3.bf16.msra.mxu1 %v3972_v36 }
 0x599   : > { %6490 = vrcp.f32 %v2929_v34  ;;  %6078 = vmatpush3.bf16.msra.mxu0 %v4020_v44  ;;  %6073 = vmatprep.mubr.msk.bf16.mxu1 %vm6576_vm2, %v8201_v43 }
 0x59a   : > { %6079 = vmatprep.mubr.msk.bf16.mxu0 %vm6576_vm2, %v8201_v43  ;;  %6083 = vmatprep.subr.bf16.mxu1 %v8201_v43  ;;  %6492 = vrcp.f32 %v2932_v30 }
 0x59b   : > { %v6487_v55 = vpop.eup %6486  ;;  %6089 = vmatprep.subr.bf16.mxu0 %v8201_v43 }
 0x59c   : > { %v3009_v9 = vmul.f32 %v6487_v55, %v7620_v16  ;;  %v6489_v21 = vpop.eup %6488 }
 0x59d   : > { %v3010_v13 = vmul.f32 %v6489_v21, %v7608_v17  ;;  %v4164_v17 = vsel %vm3058_vm5, %v8211_v47, 0 }
 0x59e   : > { %v3041_v19 = vpack.c.bf16 %v3009_v9, %v3009_v9 }
 0x59f   : > { %6074 = vmatmul.mubr.msk.bf16.vlgmr.msra.gmra.mrb[112].mxu1 %vm1039_vm3, %v3040_v8  ;;  %v3042_v52 = vpack.c.bf16 %v3010_v13, %v3010_v13 }
 0x5a0   : > { %6080 = vmatmul.mubr.msk.bf16.vlgmr.msra.gmra.mrb[100].mxu0 %vm1039_vm3, %v3041_v19  ;;  %6084 = vmatpush3.bf16.msra.mxu1 %v4068_v32 }
 0x5a1   : > { %6090 = vmatpush3.bf16.msra.mxu0 %v4116_v41  ;;  %6085 = vmatprep.mubr.msk.bf16.mxu1 %vm6576_vm2, %v8201_v43 }
 0x5a2   : > { %6091 = vmatprep.mubr.msk.bf16.mxu0 %vm6576_vm2, %v8201_v43  ;;  %6095 = vmatprep.subr.bf16.mxu1 %v8201_v43 }
 0x5a3   : > { %v6491_v16 = vpop.eup %6490  ;;  %6101 = vmatprep.subr.bf16.mxu0 %v8201_v43 }
 0x5a4   : > { %v3011_v27 = vmul.f32 %v6491_v16, %v7642_v18  ;;  %v6493_v7 = vpop.eup %6492 }
 0x5a5   : > { %v3012_v6 = vmul.f32 %v6493_v7, %v7627_v40 }
 0x5a6   : > { %v3043_v54 = vpack.c.bf16 %v3011_v27, %v3011_v27 }
 0x5a7   : > { %6086 = vmatmul.mubr.msk.bf16.vlgmr.msra.gmra.mrb[116].mxu1 %vm1039_vm3, %v3042_v52  ;;  %v3044_v38 = vpack.c.bf16 %v3012_v6, %v3012_v6 }
 0x5a8   : > { %6092 = vmatmul.mubr.msk.bf16.vlgmr.msra.gmra.mrb[104].mxu0 %vm1039_vm3, %v3043_v54  ;;  %6096 = vmatpush3.bf16.msra.mxu1 %v4164_v17 }
 0x5a9   : > { %6102 = vmatpush3.bf16.msra.mxu0 %v4212_v42  ;;  %6097 = vmatprep.mubr.msk.bf16.mxu1 %vm6576_vm2, %v8201_v43 }
 0x5aa   : > { %6107 = vmatprep.subr.bf16.mxu1 %v8201_v43  ;;  %6103 = vmatprep.mubr.msk.bf16.mxu0 %vm6576_vm2, %v8201_v43 }
 0x5ab   : > { %6113 = vmatprep.subr.bf16.mxu0 %v8201_v43 }
 0x5ad   : > { %v2938_v18 = vpop.xlane.xlu0 %2937 }
 0x5ae   : > { %v2935_v59 = vpop.xlane.xlu1 %2934  ;;  %6494 = vrcp.f32 %v2938_v18 }
 0x5af   : > { %6496 = vrcp.f32 %v2935_v59  ;;  %6098 = vmatmul.mubr.msk.bf16.vlgmr.msra.gmra.mrb[120].mxu1 %vm1039_vm3, %v3044_v38 }
 0x5b0   : > { %6108 = vmatpush3.bf16.msra.mxu1 %v4260_v51  ;;  %6109 = vmatprep.mubr.msk.bf16.mxu1 %vm6576_vm2, %v8201_v43 }
 0x5b1   : > { %6119 = vmatprep.subr.bf16.mxu1 %v8201_v43 }
 0x5b5   : > { %v2944_v40 = vpop.xlane.xlu0 %2943 }
 0x5b6   : > { %v2941_v62 = vpop.xlane.xlu1 %2940  ;;  %6498 = vrcp.f32 %v2944_v40 }
 0x5b7   : > { %6500 = vrcp.f32 %v2941_v62 }
 0x5b8   : > { %v6495_v50 = vpop.eup %6494 }
 0x5b9   : > { %v6497_v29 = vpop.eup %6496  ;;  %v3014_v46 = vmul.f32 %v6495_v50, %v7669_v14  ;;  %v4399_v49 = vpop.permute.xlu0 %4398 }
 0x5ba   : > { %v3013_v5 = vmul.f32 %v6497_v29, %v7671_v23  ;;  %v4447_v37 = vpop.permute.xlu1 %4446  ;;  %v4404_v61 = vsel %vm3058_vm5, %v4399_v49, 0 }
 0x5bb   : > { %v3046_v15 = vpack.c.bf16 %v3014_v46, %v3014_v46  ;;  %v4452_v1 = vsel %vm3058_vm5, %v4447_v37, 0 }
 0x5bc   : > { %v3045_v33 = vpack.c.bf16 %v3013_v5, %v3013_v5 }
 0x5bd   : > { %6110 = vmatmul.mubr.msk.bf16.vlgmr.msra.gmra.mrb[124].mxu1 %vm1039_vm3, %v3046_v15 }
 0x5be   : > { %6104 = vmatmul.mubr.msk.bf16.vlgmr.msra.gmra.mrb[108].mxu0 %vm1039_vm3, %v3045_v33  ;;  %6120 = vmatpush3.bf16.msra.mxu1 %v4356_v57 }
 0x5bf   : > { %6114 = vmatpush3.bf16.msra.mxu0 %v4308_v20  ;;  %6115 = vmatprep.mubr.msk.bf16.mxu0 %vm6576_vm2, %v8201_v43 }
 0x5c0   : > { %v6499_v14 = vpop.eup %6498  ;;  %6121 = vmatprep.mubr.msk.bf16.mxu1 %vm6576_vm2, %v8201_v43  ;;  %6125 = vmatprep.subr.bf16.mxu0 %v8201_v43 }
 0x5c1   : > { %v6501_v23 = vpop.eup %6500  ;;  %v3016_v35 = vmul.f32 %v6499_v14, %v7681_v2  ;;  %6131 = vmatprep.subr.bf16.mxu1 %v8201_v43 }
 0x5c2   : > { %v3015_v56 = vmul.f32 %v6501_v23, %v7685_v45 }
 0x5c3   : > { %v3048_v11 = vpack.c.bf16 %v3016_v35, %v3016_v35 }
 0x5c4   : > { %v3047_v22 = vpack.c.bf16 %v3015_v56, %v3015_v56 }
 0x5c5   : > { %6122 = vmatmul.mubr.msk.bf16.vlgmr.msra.gmra.mrb[128].mxu1 %vm1039_vm3, %v3048_v11 }
 0x5c6   : > { %6116 = vmatmul.mubr.msk.bf16.vlgmr.msra.gmra.mrb[112].mxu0 %vm1039_vm3, %v3047_v22  ;;  %6132 = vmatpush3.bf16.msra.mxu1 %v4452_v1 }
 0x5c7   : > { %6126 = vmatpush3.bf16.msra.mxu0 %v4404_v61  ;;  %6127 = vmatprep.mubr.msk.bf16.mxu0 %vm6576_vm2, %v8201_v43 }
 0x5c8   : > { %6133 = vmatprep.mubr.msk.bf16.mxu1 %vm6576_vm2, %v8201_v43  ;;  %6137 = vmatprep.subr.bf16.mxu0 %v8201_v43 }
 0x5c9   : > { %6143 = vmatprep.subr.bf16.mxu1 %v8201_v43 }
 0x5d1   : > { %v7868_v2 = vpop.f32.mrb[60].mxu0 }
 0x5d2   : > { %v5961_v45 = vpop.f32.mrb[61].mxu0 }
 0x5d3   : > { %v3099_v31 = vpop.f32.mrb[62].mxu0 }
 0x5d4   : > { %v5962_v53 = vpop.f32.mrb[63].mxu0 }
 0x5d5   : > { %v7870_v12 = vpop.f32.mrb[76].mxu1 }
 0x5d6   : > { %v5967_v39 = vpop.f32.mrb[77].mxu1 }
 0x5d7   : > { %v3147_v4 = vpop.f32.mrb[78].mxu1 }
 0x5d8   : > { %v5968_v26 = vpop.f32.mrb[79].mxu1 }
 0x5d9   : > { %v7872_v36 = vpop.f32.mrb[64].mxu0 }
 0x5da   : > { %v5973_v60 = vpop.f32.mrb[65].mxu0 }
 0x5db   : > { %v3195_v44 = vpop.f32.mrb[66].mxu0 }
 0x5dc   : > { %v5974_v34 = vpop.f32.mrb[67].mxu0 }
 0x5dd   : > { %v7874_v28 = vpop.f32.mrb[80].mxu1 }
 0x5de   : > { %v5979_v30 = vpop.f32.mrb[81].mxu1 }
 0x5df   : > { %v3243_v55 = vpop.f32.mrb[82].mxu1 }
 0x5e0   : > { %v5980_v9 = vpop.f32.mrb[83].mxu1 }
 0x5e1   : > { %v7876_v8 = vpop.f32.mrb[68].mxu0 }
 0x5e2   : > { %v5985_v21 = vpop.f32.mrb[69].mxu0 }
 0x5e3   : > { %v3291_v19 = vpop.f32.mrb[70].mxu0 }
 0x5e4   : > { %v5986_v3 = vpop.f32.mrb[71].mxu0 }
 0x5e9   : > { %v7878_v32 = vpop.f32.mrb[72].mxu0 }
 0x5ea   : > { %v5997_v24 = vpop.f32.mrb[73].mxu0  ;;  %v2950_v41 = vpop.xlane.xlu0 %2949 }
 0x5eb   : > { %v3387_v13 = vpop.f32.mrb[74].mxu0  ;;  %v2947_v16 = vpop.xlane.xlu1 %2946  ;;  %6502 = vrcp.f32 %v2950_v41 }
 0x5ec   : > { %6504 = vrcp.f32 %v2947_v16  ;;  %v5998_v27 = vpop.f32.mrb[75].mxu0 }
 0x5ee   : > { %v2956_v52 = vpop.xlane.xlu0 %2955 }
 0x5ef   : > { %v2953_v7 = vpop.xlane.xlu1 %2952  ;;  %6506 = vrcp.f32 %v2956_v52 }
 0x5f0   : > { %6508 = vrcp.f32 %v2953_v7 }
 0x5f2   : > { %v4495_v18 = vpop.permute.xlu0 %4494 }
 0x5f3   : > { %v4543_v6 = vpop.permute.xlu1 %4542  ;;  %v4500_v5 = vsel %vm3058_vm5, %v4495_v18, 0 }
 0x5f4   : > { %v4548_v29 = vsel %vm3058_vm5, %v4543_v6, 0 }
 0x5f5   : > { %v6503_v54 = vpop.eup %6502 }
 0x5f6   : > { %v6505_v47 = vpop.eup %6504  ;;  %v3018_v17 = vmul.f32 %v6503_v54, %v7753_v25 }
 0x5f7   : > { %v3017_v42 = vmul.f32 %v6505_v47, %v7755_v63 }
 0x5f8   : > { %v7882_v38 = vpop.f32.mrb[84].mxu1  ;;  %v3050_v59 = vpack.c.bf16 %v3018_v17, %v3018_v17 }
 0x5f9   : > { %v6507_v51 = vpop.eup %6506  ;;  %v5991_v40 = vpop.f32.mrb[85].mxu1  ;;  %v3049_v62 = vpack.c.bf16 %v3017_v42, %v3017_v42 }
 0x5fa   : > { %v6509_v50 = vpop.eup %6508  ;;  %v3339_v46 = vpop.f32.mrb[86].mxu1  ;;  %6134 = vmatmul.mubr.msk.bf16.vlgmr.msra.gmra.mrb[132].mxu1 %vm1039_vm3, %v3050_v59  ;;  %v3020_v25 = vmul.f32 %v6507_v51, %v7764_v0 }
 0x5fb   : > { %v5992_v15 = vpop.f32.mrb[87].mxu1  ;;  %6128 = vmatmul.mubr.msk.bf16.vlgmr.msra.gmra.mrb[116].mxu0 %vm1039_vm3, %v3049_v62  ;;  %6144 = vmatpush3.bf16.msra.mxu1 %v4548_v29  ;;  %v3019_v63 = vmul.f32 %v6509_v50, %v7769_v58 }
 0x5fc   : > { %6138 = vmatpush3.bf16.msra.mxu0 %v4500_v5  ;;  %6139 = vmatprep.mubr.msk.bf16.mxu0 %vm6576_vm2, %v8201_v43  ;;  %v3052_v10 = vpack.c.bf16 %v3020_v25, %v3020_v25 }
 0x5fd   : > { %6145 = vmatprep.mubr.msk.bf16.mxu1 %vm6576_vm2, %v8201_v43  ;;  %v3051_v48 = vpack.c.bf16 %v3019_v63, %v3019_v63 }
 0x600   : > { %v7894_v33 = vpop.f32.mrb[88].mxu1 }
 0x601   : > { %v6003_v57 = vpop.f32.mrb[89].mxu1 }
 0x602   : > { %v3435_v20 = vpop.f32.mrb[90].mxu1  ;;  %6146 = vmatmul.mubr.msk.bf16.vlgmr.msra.gmra.mrb[136].mxu1 %vm1039_vm3, %v3052_v10 }
 0x603   : > { %v6004_v14 = vpop.f32.mrb[91].mxu1  ;;  %6140 = vmatmul.mubr.msk.bf16.vlgmr.msra.gmra.mrb[120].mxu0 %vm1039_vm3, %v3051_v48 }
 0x614   : > { %v3528_v0 = vpop.f32.mrb[92].mxu1 }
 0x615   : > { %v3480_v23 = vpop.f32.mrb[76].mxu0  ;;  %v6015_v35 = vpop.f32.mrb[93].mxu1 }
 0x616   : > { %v6292_v56 = vpack.i.bf16 %v3528_v0, %v3480_v23  ;;  %v6009_v37 = vpop.f32.mrb[77].mxu0  ;;  %v3531_v58 = vpop.f32.mrb[94].mxu1 }
 0x617   : > { %v3483_v49 = vpop.f32.mrb[78].mxu0  ;;  %v6016_v11 = vpop.f32.mrb[95].mxu1 }
 0x618   : > { %6293 = vrot.lane.b32.xlu0 %v6292_v56, %s6582_s23  ;;  %v6010_v43 = vpop.f32.mrb[79].mxu0 }
 0x61d   : > { %v3624_v22 = vpop.f32.mrb[96].mxu1 }
 0x61e   : > { %v3576_v1 = vpop.f32.mrb[80].mxu0  ;;  %v6027_v61 = vpop.f32.mrb[97].mxu1 }
 0x61f   : > { %v6297_v45 = vpack.i.bf16 %v3624_v22, %v3576_v1  ;;  %v6021_v31 = vpop.f32.mrb[81].mxu0  ;;  %v3627_v53 = vpop.f32.mrb[98].mxu1 }
 0x620   : > { %v3579_v39 = vpop.f32.mrb[82].mxu0  ;;  %v6028_v4 = vpop.f32.mrb[99].mxu1 }
 0x621   : > { %v6022_v26 = vpop.f32.mrb[83].mxu0  ;;  %6298 = vrot.lane.b32.xlu1 %v6297_v45, %s6582_s23  ;;  %v6354_v4 = vld [vmem:[%s8214_s24] sm:$0xff]  }
 0x622   : > { %6149 = vmatprep.subr.bf16.mxu0 %v6354_v4 }
 0x623   : > { %6150 = vmatpush3.bf16.msra.mxu0 %v6354_v4 }
 0x625   : > { %v3720_v60 = vpop.f32.mrb[100].mxu1 }
 0x626   : > { %v3672_v44 = vpop.f32.mrb[84].mxu0  ;;  %v6039_v34 = vpop.f32.mrb[101].mxu1 }
 0x627   : > { %v6302_v30 = vpack.i.bf16 %v3720_v60, %v3672_v44  ;;  %v6033_v55 = vpop.f32.mrb[85].mxu0  ;;  %v3723_v9 = vpop.f32.mrb[102].mxu1 }
 0x628   : > { %v3675_v21 = vpop.f32.mrb[86].mxu0  ;;  %v6040_v19 = vpop.f32.mrb[103].mxu1  ;;  %v6355_v9 = vld [vmem:[%s8214_s24 + $0x8] sm:$0xff]  }
 0x629   : > { %v6034_v3 = vpop.f32.mrb[87].mxu0  ;;  %6303 = vrot.lane.b32.xlu0 %v6302_v30, %s6582_s23  ;;  %6151 = vmatprep.subr.bf16.mxu0 %v6355_v9 }
 0x62a   : > { %6152 = vmatpush3.bf16.msra.mxu0 %v6355_v9 }
 0x62e   : > { %v3768_v24 = vpop.f32.mrb[88].mxu0 }
 0x62f   : > { %v6045_v41 = vpop.f32.mrb[89].mxu0 }
 0x630   : > { %v3771_v13 = vpop.f32.mrb[90].mxu0 }
 0x631   : > { %v6046_v16 = vpop.f32.mrb[91].mxu0 }
 0x662   : > { %v3816_v27 = vpop.f32.mrb[104].mxu1 }
 0x663   : > { %v6307_v52 = vpack.i.bf16 %v3816_v27, %v3768_v24  ;;  %v3864_v7 = vpop.f32.mrb[92].mxu0  ;;  %v6051_v54 = vpop.f32.mrb[105].mxu1 }
 0x664   : > { %v6057_v47 = vpop.f32.mrb[93].mxu0  ;;  %v3819_v17 = vpop.f32.mrb[106].mxu1 }
 0x665   : > { %v3867_v42 = vpop.f32.mrb[94].mxu0  ;;  %6308 = vrot.lane.b32.xlu1 %v6307_v52, %s6582_s23  ;;  %v6052_v6 = vpop.f32.mrb[107].mxu1 }
 0x666   : > { %v6058_v18 = vpop.f32.mrb[95].mxu0 }
 0x66a   : > { %v3912_v59 = vpop.f32.mrb[108].mxu1 }
 0x66b   : > { %v6312_v51 = vpack.i.bf16 %v3912_v59, %v3864_v7  ;;  %v3960_v40 = vpop.f32.mrb[96].mxu0  ;;  %v6063_v62 = vpop.f32.mrb[109].mxu1 }
 0x66c   : > { %v6069_v50 = vpop.f32.mrb[97].mxu0  ;;  %v3915_v29 = vpop.f32.mrb[110].mxu1 }
 0x66d   : > { %v3963_v46 = vpop.f32.mrb[98].mxu0  ;;  %6313 = vrot.lane.b32.xlu0 %v6312_v51, %s6583_s19  ;;  %v6064_v5 = vpop.f32.mrb[111].mxu1 }
 0x66e   : > { %v6070_v15 = vpop.f32.mrb[99].mxu0 }
 0x672   : > { %v4008_v25 = vpop.f32.mrb[112].mxu1 }
 0x673   : > { %v6317_v63 = vpack.i.bf16 %v4008_v25, %v3960_v40  ;;  %v4056_v10 = vpop.f32.mrb[100].mxu0  ;;  %v6075_v57 = vpop.f32.mrb[113].mxu1 }
 0x674   : > { %v6081_v48 = vpop.f32.mrb[101].mxu0  ;;  %v4011_v20 = vpop.f32.mrb[114].mxu1 }
 0x675   : > { %v4059_v14 = vpop.f32.mrb[102].mxu0  ;;  %6318 = vrot.lane.b32.xlu1 %v6317_v63, %s6583_s19  ;;  %v6076_v0 = vpop.f32.mrb[115].mxu1 }
 0x676   : > { %v6082_v23 = vpop.f32.mrb[103].mxu0 }
 0x67a   : > { %v4104_v35 = vpop.f32.mrb[116].mxu1 }
 0x67b   : > { %v6327_v56 = vpack.i.bf16 %v4104_v35, %v4056_v10  ;;  %v4152_v37 = vpop.f32.mrb[104].mxu0  ;;  %v6087_v58 = vpop.f32.mrb[117].mxu1 }
 0x67c   : > { %v6093_v49 = vpop.f32.mrb[105].mxu0  ;;  %v4107_v11 = vpop.f32.mrb[118].mxu1 }
 0x67d   : > { %v4155_v43 = vpop.f32.mrb[106].mxu0  ;;  %v6088_v22 = vpop.f32.mrb[119].mxu1 }
 0x67e   : > { %v6094_v1 = vpop.f32.mrb[107].mxu0 }
 0x682   : > { %v4200_v61 = vpop.f32.mrb[120].mxu1 }
 0x683   : > { %v6337_v45 = vpack.i.bf16 %v4200_v61, %v4152_v37  ;;  %v6099_v31 = vpop.f32.mrb[121].mxu1 }
 0x684   : > { %v4203_v53 = vpop.f32.mrb[122].mxu1 }
 0x685   : > { %v6100_v39 = vpop.f32.mrb[123].mxu1 }
 0x68a   : > { %v6294_v24 = vpop.permute.xlu0 %6293 }
 0x68b   : > { %v6296_v22 = vunpack.i.h.bf16 %v6294_v24  ;;  %v6295_v1 = vunpack.i.l.bf16 %v6294_v24 }
 0x68d   : > { %v4687_v53 = vsel %vm1039_vm3, %v7870_v12, %v6296_v22  ;;  %v4686_v39 = vsel %vm1039_vm3, %v7868_v2, %v6295_v1  ;;  %v6544_v22 = vld [vmem:[%s8167_s13 + $0x8] sm:$0xff] }
 0x690   : > { %v4296_v26 = vpop.f32.mrb[124].mxu1 }
 0x691   : > { %v4248_v60 = vpop.f32.mrb[108].mxu0  ;;  %v6111_v44 = vpop.f32.mrb[125].mxu1 }
 0x692   : > { %v6322_v34 = vpack.i.bf16 %v4296_v26, %v4248_v60  ;;  %v6105_v30 = vpop.f32.mrb[109].mxu0  ;;  %v4299_v55 = vpop.f32.mrb[126].mxu1 }
 0x693   : > { %v4251_v21 = vpop.f32.mrb[110].mxu0  ;;  %v6112_v3 = vpop.f32.mrb[127].mxu1 }
 0x694   : > { %v6106_v19 = vpop.f32.mrb[111].mxu0  ;;  %6323 = vrot.lane.b32.xlu0 %v6322_v34, %s6584_s28  ;;  %v6299_v10 = vpop.permute.xlu1 %6298 }
 0x695   : > { %v6301_v55 = vunpack.i.h.bf16 %v6299_v10  ;;  %v6300_v9 = vunpack.i.l.bf16 %v6299_v10 }
 0x697   : > { %v4689_v2 = vsel %vm1039_vm3, %v7874_v28, %v6301_v55  ;;  %v4688_v3 = vsel %vm1039_vm3, %v7872_v36, %v6300_v9  ;;  %v6546_v55 = vld [vmem:[%s8167_s13 + $0x20] sm:$0xff] }
 0x698   : > { %6328 = vrot.lane.b32.xlu0 %v6327_v56, %s6583_s19  ;;  %v4392_v41 = vpop.f32.mrb[128].mxu1 }
 0x699   : > { %v4344_v13 = vpop.f32.mrb[112].mxu0  ;;  %v6123_v16 = vpop.f32.mrb[129].mxu1 }
 0x69a   : > { %v6332_v27 = vpack.i.bf16 %v4392_v41, %v4344_v13  ;;  %v6117_v52 = vpop.f32.mrb[113].mxu0  ;;  %v4395_v7 = vpop.f32.mrb[130].mxu1 }
 0x69b   : > { %v4347_v54 = vpop.f32.mrb[114].mxu0  ;;  %v6304_v47 = vpop.permute.xlu0 %6303 }
 0x69c   : > { %v6306_v17 = vunpack.i.h.bf16 %v6304_v47  ;;  %v6305_v42 = vunpack.i.l.bf16 %v6304_v47  ;;  %v6118_v6 = vpop.f32.mrb[115].mxu0  ;;  %6333 = vrot.lane.b32.xlu1 %v6332_v27, %s6584_s28  ;;  %v6124_v18 = vpop.f32.mrb[131].mxu1 }
 0x69e   : > { %v7911_v59 = vsel %vm1039_vm3, %v7882_v38, %v6306_v17  ;;  %v7915_v51 = vsel %vm1039_vm3, %v7876_v8, %v6305_v42 }
 0x6a0   : > { %6338 = vrot.lane.b32.xlu1 %v6337_v45, %s6583_s19 }
 0x6cd   : > { %v4488_v40 = vpop.f32.mrb[132].mxu1 }
 0x6ce   : > { %v4440_v62 = vpop.f32.mrb[116].mxu0  ;;  %v6135_v50 = vpop.f32.mrb[133].mxu1 }
 0x6cf   : > { %v6342_v29 = vpack.i.bf16 %v4488_v40, %v4440_v62  ;;  %v6129_v46 = vpop.f32.mrb[117].mxu0  ;;  %v4491_v5 = vpop.f32.mrb[134].mxu1 }
 0x6d0   : > { %v4443_v15 = vpop.f32.mrb[118].mxu0  ;;  %v6136_v25 = vpop.f32.mrb[135].mxu1 }
 0x6d1   : > { %v6130_v63 = vpop.f32.mrb[119].mxu0  ;;  %6343 = vrot.lane.b32.xlu0 %v6342_v29, %s6584_s28 }
 0x6d5   : > { %v4584_v38 = vpop.f32.mrb[136].mxu1 }
 0x6d6   : > { %v4536_v57 = vpop.f32.mrb[120].mxu0  ;;  %v6147_v48 = vpop.f32.mrb[137].mxu1 }
 0x6d7   : > { %v6347_v20 = vpack.i.bf16 %v4584_v38, %v4536_v57  ;;  %v6141_v8 = vpop.f32.mrb[121].mxu0  ;;  %v6309_v14 = vpop.permute.xlu1 %6308 }
 0x6d8   : > { %v6311_v0 = vunpack.i.h.bf16 %v6309_v14  ;;  %v6310_v23 = vunpack.i.l.bf16 %v6309_v14  ;;  %v4539_v35 = vpop.f32.mrb[122].mxu0  ;;  %v4587_v56 = vpop.f32.mrb[138].mxu1 }
 0x6d9   : > { %v6148_v37 = vpop.f32.mrb[139].mxu1  ;;  %6348 = vrot.lane.b32.xlu1 %v6347_v20, %s6584_s28  ;;  %v6142_v58 = vpop.f32.mrb[123].mxu0  ;;  %v6542_v56 = vld [vmem:[%s8167_s13] sm:$0xff] }
 0x6da   : > { %v4693_v49 = vsel %vm1039_vm3, %v7894_v33, %v6311_v0  ;;  %v4692_v11 = vsel %vm1039_vm3, %v7878_v32, %v6310_v23 }
 0x6df   : > { %v6314_v43 = vpop.permute.xlu0 %6313 }
 0x6e0   : > { %v6316_v61 = vunpack.i.h.bf16 %v6314_v43  ;;  %v6315_v45 = vunpack.i.l.bf16 %v6314_v43 }
 0x6e2   : > { %v4695_v33 = vsel %vm4694_vm6, %v4686_v39, %v6315_v45  ;;  %v4696_v32 = vsel %vm4694_vm6, %v4687_v53, %v6316_v61 }
 0x6e7   : > { %v6319_v60 = vpop.permute.xlu1 %6318 }
 0x6e8   : > { %v6321_v21 = vunpack.i.h.bf16 %v6319_v60  ;;  %v6320_v19 = vunpack.i.l.bf16 %v6319_v60 }
 0x6ea   : > { %v4698_v13 = vsel %vm4694_vm6, %v4689_v2, %v6321_v21  ;;  %v4697_v16 = vsel %vm4694_vm6, %v4688_v3, %v6320_v19  ;;  %v6547_v19 = vld [vmem:[%s8167_s13 + $0x30] sm:$0xff]  ;;  %v6548_v2 = vld [vmem:[%s8167_s13 + $0x28] sm:$0xff] }
 0x706   : > { %v6324_v31 = vpop.permute.xlu0 %6323 }
 0x707   : > { %v6326_v4 = vunpack.i.h.bf16 %v6324_v31  ;;  %v6325_v26 = vunpack.i.l.bf16 %v6324_v31  ;;  %v6545_v31 = vld [vmem:[%s8167_s13 + $0x18] sm:$0xff] }
 0x709   : > { %v4704_v44 = vsel %vm4703_vm7, %v4695_v33, %v6325_v26  ;;  %v4705_v34 = vsel %vm4703_vm7, %v4696_v32, %v6326_v4 }
 0x70a   : > { %v4712_v30 = vpack.c.bf16 %v4705_v34, %v4704_v44  ;;  %v6329_v42 = vpop.permute.xlu0 %6328 }
 0x70b   : > { %v6331_v6 = vunpack.i.h.bf16 %v6329_v42  ;;  %v6330_v18 = vunpack.i.l.bf16 %v6329_v42 }
 0x70c   : > { %6153 = vmatprep.mubr.msk.bf16.mxu0 %vm680_vm1, %v4712_v30 }
 0x70d   : > { %v4699_v29 = vsel %vm4694_vm6, %v7915_v51, %v6330_v18  ;;  %v4700_v46 = vsel %vm4694_vm6, %v7911_v59, %v6331_v6  ;;  %v5562_v59 = vld [vmem:[%s8215_s27] ss:$0 sm:$0xff] }
 0x70e   : > { %v6334_v12 = vpop.permute.xlu1 %6333 }
 0x70f   : > { %v6336_v24 = vunpack.i.h.bf16 %v6334_v12  ;;  %v6335_v41 = vunpack.i.l.bf16 %v6334_v12 }
 0x711   : > { %v4707_v27 = vsel %vm4703_vm7, %v4698_v13, %v6336_v24  ;;  %v4706_v52 = vsel %vm4703_vm7, %v4697_v16, %v6335_v41  ;;  %v6549_v41 = vld [vmem:[%s8167_s13 + $0x38] sm:$0xff] }
 0x712   : > { %v4713_v7 = vpack.c.bf16 %v4707_v27, %v4706_v52  ;;  %v6339_v54 = vpop.permute.xlu1 %6338 }
 0x713   : > { %v6341_v47 = vunpack.i.h.bf16 %v6339_v54  ;;  %v6340_v17 = vunpack.i.l.bf16 %v6339_v54 }
 0x714   : > { %6154 = vmatmul.mubr.msk.bf16.vlgmr.msra.gmra.mrb[124].mxu0 %vm680_vm1, %v4713_v7 }
 0x715   : > { %v4702_v28 = vsel %vm4694_vm6, %v4693_v49, %v6341_v47  ;;  %v4701_v36 = vsel %vm4694_vm6, %v4692_v11, %v6340_v17  ;;  %v6543_v49 = vld [vmem:[%s8167_s13 + $0x10] sm:$0xff] }
 0x743   : > { %v6344_v40 = vpop.permute.xlu0 %6343 }
 0x744   : > { %v6346_v62 = vunpack.i.h.bf16 %v6344_v40  ;;  %v6345_v50 = vunpack.i.l.bf16 %v6344_v40 }
 0x746   : > { %v4708_v5 = vsel %vm4703_vm7, %v4699_v29, %v6345_v50  ;;  %v4709_v15 = vsel %vm4703_vm7, %v4700_v46, %v6346_v62 }
 0x747   : > { %v4714_v25 = vpack.c.bf16 %v4709_v15, %v4708_v5 }
 0x749   : > { %6157 = vmatprep.mubr.msk.bf16.mxu0 %vm680_vm1, %v4714_v25 }
 0x74b   : > { %v6349_v63 = vpop.permute.xlu1 %6348 }
 0x74c   : > { %v6351_v10 = vunpack.i.h.bf16 %v6349_v63  ;;  %v6350_v38 = vunpack.i.l.bf16 %v6349_v63 }
 0x74e   : > { %v4711_v57 = vsel %vm4703_vm7, %v4702_v28, %v6351_v10  ;;  %v4710_v48 = vsel %vm4703_vm7, %v4701_v36, %v6350_v38 }
 0x74f   : > { %v4715_v20 = vpack.c.bf16 %v4711_v57, %v4710_v48  ;;  %v6356_v57 = vld [vmem:[%s6713_s3] sm:$0xff]   ;;  %v6357_v48 = vld [vmem:[%s6713_s3 + $0x8] sm:$0xff]  }
 0x750   : > { %6161 = vmatprep.subr.bf16.mxu1 %v6356_v57 }
 0x751   : > { %6158 = vmatmul.mubr.msk.bf16.gmra.mrb[128].mxu0 %vm680_vm1, %v4715_v20  ;;  %6162 = vmatpush3.bf16.msra.mxu1 %v6356_v57 }
 0x752   : > { %6163 = vmatprep.subr.bf16.mxu1 %v6357_v48 }
 0x755   : > { %6164 = vmatpush3.bf16.msra.mxu1 %v6357_v48 }
 0x7e7   : > { %v6155_v51 = vpop.f32.mrb[124].mxu0 }
 0x7e8   : > { %v4785_v8 = vpop.f32.mrb[125].mxu0  ;;  %v4794_v14 = vadd.f32 %v6155_v51, %v5562_v59 }
 0x7e9   : > { %v4786_v0 = vadd.f32 %v5562_v59, %v4785_v8  ;;  %v6156_v23 = vpop.f32.mrb[126].mxu0 }
 0x7ea   : > { %v4788_v35 = vpop.f32.mrb[127].mxu0  ;;  %v7967_v11 = vadd.f32 %v6543_v49, %v4794_v14  ;;  %v4797_v43 = vadd.f32 %v6156_v23, %v5562_v59 }
 0x7eb   : > { %v7962_v37 = vadd.f32 %v6542_v56, %v4786_v0  ;;  %v4789_v58 = vadd.f32 %v5562_v59, %v4788_v35 }
 0x7ec   : > { %v7981_v53 = vadd.f32 %v6545_v31, %v4797_v43  ;;  %v4832_v39 = vsel %vm680_vm1, %v7967_v11, 0.0 }
 0x7ed   : > { %v7972_v1 = vadd.f32 %v6544_v22, %v4789_v58  ;;  %v4826_v61 = vsel %vm680_vm1, %v7962_v37, 0.0 }
 0x7ee   : > { %4827 = vadd.xlane.f32.xlu0 %v4826_v61  ;;  %v4835_v4 = vsel %vm680_vm1, %v7981_v53, 0.0 }
 0x7ef   : > { %v4829_v45 = vsel %vm680_vm1, %v7972_v1, 0.0 }
 0x7f0   : > { %4830 = vadd.xlane.f32.xlu1 %v4829_v45 }
 0x7f2   : > { %4833 = vadd.xlane.f32.xlu0 %v4832_v39 }
 0x7f6   : > { %4836 = vadd.xlane.f32.xlu0 %v4835_v4 }
 0x824   : > { %v6159_v26 = vpop.f32.mrb[128].mxu0 }
 0x825   : > { %v4810_v33 = vadd.f32 %v6159_v26, %v5562_v59  ;;  %v4801_v32 = vpop.f32.mrb[129].mxu0 }
 0x826   : > { %v4802_v60 = vadd.f32 %v5562_v59, %v4801_v32  ;;  %v6160_v44 = vpop.f32.mrb[130].mxu0 }
 0x827   : > { %v4813_v34 = vadd.f32 %v6160_v44, %v5562_v59  ;;  %v4804_v30 = vpop.f32.mrb[131].mxu0  ;;  %v7995_v12 = vadd.f32 %v6547_v19, %v4810_v33 }
 0x828   : > { %v7990_v9 = vadd.f32 %v6546_v55, %v4802_v60  ;;  %v4805_v21 = vadd.f32 %v5562_v59, %v4804_v30 }
 0x829   : > { %v8007_v13 = vadd.f32 %v6549_v41, %v4813_v34  ;;  %v4844_v27 = vsel %vm680_vm1, %v7995_v12, 0.0 }
 0x82a   : > { %v8000_v3 = vadd.f32 %v6548_v2, %v4805_v21  ;;  %v4838_v24 = vsel %vm680_vm1, %v7990_v9, 0.0 }
 0x82b   : > { %4839 = vadd.xlane.f32.xlu0 %v4838_v24  ;;  %v4847_v52 = vsel %vm680_vm1, %v8007_v13, 0.0 }
 0x82c   : > { %v4841_v16 = vsel %vm680_vm1, %v8000_v3, 0.0 }
 0x82d   : > { %4842 = vadd.xlane.f32.xlu1 %v4841_v16 }
 0x82f   : > { %4845 = vadd.xlane.f32.xlu0 %v4844_v27 }
 0x831   : > { %4848 = vadd.xlane.f32.xlu1 %v4847_v52  ;;  %v5569_v52 = vld [vmem:[%s622_s2] ss:$0 sm:$0xff] }
 0x87b   : > { %v4828_v7 = vpop.xlane.xlu0 %4827 }
 0x87c   : > { %v4850_v54 = vmul.f32 0.03125, %v4828_v7 }
 0x87d   : > { %v4831_v47 = vpop.xlane.xlu1 %4830 }
 0x87e   : > { %v8016_v17 = vsub.f32 %v7962_v37, %v4850_v54  ;;  %v4851_v28 = vmul.f32 0.03125, %v4831_v47 }
 0x87f   : > { %v4834_v36 = vpop.xlane.xlu0 %4833 }
 0x880   : > { %v8019_v42 = vsub.f32 %v7972_v1, %v4851_v28  ;;  %v4852_v6 = vmul.f32 0.03125, %v4834_v36  ;;  %v4866_v18 = vmul.f32 %v8016_v17, %v8016_v17 }
 0x882   : > { %v8024_v40 = vsub.f32 %v7967_v11, %v4852_v6  ;;  %v4874_v62 = vsel %vm680_vm1, %v4866_v18, 0.0  ;;  %v4867_v50 = vmul.f32 %v8019_v42, %v8019_v42  ;;  %v5570_v6 = vld [vmem:[%s625_s22] ss:$0 sm:$0xff] }
 0x883   : > { %4875 = vadd.xlane.f32.xlu0 %v4874_v62  ;;  %v4837_v29 = vpop.xlane.xlu0 %4836 }
 0x884   : > { %v4853_v46 = vmul.f32 0.03125, %v4837_v29  ;;  %v4877_v5 = vsel %vm680_vm1, %v4867_v50, 0.0  ;;  %v4868_v15 = vmul.f32 %v8024_v40, %v8024_v40 }
 0x885   : > { %4878 = vadd.xlane.f32.xlu1 %v4877_v5 }
 0x886   : > { %v8033_v25 = vsub.f32 %v7981_v53, %v4853_v46  ;;  %v4880_v63 = vsel %vm680_vm1, %v4868_v15, 0.0 }
 0x887   : > { %4881 = vadd.xlane.f32.xlu0 %v4880_v63 }
 0x888   : > { %v4869_v10 = vmul.f32 %v8033_v25, %v8033_v25 }
 0x88a   : > { %v4883_v38 = vsel %vm680_vm1, %v4869_v10, 0.0 }
 0x88b   : > { %4884 = vadd.xlane.f32.xlu1 %v4883_v38 }
 0x8b8   : > { %v4840_v20 = vpop.xlane.xlu0 %4839 }
 0x8b9   : > { %v4854_v59 = vmul.f32 0.03125, %v4840_v20 }
 0x8ba   : > { %v4843_v51 = vpop.xlane.xlu1 %4842 }
 0x8bb   : > { %v8042_v8 = vsub.f32 %v7990_v9, %v4854_v59  ;;  %v4855_v14 = vmul.f32 0.03125, %v4843_v51 }
 0x8bc   : > { %v4846_v0 = vpop.xlane.xlu0 %4845 }
 0x8bd   : > { %v8045_v23 = vsub.f32 %v8000_v3, %v4855_v14  ;;  %v4856_v35 = vmul.f32 0.03125, %v4846_v0  ;;  %v4870_v56 = vmul.f32 %v8042_v8, %v8042_v8 }
 0x8be   : > { %v4849_v58 = vpop.xlane.xlu1 %4848 }
 0x8bf   : > { %v8050_v49 = vsub.f32 %v7995_v12, %v4856_v35  ;;  %v4857_v43 = vmul.f32 0.03125, %v4849_v58  ;;  %v4886_v22 = vsel %vm680_vm1, %v4870_v56, 0.0  ;;  %v4871_v61 = vmul.f32 %v8045_v23, %v8045_v23 }
 0x8c0   : > { %4887 = vadd.xlane.f32.xlu0 %v4886_v22 }
 0x8c1   : > { %v8056_v45 = vsub.f32 %v8007_v13, %v4857_v43  ;;  %v4889_v31 = vsel %vm680_vm1, %v4871_v61, 0.0  ;;  %v4872_v39 = vmul.f32 %v8050_v49, %v8050_v49 }
 0x8c2   : > { %4890 = vadd.xlane.f32.xlu1 %v4889_v31 }
 0x8c3   : > { %v4892_v4 = vsel %vm680_vm1, %v4872_v39, 0.0  ;;  %v4873_v26 = vmul.f32 %v8056_v45, %v8056_v45 }
 0x8c4   : > { %4893 = vadd.xlane.f32.xlu0 %v4892_v4 }
 0x8c5   : > { %v4895_v33 = vsel %vm680_vm1, %v4873_v26, 0.0 }
 0x8c6   : > { %4896 = vadd.xlane.f32.xlu1 %v4895_v33 }
 0x910   : > { %v4876_v32 = vpop.xlane.xlu0 %4875 }
 0x911   : > { %v4898_v60 = vmul.f32 0.03125, %v4876_v32 }
 0x912   : > { %v4879_v44 = vpop.xlane.xlu1 %4878 }
 0x913   : > { %v4906_v34 = vadd.f32 1e-05, %v4898_v60  ;;  %v4899_v30 = vmul.f32 0.03125, %v4879_v44 }
 0x914   : > { %v4882_v55 = vpop.xlane.xlu0 %4881 }
 0x915   : > { %6510 = vrsqrt.f32 %v4906_v34  ;;  %v4907_v21 = vadd.f32 1e-05, %v4899_v30  ;;  %v4900_v19 = vmul.f32 0.03125, %v4882_v55 }
 0x917   : > { %6512 = vrsqrt.f32 %v4907_v21  ;;  %v4908_v2 = vadd.f32 1e-05, %v4900_v19 }
 0x918   : > { %v4885_v24 = vpop.xlane.xlu1 %4884 }
 0x919   : > { %6514 = vrsqrt.f32 %v4908_v2  ;;  %v4901_v41 = vmul.f32 0.03125, %v4885_v24  ;;  %v6360_v2 = vld [vmem:[%s6723_s16 + $0x10] sm:$0xff]   ;;  %v6361_v24 = vld [vmem:[%s6723_s16 + $0x18] sm:$0xff]  }
 0x91b   : > { %v4909_v16 = vadd.f32 1e-05, %v4901_v41  ;;  %v6362_v41 = vld [vmem:[%s6723_s16 + $0x20] sm:$0xff]  }
 0x91d   : > { %6516 = vrsqrt.f32 %v4909_v16  ;;  %v6363_v16 = vld [vmem:[%s6723_s16 + $0x28] sm:$0xff]  }
 0x91f   : > { %v6511_v27 = vpop.eup %6510 }
 0x920   : > { %v4922_v7 = vmul.f32 %v6511_v27, %v8016_v17  ;;  %v6364_v27 = vld [vmem:[%s6723_s16 + $0x30] sm:$0xff]  }
 0x921   : > { %v6513_v54 = vpop.eup %6512 }
 0x922   : > { %v4923_v47 = vmul.f32 %v6513_v54, %v8019_v42  ;;  %v4936_v28 = vmul.f32 %v5569_v52, %v4922_v7  ;;  %v5571_v7 = vld [vmem:[%s633_s5] ss:$0 sm:$0xff] }
 0x923   : > { %v6515_v36 = vpop.eup %6514 }
 0x924   : > { %v4924_v18 = vmul.f32 %v6515_v36, %v8024_v40  ;;  %v4937_v62 = vmul.f32 %v5569_v52, %v4923_v47  ;;  %v4950_v50 = vadd.f32 %v5570_v6, %v4936_v28 }
 0x926   : > { %v4951_v29 = vadd.f32 %v5570_v6, %v4937_v62  ;;  %v4938_v5 = vmul.f32 %v5569_v52, %v4924_v18 }
 0x927   : > { %v6517_v46 = vpop.eup %6516 }
 0x928   : > { %v4925_v15 = vmul.f32 %v6517_v46, %v8033_v25  ;;  %v4958_v17 = vpack.c.bf16 %v4951_v29, %v4950_v50  ;;  %v4952_v42 = vadd.f32 %v5570_v6, %v4938_v5 }
 0x92a   : > { %v4939_v63 = vmul.f32 %v5569_v52, %v4925_v15  ;;  %6165 = vmatprep.mubr.msk.bf16.mxu1 %vm680_vm1, %v4958_v17 }
 0x92c   : > { %v4953_v10 = vadd.f32 %v5570_v6, %v4939_v63 }
 0x92e   : > { %v4959_v38 = vpack.c.bf16 %v4953_v10, %v4952_v42 }
 0x930   : > { %6166 = vmatmul.mubr.msk.bf16.vlgmr.msra.gmra.mrb[140].mxu1 %vm680_vm1, %v4959_v38 }
 0x94d   : > { %v4888_v57 = vpop.xlane.xlu0 %4887 }
 0x94e   : > { %v4902_v48 = vmul.f32 0.03125, %v4888_v57 }
 0x94f   : > { %v4891_v20 = vpop.xlane.xlu1 %4890 }
 0x950   : > { %v4910_v40 = vadd.f32 1e-05, %v4902_v48  ;;  %v4903_v59 = vmul.f32 0.03125, %v4891_v20 }
 0x951   : > { %v4894_v51 = vpop.xlane.xlu0 %4893 }
 0x952   : > { %6518 = vrsqrt.f32 %v4910_v40  ;;  %v4911_v14 = vadd.f32 1e-05, %v4903_v59  ;;  %v4904_v0 = vmul.f32 0.03125, %v4894_v51 }
 0x953   : > { %v4897_v35 = vpop.xlane.xlu1 %4896 }
 0x954   : > { %6520 = vrsqrt.f32 %v4911_v14  ;;  %v4912_v25 = vadd.f32 1e-05, %v4904_v0  ;;  %v4905_v56 = vmul.f32 0.03125, %v4897_v35 }
 0x956   : > { %6522 = vrsqrt.f32 %v4912_v25  ;;  %v4913_v58 = vadd.f32 1e-05, %v4905_v56 }
 0x958   : > { %6524 = vrsqrt.f32 %v4913_v58 }
 0x95c   : > { %v6519_v43 = vpop.eup %6518 }
 0x95d   : > { %v4926_v22 = vmul.f32 %v6519_v43, %v8042_v8 }
 0x95e   : > { %v6521_v61 = vpop.eup %6520 }
 0x95f   : > { %v4927_v31 = vmul.f32 %v6521_v61, %v8045_v23  ;;  %v4940_v39 = vmul.f32 %v5569_v52, %v4926_v22 }
 0x960   : > { %v6523_v4 = vpop.eup %6522 }
 0x961   : > { %v4928_v26 = vmul.f32 %v6523_v4, %v8050_v49  ;;  %v4941_v33 = vmul.f32 %v5569_v52, %v4927_v31  ;;  %v4954_v44 = vadd.f32 %v5570_v6, %v4940_v39  ;;  %v6358_v49 = vld [vmem:[%s6723_s16] sm:$0xff]  }
 0x962   : > { %v6525_v32 = vpop.eup %6524  ;;  %6173 = vmatprep.subr.bf16.mxu0 %v6358_v49 }
 0x963   : > { %v4929_v60 = vmul.f32 %v6525_v32, %v8056_v45  ;;  %v4955_v34 = vadd.f32 %v5570_v6, %v4941_v33  ;;  %v4942_v30 = vmul.f32 %v5569_v52, %v4928_v26  ;;  %6174 = vmatpush3.bf16.msra.mxu0 %v6358_v49  ;;  %v6359_v45 = vld [vmem:[%s6723_s16 + $0x8] sm:$0xff]  }
 0x964   : > { %6175 = vmatprep.subr.bf16.mxu0 %v6359_v45 }
 0x965   : > { %v4960_v55 = vpack.c.bf16 %v4955_v34, %v4954_v44  ;;  %v4943_v8 = vmul.f32 %v5569_v52, %v4929_v60  ;;  %v4956_v23 = vadd.f32 %v5570_v6, %v4942_v30  ;;  %v6365_v52 = vld [vmem:[%s6723_s16 + $0x38] sm:$0xff]  }
 0x967   : > { %6169 = vmatprep.mubr.msk.bf16.mxu1 %vm680_vm1, %v4960_v55  ;;  %v4957_v21 = vadd.f32 %v5570_v6, %v4943_v8  ;;  %6176 = vmatpush3.bf16.msra.mxu0 %v6359_v45 }
 0x968   : > { %6177 = vmatprep.subr.bf16.mxu0 %v6360_v2 }
 0x969   : > { %v4961_v19 = vpack.c.bf16 %v4957_v21, %v4956_v23 }
 0x96b   : > { %6170 = vmatmul.mubr.msk.bf16.gmra.mrb[144].mxu1 %vm680_vm1, %v4961_v19  ;;  %6178 = vmatpush3.bf16.msra.mxu0 %v6360_v2 }
 0x96c   : > { %6179 = vmatprep.subr.bf16.mxu0 %v6361_v24 }
 0x96f   : > { %6180 = vmatpush3.bf16.msra.mxu0 %v6361_v24 }
 0x970   : > { %6181 = vmatprep.subr.bf16.mxu0 %v6362_v41 }
 0x973   : > { %6182 = vmatpush3.bf16.msra.mxu0 %v6362_v41 }
 0x974   : > { %6183 = vmatprep.subr.bf16.mxu0 %v6363_v16 }
 0x977   : > { %6184 = vmatpush3.bf16.msra.mxu0 %v6363_v16 }
 0x978   : > { %6185 = vmatprep.subr.bf16.mxu0 %v6364_v27 }
 0x97b   : > { %6186 = vmatpush3.bf16.msra.mxu0 %v6364_v27 }
 0x97c   : > { %6187 = vmatprep.subr.bf16.mxu0 %v6365_v52 }
 0x97f   : > { %6188 = vmatpush3.bf16.msra.mxu0 %v6365_v52 }
 0xa03   : > { %v6167_v54 = vpop.f32.mrb[140].mxu1 }
 0xa04   : > { %v5040_v47 = vadd.f32 %v6167_v54, %v5571_v7  ;;  %v5031_v28 = vpop.f32.mrb[141].mxu1 }
 0xa05   : > { %v5032_v36 = vadd.f32 %v5571_v7, %v5031_v28  ;;  %v6168_v6 = vpop.f32.mrb[142].mxu1 }
 0xa06   : > { %v5072_v18 = vmul.f32 0.044715, %v5040_v47  ;;  %v5043_v62 = vadd.f32 %v6168_v6, %v5571_v7  ;;  %v5034_v50 = vpop.f32.mrb[143].mxu1  ;;  %v5064_v4 = vmul.f32 0.5, %v5040_v47 }
 0xa07   : > { %v5070_v29 = vmul.f32 0.044715, %v5032_v36  ;;  %v5035_v46 = vadd.f32 %v5571_v7, %v5034_v50  ;;  %v5062_v32 = vmul.f32 0.5, %v5032_v36 }
 0xa08   : > { %v5080_v5 = vmul.f32 %v5072_v18, %v5040_v47  ;;  %v5073_v15 = vmul.f32 0.044715, %v5043_v62  ;;  %v5065_v26 = vmul.f32 0.5, %v5043_v62 }
 0xa09   : > { %v5078_v17 = vmul.f32 %v5070_v29, %v5032_v36  ;;  %v5071_v63 = vmul.f32 0.044715, %v5035_v46  ;;  %v5063_v60 = vmul.f32 0.5, %v5035_v46 }
 0xa0a   : > { %v5088_v42 = vmul.f32 %v5080_v5, %v5040_v47  ;;  %v5081_v10 = vmul.f32 %v5073_v15, %v5043_v62 }
 0xa0b   : > { %v5086_v38 = vmul.f32 %v5078_v17, %v5032_v36  ;;  %v5079_v57 = vmul.f32 %v5071_v63, %v5035_v46 }
 0xa0c   : > { %v5096_v48 = vadd.f32 %v5088_v42, %v5040_v47  ;;  %v5089_v20 = vmul.f32 %v5081_v10, %v5043_v62 }
 0xa0d   : > { %v5087_v40 = vmul.f32 %v5079_v57, %v5035_v46  ;;  %v5094_v59 = vadd.f32 %v5086_v38, %v5032_v36 }
 0xa0e   : > { %v5104_v51 = vmul.f32 0.7978846, %v5096_v48  ;;  %v5097_v14 = vadd.f32 %v5089_v20, %v5043_v62 }
 0xa0f   : > { %v5095_v0 = vadd.f32 %v5087_v40, %v5035_v46  ;;  %v5102_v35 = vmul.f32 0.7978846, %v5094_v59 }
 0xa10   : > { %6526 = vtanh.f32 %v5104_v51  ;;  %v5105_v25 = vmul.f32 0.7978846, %v5097_v14 }
 0xa11   : > { %v5103_v56 = vmul.f32 0.7978846, %v5095_v0  ;;  %6528 = vtanh.f32 %v5102_v35 }
 0xa12   : > { %6530 = vtanh.f32 %v5105_v25 }
 0xa13   : > { %6532 = vtanh.f32 %v5103_v56 }
 0xa1a   : > { %v6527_v58 = vpop.eup %6526 }
 0xa1b   : > { %v6529_v43 = vpop.eup %6528  ;;  %v5120_v22 = vadd.f32 1.0, %v6527_v58 }
 0xa1c   : > { %v6531_v61 = vpop.eup %6530  ;;  %v5118_v31 = vadd.f32 1.0, %v6529_v43 }
 0xa1d   : > { %v6533_v39 = vpop.eup %6532  ;;  %v5121_v33 = vadd.f32 1.0, %v6531_v61  ;;  %v5128_v34 = vmul.f32 %v5120_v22, %v5064_v4 }
 0xa1e   : > { %v5119_v44 = vadd.f32 1.0, %v6533_v39  ;;  %v5126_v55 = vmul.f32 %v5118_v31, %v5062_v32 }
 0xa1f   : > { %v5129_v30 = vmul.f32 %v5121_v33, %v5065_v26  ;;  %v5578_v33 = vld [vmem:[%s641_s20] ss:$0 sm:$0xff] }
 0xa20   : > { %v5127_v8 = vmul.f32 %v5119_v44, %v5063_v60 }
 0xa21   : > { %v5135_v23 = vpack.c.bf16 %v5129_v30, %v5128_v34 }
 0xa22   : > { %v5134_v21 = vpack.c.bf16 %v5127_v8, %v5126_v55 }
 0xa24   : > { %6189 = vmatprep.mubr.bf16.mxu0 %v5134_v21 }
 0xa25   : > { %6190 = vmatmul.mubr.bf16.vlgmr.msra.gmra.mrb[132].mxu0 %v5135_v23 }
 0xa3e   : > { %v6171_v19 = vpop.f32.mrb[144].mxu1 }
 0xa3f   : > { %v5056_v49 = vadd.f32 %v6171_v19, %v5571_v7  ;;  %v5047_v45 = vpop.f32.mrb[145].mxu1 }
 0xa40   : > { %v5048_v2 = vadd.f32 %v5571_v7, %v5047_v45  ;;  %v6172_v24 = vpop.f32.mrb[146].mxu1 }
 0xa41   : > { %v5076_v41 = vmul.f32 0.044715, %v5056_v49  ;;  %v5059_v16 = vadd.f32 %v6172_v24, %v5571_v7  ;;  %v5050_v27 = vpop.f32.mrb[147].mxu1  ;;  %v5068_v0 = vmul.f32 0.5, %v5056_v49 }
 0xa42   : > { %v5074_v52 = vmul.f32 0.044715, %v5048_v2  ;;  %v5051_v54 = vadd.f32 %v5571_v7, %v5050_v27  ;;  %v5066_v56 = vmul.f32 0.5, %v5048_v2 }
 0xa43   : > { %v5084_v47 = vmul.f32 %v5076_v41, %v5056_v49  ;;  %v5077_v28 = vmul.f32 0.044715, %v5059_v16  ;;  %v5069_v35 = vmul.f32 0.5, %v5059_v16 }
 0xa44   : > { %v5082_v36 = vmul.f32 %v5074_v52, %v5048_v2  ;;  %v5075_v6 = vmul.f32 0.044715, %v5051_v54  ;;  %v5067_v58 = vmul.f32 0.5, %v5051_v54 }
 0xa45   : > { %v5092_v18 = vmul.f32 %v5084_v47, %v5056_v49  ;;  %v5085_v62 = vmul.f32 %v5077_v28, %v5059_v16 }
 0xa46   : > { %v5090_v50 = vmul.f32 %v5082_v36, %v5048_v2  ;;  %v5083_v29 = vmul.f32 %v5075_v6, %v5051_v54 }
 0xa47   : > { %v5093_v46 = vmul.f32 %v5085_v62, %v5059_v16  ;;  %v5100_v5 = vadd.f32 %v5092_v18, %v5056_v49 }
 0xa48   : > { %v5091_v15 = vmul.f32 %v5083_v29, %v5051_v54  ;;  %v5098_v17 = vadd.f32 %v5090_v50, %v5048_v2 }
 0xa49   : > { %v5101_v63 = vadd.f32 %v5093_v46, %v5059_v16  ;;  %v5108_v42 = vmul.f32 0.7978846, %v5100_v5 }
 0xa4a   : > { %v5099_v10 = vadd.f32 %v5091_v15, %v5051_v54  ;;  %v5106_v38 = vmul.f32 0.7978846, %v5098_v17 }
 0xa4b   : > { %v5109_v57 = vmul.f32 0.7978846, %v5101_v63  ;;  %6534 = vtanh.f32 %v5108_v42 }
 0xa4c   : > { %v5107_v48 = vmul.f32 0.7978846, %v5099_v10  ;;  %6536 = vtanh.f32 %v5106_v38 }
 0xa4d   : > { %6538 = vtanh.f32 %v5109_v57 }
 0xa4e   : > { %6540 = vtanh.f32 %v5107_v48 }
 0xa55   : > { %v6535_v7 = vpop.eup %6534 }
 0xa56   : > { %v6537_v20 = vpop.eup %6536  ;;  %v5124_v40 = vadd.f32 1.0, %v6535_v7 }
 0xa57   : > { %v6539_v59 = vpop.eup %6538  ;;  %v5122_v51 = vadd.f32 1.0, %v6537_v20 }
 0xa58   : > { %v6541_v14 = vpop.eup %6540  ;;  %v5125_v25 = vadd.f32 1.0, %v6539_v59  ;;  %v5132_v22 = vmul.f32 %v5124_v40, %v5068_v0 }
 0xa59   : > { %v5123_v43 = vadd.f32 1.0, %v6541_v14  ;;  %v5130_v31 = vmul.f32 %v5122_v51, %v5066_v56 }
 0xa5a   : > { %v5133_v61 = vmul.f32 %v5125_v25, %v5069_v35 }
 0xa5b   : > { %v5131_v39 = vmul.f32 %v5123_v43, %v5067_v58 }
 0xa5c   : > { %v5137_v4 = vpack.c.bf16 %v5133_v61, %v5132_v22 }
 0xa5d   : > { %v5136_v26 = vpack.c.bf16 %v5131_v39, %v5130_v31 }
 0xa5f   : > { %6193 = vmatprep.mubr.bf16.mxu0 %v5136_v26 }
 0xa60   : > { %6194 = vmatmul.mubr.bf16.gmra.mrb[136].mxu0 %v5137_v4 }
 0xaf8   : > { %v6191_v32 = vpop.f32.mrb[132].mxu0 }
 0xaf9   : > { %v5252_v60 = vadd.f32 %v6191_v32, %v5578_v33  ;;  %v5243_v44 = vpop.f32.mrb[133].mxu0 }
 0xafa   : > { %v5244_v34 = vadd.f32 %v5578_v33, %v5243_v44  ;;  %v6192_v30 = vpop.f32.mrb[134].mxu0 }
 0xafb   : > { %v5276_v55 = vadd.f32 %v5252_v60, %v7967_v11  ;;  %v5255_v8 = vadd.f32 %v6192_v30, %v5578_v33  ;;  %v5246_v23 = vpop.f32.mrb[135].mxu0 }
 0xafc   : > { %v5274_v21 = vadd.f32 %v5244_v34, %v7962_v37  ;;  %v5247_v19 = vadd.f32 %v5578_v33, %v5246_v23 }
 0xafd   : > { %5284 = vst.msk [vmem:[%s8167_s13 + $0x10] sm:$0xff] %vm680_vm1, %v5276_v55  ;;  %v5277_v49 = vadd.f32 %v5255_v8, %v7981_v53 }
 0xafe   : > { %5282 = vst.msk [vmem:[%s8167_s13] sm:$0xff] %vm680_vm1, %v5274_v21  ;;  %v5275_v45 = vadd.f32 %v5247_v19, %v7972_v1 }
 0xaff   : > { %5285 = vst.msk [vmem:[%s8167_s13 + $0x18] sm:$0xff] %vm680_vm1, %v5277_v49 }
 0xb00   : > { %5283 = vst.msk [vmem:[%s8167_s13 + $0x8] sm:$0xff] %vm680_vm1, %v5275_v45 }
 0xb33   : > { %v6195_v37 = vpop.f32.mrb[136].mxu0 }
 0xb34   : > { %v5268_v11 = vadd.f32 %v6195_v37, %v5578_v33  ;;  %v5259_v53 = vpop.f32.mrb[137].mxu0 }
 0xb35   : > { %v5260_v2 = vadd.f32 %v5578_v33, %v5259_v53  ;;  %v6196_v24 = vpop.f32.mrb[138].mxu0 }
 0xb36   : > { %v5280_v41 = vadd.f32 %v5268_v11, %v7995_v12  ;;  %v5271_v16 = vadd.f32 %v6196_v24, %v5578_v33  ;;  %v5262_v27 = vpop.f32.mrb[139].mxu0 }
 0xb37   : > { %v5278_v1 = vadd.f32 %v5260_v2, %v7990_v9  ;;  %v5263_v52 = vadd.f32 %v5578_v33, %v5262_v27 }
 0xb38   : > { %5288 = vst.msk [vmem:[%s8167_s13 + $0x30] sm:$0xff] %vm680_vm1, %v5280_v41  ;;  %v5281_v54 = vadd.f32 %v5271_v16, %v8007_v13 }
 0xb39   : > { %5286 = vst.msk [vmem:[%s8167_s13 + $0x20] sm:$0xff] %vm680_vm1, %v5278_v1  ;;  %v5279_v47 = vadd.f32 %v5263_v52, %v8000_v3 }
 0xb3a   : > { %5289 = vst.msk [vmem:[%s8167_s13 + $0x38] sm:$0xff] %vm680_vm1, %v5281_v54 }
 0xb3b   : > { %5287 = vst.msk [vmem:[%s8167_s13 + $0x28] sm:$0xff] %vm680_vm1, %v5279_v47 }
 0xb3c PF: > { %s8216_s2 = sld [smem:[#allocation3_spill]]  ;;  %s8217_s25 = sld [smem:[#allocation2_spill]] }
 0xb3d   : > { %s8218_s26 = sld [smem:[#allocation4_spill]] }
 0xb42   : > { %s23_s27 = sadd.s32 1, %s8216_s2  }
 0xb43   : > { %p20_p6 = scmp.ge.s32.totalorder %s23_s27, 4  }
 0xb45   :  { %22 = sbr.rel (!%p20_p6) target bundleno = 4 (0x4), region = 142 }

</bundles_post_ra>
